<compile_context>
chip_gen: v6e
topology: v6e:2x2x1
jax: 0.10.0
libtpu: 0.0.40
codegen_flags: <defaults>
</compile_context>

<pallas_src>
import functools
import math

import jax
import jax.numpy as jnp
from jax.experimental import pallas as pl
from jax.experimental.pallas import tpu as pltpu


VMEM_LIMIT = 48 * 1024 * 1024   # safe on v7x (64 MiB phys), plenty on v5e/v6e


def _gelu_exact_f32(x):
    # nn.GELU() is the exact erf form; Mosaic has no erf primitive, so use the
    # Abramowitz & Stegun 7.1.26 rational approximation (|err| < 1.5e-7, i.e.
    # float32-accurate) built only from VPU/EUP ops.
    z = x * 0.7071067811865476
    az = jnp.abs(z)
    t = pl.reciprocal(1.0 + 0.3275911 * az, approx=False)
    poly = ((((1.061405429 * t - 1.453152027) * t + 1.421413741) * t
             - 0.284496736) * t + 0.254829592) * t
    erf_abs = 1.0 - poly * jnp.exp(-az * az)
    erf = jnp.where(z < 0, -erf_abs, erf_abs)
    return 0.5 * x * (1.0 + erf)


# ---- fused linear: y = act(x @ w + b) [+res] [*scale + shift] --------------

def _linear_kernel(*refs, has_res, has_aff, act):
    x_ref, w_ref, b_ref = refs[:3]
    pos = 3
    res_ref = sc_ref = sh_ref = None
    if has_res:
        res_ref = refs[pos]
        pos += 1
    if has_aff:
        sc_ref, sh_ref = refs[pos], refs[pos + 1]
        pos += 2
    o_ref, acc_ref = refs[pos], refs[pos + 1]

    k = pl.program_id(2)

    @pl.when(k == 0)
    def _():
        acc_ref[...] = jnp.zeros_like(acc_ref)

    xv = x_ref[...]
    wv = w_ref[...]
    if xv.dtype != wv.dtype:
        xv = xv.astype(wv.dtype)          # keep MXU in the weight's dtype
    acc_ref[...] += jnp.dot(xv, wv, preferred_element_type=jnp.float32)

    @pl.when(k == pl.num_programs(2) - 1)
    def _():
        y = acc_ref[...] + b_ref[...]
        if act == 'gelu':
            y = _gelu_exact_f32(y)
        if has_res:
            y = y + res_ref[...].astype(jnp.float32)
        if has_aff:
            y = y * sc_ref[...] + sh_ref[...]
        o_ref[...] = y.astype(o_ref.dtype)


def pallas_linear(x, w, b, *, residual=None, scale=None, shift=None,
                  activation=None, out_dtype=jnp.float32):
    """x: [..., K], w: [K, N] (= torch weight.T, any dtype), b: [N] f32.

    Fused epilogue: act(x @ w + b) [+ residual] [* scale + shift]."""
    lead = x.shape[:-1]
    K = x.shape[-1]
    N = w.shape[-1]
    x2 = x.reshape(-1, K)
    M = x2.shape[0]

    # MXU-matched tiles (256-wide N tile for v6e/v7x, still a clean multiple of
    # the v5e 128^2 MXU).  Ragged M/N edges handled by cdiv grids + masked
    # edge-block writes; only the K (reduction) axis must tile exactly.
    TM = M if M <= 512 else 512
    TN = N if N <= 256 else 256
    if K <= 1024:
        TK, kpad = K, 0
    else:
        TK = next((t for t in (1024, 512, 256) if K % t == 0), 128)
        kpad = (-K) % TK
    if kpad:                              # rare; typical d_model/d_ff divide
        x2 = jnp.pad(x2, ((0, 0), (0, kpad)))
        w = jnp.pad(w, ((0, kpad), (0, 0)))
    Kp = K + kpad

    b2 = b.reshape(1, N).astype(jnp.float32)

    inputs = [x2, w, b2]
    in_specs = [pl.BlockSpec((TM, TK), lambda i, j, k: (i, k)),
                pl.BlockSpec((TK, TN), lambda i, j, k: (k, j)),
                pl.BlockSpec((1, TN), lambda i, j, k: (0, j))]
    has_res = residual is not None
    has_aff = scale is not None
    if has_res:
        inputs.append(residual.reshape(-1, N))
        in_specs.append(pl.BlockSpec((TM, TN), lambda i, j, k: (i, j)))
    if has_aff:
        inputs.append(scale.reshape(1, N).astype(jnp.float32))
        inputs.append(shift.reshape(1, N).astype(jnp.float32))
        in_specs.append(pl.BlockSpec((1, TN), lambda i, j, k: (0, j)))
        in_specs.append(pl.BlockSpec((1, TN), lambda i, j, k: (0, j)))

    out_itemsize = jnp.dtype(out_dtype).itemsize
    cost = pl.CostEstimate(
        flops=int(2 * M * N * Kp),
        transcendentals=int(M * N) if activation == 'gelu' else 0,
        bytes_accessed=int(x2.dtype.itemsize * M * Kp
                           + w.dtype.itemsize * Kp * N
                           + out_itemsize * M * N
                           + (residual.dtype.itemsize * M * N if has_res else 0)))

    out = pl.pallas_call(
        functools.partial(_linear_kernel, has_res=has_res, has_aff=has_aff,
                          act=activation),
        grid=(pl.cdiv(M, TM), pl.cdiv(N, TN), Kp // TK),
        in_specs=in_specs,
        out_specs=pl.BlockSpec((TM, TN), lambda i, j, k: (i, j)),
        out_shape=jax.ShapeDtypeStruct((M, N), out_dtype),
        scratch_shapes=[pltpu.VMEM((TM, TN), jnp.float32)],
        compiler_params=pltpu.CompilerParams(
            dimension_semantics=("parallel", "parallel", "arbitrary"),
            vmem_limit_bytes=VMEM_LIMIT),
        cost_estimate=cost,
    )(*inputs)
    return out.reshape(*lead, N)


# ---- patch embedding with fused positional encoding ------------------------

def _patch_embed_kernel(x_ref, w_ref, pb_ref, o_ref):
    xv = x_ref[...]
    wv = w_ref[...]
    if xv.dtype != wv.dtype:
        xv = xv.astype(wv.dtype)
    y = jnp.dot(xv, wv, preferred_element_type=jnp.float32)
    o_ref[...] = (y + pb_ref[...]).astype(o_ref.dtype)


def pallas_patch_embed(xpatch, w, posb, *, out_dtype=jnp.float32):
    """xpatch: [BC, pn, plen]; w: [plen, dm]; posb = W_pos + b_P: [pn, dm].

    Returns u = xpatch @ w + b_P + W_pos as [BC, pn, dm] (add fused)."""
    BC, pn, plen = xpatch.shape
    dm = w.shape[-1]
    M = BC * pn
    x2 = xpatch.reshape(M, plen)

    # Row blocks are whole patches so one small tiled positional table aligns
    # with every block (including the ragged last one).
    f = 8 // math.gcd(pn, 8)                      # keep TM a sublane multiple
    tb_target = max(1, min(64, BC // 2 if BC >= 2 else 1))
    TB = max(f, (tb_target // f) * f)
    TM = TB * pn
    if TM >= M:
        TM, TB = M, BC
    pb_tile = jnp.tile(posb.astype(jnp.float32), (TB, 1))        # [TM, dm]

    out = pl.pallas_call(
        _patch_embed_kernel,
        grid=(pl.cdiv(M, TM),),
        in_specs=[pl.BlockSpec((TM, plen), lambda i: (i, 0)),
                  pl.BlockSpec((plen, dm), lambda i: (0, 0)),
                  pl.BlockSpec((TM, dm), lambda i: (0, 0))],
        out_specs=pl.BlockSpec((TM, dm), lambda i: (i, 0)),
        out_shape=jax.ShapeDtypeStruct((M, dm), out_dtype),
        compiler_params=pltpu.CompilerParams(
            dimension_semantics=("parallel",),
            vmem_limit_bytes=VMEM_LIMIT),
    )(x2, w, pb_tile)
    return out.reshape(BC, pn, dm)


# ---- batched multi-head attention with residual scores ----------------------

def _attn_kernel(*refs, n_heads, d_model, scale, has_prev, approx_recip):
    if has_prev:
        qkv_ref, prev_ref, o_ref, s_ref = refs
    else:
        qkv_ref, o_ref, s_ref = refs
    dk = d_model // n_heads
    L = qkv_ref.shape[1]
    qkv = qkv_ref[...]                              # [Bb, L, 3*D]
    prev = prev_ref[...] if has_prev else None      # [Bb, L, H*L]
    outs, scrs = [], []
    for h in range(n_heads):
        q = qkv[:, :, h * dk:(h + 1) * dk]
        k = qkv[:, :, d_model + h * dk:d_model + (h + 1) * dk]
        v = qkv[:, :, 2 * d_model + h * dk:2 * d_model + (h + 1) * dk]
        s = jnp.einsum('bqd,bkd->bqk', q, k,
                       preferred_element_type=jnp.float32) * scale
        if has_prev:
            s = s + prev[:, :, h * L:(h + 1) * L].astype(jnp.float32)
        scrs.append(s)                               # residual-attention scores
        m = jnp.max(s, axis=-1, keepdims=True)
        p = jnp.exp(s - m)
        denom = jnp.sum(p, axis=-1, keepdims=True)
        attn = p * pl.reciprocal(denom, approx=approx_recip)
        outs.append(jnp.einsum('bqk,bkd->bqd', attn.astype(v.dtype), v,
                               preferred_element_type=jnp.float32))
    # single merged-head lane-dense stores (no per-head sub-128-lane strips)
    o_ref[...] = jnp.concatenate(outs, axis=-1).astype(o_ref.dtype)
    s_ref[...] = jnp.concatenate(scrs, axis=-1).astype(s_ref.dtype)


def pallas_attention(qkv, prev, n_heads, scale, *, out_dtype, scores_dtype,
                     approx_recip):
    """qkv: [B, L, 3*D] (fused q|k|v); prev: [B, L, H*L] or None.

    Returns (out [B, L, D] heads merged, scores [B, L, H*L] lane-dense)."""
    B, L, three_d = qkv.shape
    D = three_d // 3
    dk = D // n_heads
    # >= 2 grid steps whenever B >= 2 (keeps both v7x TensorCores busy).
    Bb = 8 if B >= 16 else (max(1, B // 2) if B >= 2 else 1)
    has_prev = prev is not None

    inputs = [qkv]
    in_specs = [pl.BlockSpec((Bb, L, three_d), lambda g: (g, 0, 0))]
    io_alias = {}
    if has_prev:
        inputs.append(prev)
        in_specs.append(pl.BlockSpec((Bb, L, n_heads * L), lambda g: (g, 0, 0)))
        io_alias = {1: 1}          # reuse prev's buffer for the new scores

    cost = pl.CostEstimate(
        flops=int(4 * B * n_heads * L * L * dk),
        transcendentals=int(B * n_heads * L * L),
        bytes_accessed=int(qkv.dtype.itemsize * B * L * three_d
                           + jnp.dtype(out_dtype).itemsize * B * L * D
                           + jnp.dtype(scores_dtype).itemsize
                             * (2 if has_prev else 1) * B * n_heads * L * L))

    out, scores = pl.pallas_call(
        functools.partial(_attn_kernel, n_heads=n_heads, d_model=D, scale=scale,
                          has_prev=has_prev, approx_recip=approx_recip),
        grid=(pl.cdiv(B, Bb),),
        in_specs=in_specs,
        out_specs=(pl.BlockSpec((Bb, L, D), lambda g: (g, 0, 0)),
                   pl.BlockSpec((Bb, L, n_heads * L), lambda g: (g, 0, 0))),
        out_shape=(jax.ShapeDtypeStruct((B, L, D), out_dtype),
                   jax.ShapeDtypeStruct((B, L, n_heads * L), scores_dtype)),
        compiler_params=pltpu.CompilerParams(
            dimension_semantics=("parallel",),
            vmem_limit_bytes=VMEM_LIMIT),
        cost_estimate=cost,
        input_output_aliases=io_alias,
    )(*inputs)
    return out, scores


# ---------------- encoder layer / full forward ----------------

def encoder_layer(src, prev, p, n_heads, scale_attn, act_dtype, approx_recip):
    """One TSTEncoderLayer (pre_norm=False, res_attention=True, eval mode)."""
    qkv = pallas_linear(src, p['Wqkv'], p['bqkv'], out_dtype=act_dtype)
    o, scores = pallas_attention(qkv, prev, n_heads, scale_attn,
                                 out_dtype=act_dtype, scores_dtype=act_dtype,
                                 approx_recip=approx_recip)

    # attn out-projection + residual + BatchNorm1d(eval) affine, fused.
    bn1_s = p['bn1_g'] * jax.lax.rsqrt(p['bn1_rv'] + 1e-5)
    bn1_b = p['bn1_b'] - p['bn1_rm'] * bn1_s
    src = pallas_linear(o, p['Wo'], p['bo'], residual=src,
                        scale=bn1_s, shift=bn1_b, out_dtype=act_dtype)

    # FFN: exact GELU fused into the W1 epilogue; W2 fuses residual + BN.
    h = pallas_linear(src, p['W1'], p['b1'], activation='gelu',
                      out_dtype=act_dtype)
    bn2_s = p['bn2_g'] * jax.lax.rsqrt(p['bn2_rv'] + 1e-5)
    bn2_b = p['bn2_b'] - p['bn2_rm'] * bn2_s
    src = pallas_linear(h, p['W2'], p['b2'], residual=src,
                        scale=bn2_s, shift=bn2_b, out_dtype=act_dtype)
    return src, scores


def patchtst_forward(z, params, cfg):
    # TODO(synk): graph=True path (HGAT / HypergraphConv), ci=False branch,
    # padding_patch='end', individual head and pretrain_head not implemented.
    bs, c_in, _ = z.shape
    d_model, n_heads = cfg['d_model'], cfg['n_heads']
    patch_len, stride, patch_num = cfg['patch_len'], cfg['stride'], cfg['patch_num']
    use_bf16 = cfg.get('use_bf16', False)
    act_dtype = jnp.bfloat16 if use_bf16 else jnp.float32
    eps = 1e-5

    # --- RevIN 'norm' (tiny, XLA) ---
    zp = z.transpose(0, 2, 1)                                   # [bs, seq, c_in]
    mean = jnp.mean(zp, axis=1, keepdims=True)
    stdev = jnp.sqrt(jnp.var(zp, axis=1, keepdims=True) + eps)
    zn = (zp - mean) / stdev * params['revin_w'] + params['revin_b']
    z = zn.transpose(0, 2, 1)                                   # [bs, c_in, seq]

    # --- patching (unfold).  The backbone's permute(0,1,3,2) and the encoder's
    #     permute(0,1,3,2) cancel, so keep [bs, c_in, patch_num, patch_len]. ---
    idx = jnp.arange(patch_num)[:, None] * stride + jnp.arange(patch_len)[None, :]
    xpatch = z[:, :, idx]                                       # [bs,c_in,pn,pl]

    # --- TSTiEncoder (ci=True): patch embed + pos-enc fused in one kernel ---
    posb = params['W_pos'] + params['b_P'][None, :]
    u = pallas_patch_embed(xpatch.reshape(bs * c_in, patch_num, patch_len),
                           params['W_P'], posb, out_dtype=act_dtype)

    scale_attn = float((d_model // n_heads) ** -0.5)
    out, scores = u, None            # scores=None -> layer 0 skips the zero prev
    for p in params['layers']:
        out, scores = encoder_layer(out, scores, p, n_heads, scale_attn,
                                    act_dtype, approx_recip=use_bf16)

    # --- Flatten head (individual=False).  W_head rows were permuted at init
    #     so the torch permute(0,1,3,2)+flatten is a plain contiguous reshape.
    flat = out.reshape(bs * c_in, patch_num * d_model)
    y = pallas_linear(flat, params['W_head'], params['b_head'],
                      out_dtype=jnp.float32).reshape(bs, c_in, -1)

    # --- RevIN 'denorm' ---
    yp = y.transpose(0, 2, 1)                                   # [bs, tw, c_in]
    yd = (yp - params['revin_b']) / (params['revin_w'] + eps * eps)
    yd = yd * stdev + mean
    return yd.transpose(0, 2, 1)                                # [bs, c_in, tw]


# ---------------- deterministic parameter init ----------------

def init_params(key, cfg):
    d_model, n_heads, d_ff = cfg['d_model'], cfg['n_heads'], cfg['d_ff']
    patch_len, patch_num = cfg['patch_len'], cfg['patch_num']
    c_in, target_window = cfg['c_in'], cfg['target_window']
    w_dtype = jnp.bfloat16 if cfg.get('use_bf16', False) else jnp.float32

    def lin(k, k_in, n_out):
        kw, kb = jax.random.split(k)
        w = jax.random.normal(kw, (k_in, n_out), jnp.float32) * 0.02
        b = jax.random.normal(kb, (n_out,), jnp.float32) * 0.02
        return w, b

    keys = jax.random.split(key, 4 + cfg['n_layers'])
    params = {}
    params['revin_w'] = jnp.ones((c_in,), jnp.float32)
    params['revin_b'] = jnp.zeros((c_in,), jnp.float32)

    w_p, b_p = lin(keys[0], patch_len, d_model)
    params['W_P'] = w_p.astype(w_dtype)
    params['b_P'] = b_p
    params['W_pos'] = jax.random.uniform(keys[1], (patch_num, d_model),
                                         jnp.float32, -0.02, 0.02)

    # Head weight: torch flattens z.permute(0,1,3,2) => rows in (d, p) order.
    # Permute rows once at init so the kernel consumes (p, d)-ordered rows and
    # the pre-head transpose disappears from the forward pass.
    w_h, b_h = lin(keys[2], d_model * patch_num, target_window)
    w_h = (w_h.reshape(d_model, patch_num, target_window)
              .transpose(1, 0, 2).reshape(patch_num * d_model, target_window))
    params['W_head'] = w_h.astype(w_dtype)
    params['b_head'] = b_h

    layers = []
    for i in range(cfg['n_layers']):
        lk = jax.random.split(keys[4 + i], 6)
        p = {}
        wq, bq = lin(lk[0], d_model, d_model)
        wk, bk = lin(lk[1], d_model, d_model)
        wv, bv = lin(lk[2], d_model, d_model)
        p['Wqkv'] = jnp.concatenate([wq, wk, wv], axis=1).astype(w_dtype)
        p['bqkv'] = jnp.concatenate([bq, bk, bv], axis=0)
        wo, bo = lin(lk[3], d_model, d_model)
        w1, b1 = lin(lk[4], d_model, d_ff)
        w2, b2 = lin(lk[5], d_ff, d_model)
        p['Wo'], p['bo'] = wo.astype(w_dtype), bo
        p['W1'], p['b1'] = w1.astype(w_dtype), b1
        p['W2'], p['b2'] = w2.astype(w_dtype), b2
        for nm in ('bn1', 'bn2'):
            p[nm + '_g'] = jnp.ones((d_model,), jnp.float32)
            p[nm + '_b'] = jnp.zeros((d_model,), jnp.float32)
            p[nm + '_rm'] = jnp.zeros((d_model,), jnp.float32)
            p[nm + '_rv'] = jnp.ones((d_model,), jnp.float32)
        layers.append(p)
    params['layers'] = layers
    return params


if __name__ == "__main__":
    cfg = dict(c_in=4, context_window=16, target_window=8,
               patch_len=4, stride=4,
               n_layers=2, d_model=32, n_heads=4, d_ff=64,
               use_bf16=True)   # bf16 matmul operands + bf16 activations,
                                # f32 accumulation (set False for f32 parity)
    cfg['patch_num'] = (cfg['context_window'] - cfg['patch_len']) // cfg['stride'] + 1

    key = jax.random.PRNGKey(0)
    kp, kz = jax.random.split(key)
    params = init_params(kp, cfg)
    z = jax.random.normal(kz, (2, cfg['c_in'], cfg['context_window']), jnp.float32)

    fwd = jax.jit(functools.partial(patchtst_forward, cfg=cfg))
    out = jax.block_until_ready(fwd(z, params))
    assert out.shape == (2, cfg['c_in'], cfg['target_window'])
    assert bool(jnp.all(jnp.isfinite(out)))
    print("KERNEL_OK")
</pallas_src>

<mosaic_0001>
module attributes {stable_mosaic.version = 11 : i64} {
  func.func @_patch_embed_kernel(%arg0: i32, %arg1: memref<16x4xf32, #tpu.memory_space<vmem>>, %arg2: memref<4x32xbf16, #tpu.memory_space<vmem>>, %arg3: memref<16x32xf32, #tpu.memory_space<vmem>>, %arg4: memref<16x32xbf16, #tpu.memory_space<vmem>>) attributes {dimension_semantics = [#tpu.dimension_semantics<parallel>], iteration_bounds = array<i64: 2>, scalar_prefetch = 0 : i64, scratch_operands = 0 : i64, tpu.core_type = #tpu.core_type<tc>, window_params = [{transform_indices = @transform_0, window_bounds = array<i64: 16, 4>}, {pipeline_mode = #tpu.pipeline_mode<synchronous>, transform_indices = @transform_1, window_bounds = array<i64: 4, 32>}, {pipeline_mode = #tpu.pipeline_mode<synchronous>, transform_indices = @transform_2, window_bounds = array<i64: 16, 32>}, {transform_indices = @transform_3, window_bounds = array<i64: 16, 32>}]} {
    %c0 = arith.constant 0 : index
    %c0_0 = arith.constant 0 : index
    %0 = vector.load %arg1[%c0, %c0_0] : memref<16x4xf32, #tpu.memory_space<vmem>>, vector<16x4xf32>
    %c0_1 = arith.constant 0 : index
    %c0_2 = arith.constant 0 : index
    %1 = vector.load %arg2[%c0_1, %c0_2] : memref<4x32xbf16, #tpu.memory_space<vmem>>, vector<4x32xbf16>
    %2 = arith.truncf %0 : vector<16x4xf32> to vector<16x4xbf16>
    %cst = arith.constant dense<0.000000e+00> : vector<16x32xf32>
    %3 = tpu.matmul %2, %1, %cst {dimension_numbers = #tpu.dot_dimension_numbers<[1], [0], [0], [1], [0, 0, 1, 1], [], []>} : vector<16x4xbf16>, vector<4x32xbf16>, vector<16x32xf32> -> vector<16x32xf32>
    %c0_3 = arith.constant 0 : index
    %c0_4 = arith.constant 0 : index
    %4 = vector.load %arg3[%c0_3, %c0_4] : memref<16x32xf32, #tpu.memory_space<vmem>>, vector<16x32xf32>
    %5 = arith.addf %3, %4 : vector<16x32xf32>
    %6 = arith.truncf %5 : vector<16x32xf32> to vector<16x32xbf16>
    %c0_5 = arith.constant 0 : index
    %c0_6 = arith.constant 0 : index
    %7 = vector.load %arg4[%c0_5, %c0_6] : memref<16x32xbf16, #tpu.memory_space<vmem>>, vector<16x32xbf16>
    tpu.vector_store %arg4[%c0_5, %c0_6], %6 {strides = array<i32>} : memref<16x32xbf16, #tpu.memory_space<vmem>>, vector<16x32xbf16>,
    return
  }
  func.func @transform_0(%arg0: i32) -> (i32, i32) {
    %c0_i32 = arith.constant 0 : i32
    %c0_i32_0 = arith.constant 0 : i32
    return %arg0, %c0_i32 : i32, i32
  }
  func.func @transform_1(%arg0: i32) -> (i32, i32) {
    %c0_i32 = arith.constant 0 : i32
    %c0_i32_0 = arith.constant 0 : i32
    %c0_i32_1 = arith.constant 0 : i32
    return %c0_i32, %c0_i32_0 : i32, i32
  }
  func.func @transform_2(%arg0: i32) -> (i32, i32) {
    %c0_i32 = arith.constant 0 : i32
    %c0_i32_0 = arith.constant 0 : i32
    %c0_i32_1 = arith.constant 0 : i32
    return %c0_i32, %c0_i32_0 : i32, i32
  }
  func.func @transform_3(%arg0: i32) -> (i32, i32) {
    %c0_i32 = arith.constant 0 : i32
    %c0_i32_0 = arith.constant 0 : i32
    return %arg0, %c0_i32 : i32, i32
  }
}

module attributes {stable_mosaic.version = 11 : i64} {
  func.func @_linear_kernel(%arg0: i32, %arg1: i32, %arg2: i32, %arg3: memref<32x32xbf16, #tpu.memory_space<vmem>>, %arg4: memref<32x96xbf16, #tpu.memory_space<vmem>>, %arg5: memref<1x96xf32, #tpu.memory_space<vmem>>, %arg6: memref<32x96xbf16, #tpu.memory_space<vmem>>, %arg7: memref<32x96xf32, #tpu.memory_space<vmem>>) attributes {dimension_semantics = [#tpu.dimension_semantics<parallel>, #tpu.dimension_semantics<parallel>, #tpu.dimension_semantics<arbitrary>], iteration_bounds = array<i64: 1, 1, 1>, scalar_prefetch = 0 : i64, scratch_operands = 1 : i64, tpu.core_type = #tpu.core_type<tc>, window_params = [{transform_indices = @transform_0, window_bounds = array<i64: 32, 32>}, {transform_indices = @transform_1, window_bounds = array<i64: 32, 96>}, {transform_indices = @transform_2, window_bounds = array<i64: 1, 96>}, {transform_indices = @transform_3, window_bounds = array<i64: 32, 96>}]} {
    %c0_i32 = arith.constant 0 : i32
    %0 = arith.cmpi eq, %arg2, %c0_i32 : i32
    %1 = arith.extui %0 : i1 to i32
    %c0_i32_0 = arith.constant 0 : i32
    %2 = arith.cmpi ne, %1, %c0_i32_0 : i32
    scf.if %2 {
      %cst_10 = arith.constant 0.000000e+00 : f32
      %12 = vector.broadcast %cst_10 : f32 to vector<32x96xf32>
      %c0_11 = arith.constant 0 : index
      %c0_12 = arith.constant 0 : index
      %13 = vector.load %arg7[%c0_11, %c0_12] : memref<32x96xf32, #tpu.memory_space<vmem>>, vector<32x96xf32>
      tpu.vector_store %arg7[%c0_11, %c0_12], %12 {strides = array<i32>} : memref<32x96xf32, #tpu.memory_space<vmem>>, vector<32x96xf32>,
    } else {
    }
    %c0 = arith.constant 0 : index
    %c0_1 = arith.constant 0 : index
    %3 = vector.load %arg3[%c0, %c0_1] : memref<32x32xbf16, #tpu.memory_space<vmem>>, vector<32x32xbf16>
    %c0_2 = arith.constant 0 : index
    %c0_3 = arith.constant 0 : index
    %4 = vector.load %arg4[%c0_2, %c0_3] : memref<32x96xbf16, #tpu.memory_space<vmem>>, vector<32x96xbf16>
    %c0_4 = arith.constant 0 : index
    %c0_5 = arith.constant 0 : index
    %5 = vector.load %arg7[%c0_4, %c0_5] : memref<32x96xf32, #tpu.memory_space<vmem>>, vector<32x96xf32>
    %cst = arith.constant dense<0.000000e+00> : vector<32x96xf32>
    %6 = tpu.matmul %3, %4, %cst {dimension_numbers = #tpu.dot_dimension_numbers<[1], [0], [0], [1], [0, 0, 1, 1], [], []>} : vector<32x32xbf16>, vector<32x96xbf16>, vector<32x96xf32> -> vector<32x96xf32>
    %7 = arith.addf %5, %6 : vector<32x96xf32>
    %c0_6 = arith.constant 0 : index
    %c0_7 = arith.constant 0 : index
    %8 = vector.load %arg7[%c0_6, %c0_7] : memref<32x96xf32, #tpu.memory_space<vmem>>, vector<32x96xf32>
    tpu.vector_store %arg7[%c0_6, %c0_7], %7 {strides = array<i32>} : memref<32x96xf32, #tpu.memory_space<vmem>>, vector<32x96xf32>,
    %c0_i32_8 = arith.constant 0 : i32
    %9 = arith.cmpi eq, %arg2, %c0_i32_8 : i32
    %10 = arith.extui %9 : i1 to i32
    %c0_i32_9 = arith.constant 0 : i32
    %11 = arith.cmpi ne, %10, %c0_i32_9 : i32
    scf.if %11 {
      %c0_10 = arith.constant 0 : index
      %c0_11 = arith.constant 0 : index
      %12 = vector.load %arg7[%c0_10, %c0_11] : memref<32x96xf32, #tpu.memory_space<vmem>>, vector<32x96xf32>
      %c0_12 = arith.constant 0 : index
      %c0_13 = arith.constant 0 : index
      %13 = vector.load %arg5[%c0_12, %c0_13] : memref<1x96xf32, #tpu.memory_space<vmem>>, vector<1x96xf32>
      %14 = vector.broadcast %13 : vector<1x96xf32> to vector<32x96xf32>
      %15 = arith.addf %12, %14 : vector<32x96xf32>
      %16 = arith.truncf %15 : vector<32x96xf32> to vector<32x96xbf16>
      %c0_14 = arith.constant 0 : index
      %c0_15 = arith.constant 0 : index
      %17 = vector.load %arg6[%c0_14, %c0_15] : memref<32x96xbf16, #tpu.memory_space<vmem>>, vector<32x96xbf16>
      tpu.vector_store %arg6[%c0_14, %c0_15], %16 {strides = array<i32>} : memref<32x96xbf16, #tpu.memory_space<vmem>>, vector<32x96xbf16>,
    } else {
    }
    return
  }
  func.func @transform_0(%arg0: i32, %arg1: i32, %arg2: i32) -> (i32, i32) {
    %c0_i32 = arith.constant 0 : i32
    return %arg0, %arg2 : i32, i32
  }
  func.func @transform_1(%arg0: i32, %arg1: i32, %arg2: i32) -> (i32, i32) {
    %c0_i32 = arith.constant 0 : i32
    return %arg2, %arg1 : i32, i32
  }
  func.func @transform_2(%arg0: i32, %arg1: i32, %arg2: i32) -> (i32, i32) {
    %c0_i32 = arith.constant 0 : i32
    %c0_i32_0 = arith.constant 0 : i32
    return %c0_i32, %arg1 : i32, i32
  }
  func.func @transform_3(%arg0: i32, %arg1: i32, %arg2: i32) -> (i32, i32) {
    %c0_i32 = arith.constant 0 : i32
    return %arg0, %arg1 : i32, i32
  }
}

module attributes {stable_mosaic.version = 11 : i64} {
  func.func @_attn_kernel(%arg0: i32, %arg1: memref<4x4x96xbf16, #tpu.memory_space<vmem>>, %arg2: memref<4x4x32xbf16, #tpu.memory_space<vmem>>, %arg3: memref<4x4x16xbf16, #tpu.memory_space<vmem>>) attributes {dimension_semantics = [#tpu.dimension_semantics<parallel>], iteration_bounds = array<i64: 2>, scalar_prefetch = 0 : i64, scratch_operands = 0 : i64, tpu.core_type = #tpu.core_type<tc>, window_params = [{transform_indices = @transform_0, window_bounds = array<i64: 4, 4, 96>}, {transform_indices = @transform_1, window_bounds = array<i64: 4, 4, 32>}, {transform_indices = @transform_2, window_bounds = array<i64: 4, 4, 16>}]} {
    %c0 = arith.constant 0 : index
    %c0_0 = arith.constant 0 : index
    %c0_1 = arith.constant 0 : index
    %0 = vector.load %arg1[%c0, %c0_0, %c0_1] : memref<4x4x96xbf16, #tpu.memory_space<vmem>>, vector<4x4x96xbf16>
    %1 = vector.extract_strided_slice %0 {offsets = [0, 0, 0], sizes = [4, 4, 8], strides = [1, 1, 1]} : vector<4x4x96xbf16> to vector<4x4x8xbf16>
    %2 = vector.extract_strided_slice %0 {offsets = [0, 0, 32], sizes = [4, 4, 8], strides = [1, 1, 1]} : vector<4x4x96xbf16> to vector<4x4x8xbf16>
    %3 = vector.extract_strided_slice %0 {offsets = [0, 0, 64], sizes = [4, 4, 8], strides = [1, 1, 1]} : vector<4x4x96xbf16> to vector<4x4x8xbf16>
    "tpu.trace_start"() <{level = 10 : i32, message = "bqd,bkd->bqk"}> : () -> ()
    %cst = arith.constant dense<0.000000e+00> : vector<4x4x4xf32>
    %4 = tpu.matmul %1, %2, %cst {dimension_numbers = #tpu.dot_dimension_numbers<[2], [2], [1], [1], [0, 0, 0, 1, 1, 1], [0], [0]>} : vector<4x4x8xbf16>, vector<4x4x8xbf16>, vector<4x4x4xf32> -> vector<4x4x4xf32>
    "tpu.trace_stop"() : () -> ()
    %cst_2 = arith.constant 0.353553385 : f32
    %5 = vector.broadcast %cst_2 : f32 to vector<4x4x4xf32>
    %6 = arith.mulf %4, %5 : vector<4x4x4xf32>
    %cst_3 = arith.constant dense<0xFF800000> : vector<4x4xf32>
    %7 = vector.multi_reduction <maximumf>, %6, %cst_3 [2] : vector<4x4x4xf32> to vector<4x4xf32>
    %8 = vector.shape_cast %7 : vector<4x4xf32> to vector<4x4x1xf32>
    %9 = vector.broadcast %8 : vector<4x4x1xf32> to vector<4x4x4xf32>
    %10 = arith.subf %6, %9 : vector<4x4x4xf32>
    %11 = math.exp %10 : vector<4x4x4xf32>
    %cst_4 = arith.constant dense<0.000000e+00> : vector<4x4xf32>
    %12 = vector.multi_reduction <add>, %11, %cst_4 [2] : vector<4x4x4xf32> to vector<4x4xf32>
    %13 = vector.shape_cast %12 : vector<4x4xf32> to vector<4x4x1xf32>
    %14 = tpu.reciprocal %13 {approx = true} : vector<4x4x1xf32> -> vector<4x4x1xf32>
    %15 = vector.broadcast %14 : vector<4x4x1xf32> to vector<4x4x4xf32>
    %16 = arith.mulf %11, %15 : vector<4x4x4xf32>
    %17 = arith.truncf %16 : vector<4x4x4xf32> to vector<4x4x4xbf16>
    "tpu.trace_start"() <{level = 10 : i32, message = "bqk,bkd->bqd"}> : () -> ()
    %cst_5 = arith.constant dense<0.000000e+00> : vector<4x4x8xf32>
    %18 = tpu.matmul %17, %3, %cst_5 {dimension_numbers = #tpu.dot_dimension_numbers<[2], [1], [1], [2], [0, 0, 0, 1, 1, 2], [0], [0]>} : vector<4x4x4xbf16>, vector<4x4x8xbf16>, vector<4x4x8xf32> -> vector<4x4x8xf32>
    "tpu.trace_stop"() : () -> ()
    %19 = vector.extract_strided_slice %0 {offsets = [0, 0, 8], sizes = [4, 4, 8], strides = [1, 1, 1]} : vector<4x4x96xbf16> to vector<4x4x8xbf16>
    %20 = vector.extract_strided_slice %0 {offsets = [0, 0, 40], sizes = [4, 4, 8], strides = [1, 1, 1]} : vector<4x4x96xbf16> to vector<4x4x8xbf16>
    %21 = vector.extract_strided_slice %0 {offsets = [0, 0, 72], sizes = [4, 4, 8], strides = [1, 1, 1]} : vector<4x4x96xbf16> to vector<4x4x8xbf16>
    "tpu.trace_start"() <{level = 10 : i32, message = "bqd,bkd->bqk"}> : () -> ()
    %cst_6 = arith.constant dense<0.000000e+00> : vector<4x4x4xf32>
    %22 = tpu.matmul %19, %20, %cst_6 {dimension_numbers = #tpu.dot_dimension_numbers<[2], [2], [1], [1], [0, 0, 0, 1, 1, 1], [0], [0]>} : vector<4x4x8xbf16>, vector<4x4x8xbf16>, vector<4x4x4xf32> -> vector<4x4x4xf32>
    "tpu.trace_stop"() : () -> ()
    %cst_7 = arith.constant 0.353553385 : f32
    %23 = vector.broadcast %cst_7 : f32 to vector<4x4x4xf32>
    %24 = arith.mulf %22, %23 : vector<4x4x4xf32>
    %cst_8 = arith.constant dense<0xFF800000> : vector<4x4xf32>
    %25 = vector.multi_reduction <maximumf>, %24, %cst_8 [2] : vector<4x4x4xf32> to vector<4x4xf32>
    %26 = vector.shape_cast %25 : vector<4x4xf32> to vector<4x4x1xf32>
    %27 = vector.broadcast %26 : vector<4x4x1xf32> to vector<4x4x4xf32>
    %28 = arith.subf %24, %27 : vector<4x4x4xf32>
    %29 = math.exp %28 : vector<4x4x4xf32>
    %cst_9 = arith.constant dense<0.000000e+00> : vector<4x4xf32>
    %30 = vector.multi_reduction <add>, %29, %cst_9 [2] : vector<4x4x4xf32> to vector<4x4xf32>
    %31 = vector.shape_cast %30 : vector<4x4xf32> to vector<4x4x1xf32>
    %32 = tpu.reciprocal %31 {approx = true} : vector<4x4x1xf32> -> vector<4x4x1xf32>
    %33 = vector.broadcast %32 : vector<4x4x1xf32> to vector<4x4x4xf32>
    %34 = arith.mulf %29, %33 : vector<4x4x4xf32>
    %35 = arith.truncf %34 : vector<4x4x4xf32> to vector<4x4x4xbf16>
    "tpu.trace_start"() <{level = 10 : i32, message = "bqk,bkd->bqd"}> : () -> ()
    %cst_10 = arith.constant dense<0.000000e+00> : vector<4x4x8xf32>
    %36 = tpu.matmul %35, %21, %cst_10 {dimension_numbers = #tpu.dot_dimension_numbers<[2], [1], [1], [2], [0, 0, 0, 1, 1, 2], [0], [0]>} : vector<4x4x4xbf16>, vector<4x4x8xbf16>, vector<4x4x8xf32> -> vector<4x4x8xf32>
    "tpu.trace_stop"() : () -> ()
    %37 = vector.extract_strided_slice %0 {offsets = [0, 0, 16], sizes = [4, 4, 8], strides = [1, 1, 1]} : vector<4x4x96xbf16> to vector<4x4x8xbf16>
    %38 = vector.extract_strided_slice %0 {offsets = [0, 0, 48], sizes = [4, 4, 8], strides = [1, 1, 1]} : vector<4x4x96xbf16> to vector<4x4x8xbf16>
    %39 = vector.extract_strided_slice %0 {offsets = [0, 0, 80], sizes = [4, 4, 8], strides = [1, 1, 1]} : vector<4x4x96xbf16> to vector<4x4x8xbf16>
    "tpu.trace_start"() <{level = 10 : i32, message = "bqd,bkd->bqk"}> : () -> ()
    %cst_11 = arith.constant dense<0.000000e+00> : vector<4x4x4xf32>
    %40 = tpu.matmul %37, %38, %cst_11 {dimension_numbers = #tpu.dot_dimension_numbers<[2], [2], [1], [1], [0, 0, 0, 1, 1, 1], [0], [0]>} : vector<4x4x8xbf16>, vector<4x4x8xbf16>, vector<4x4x4xf32> -> vector<4x4x4xf32>
    "tpu.trace_stop"() : () -> ()
    %cst_12 = arith.constant 0.353553385 : f32
    %41 = vector.broadcast %cst_12 : f32 to vector<4x4x4xf32>
    %42 = arith.mulf %40, %41 : vector<4x4x4xf32>
    %cst_13 = arith.constant dense<0xFF800000> : vector<4x4xf32>
    %43 = vector.multi_reduction <maximumf>, %42, %cst_13 [2] : vector<4x4x4xf32> to vector<4x4xf32>
    %44 = vector.shape_cast %43 : vector<4x4xf32> to vector<4x4x1xf32>
    %45 = vector.broadcast %44 : vector<4x4x1xf32> to vector<4x4x4xf32>
    %46 = arith.subf %42, %45 : vector<4x4x4xf32>
    %47 = math.exp %46 : vector<4x4x4xf32>
    %cst_14 = arith.constant dense<0.000000e+00> : vector<4x4xf32>
    %48 = vector.multi_reduction <add>, %47, %cst_14 [2] : vector<4x4x4xf32> to vector<4x4xf32>
    %49 = vector.shape_cast %48 : vector<4x4xf32> to vector<4x4x1xf32>
    %50 = tpu.reciprocal %49 {approx = true} : vector<4x4x1xf32> -> vector<4x4x1xf32>
    %51 = vector.broadcast %50 : vector<4x4x1xf32> to vector<4x4x4xf32>
    %52 = arith.mulf %47, %51 : vector<4x4x4xf32>
    %53 = arith.truncf %52 : vector<4x4x4xf32> to vector<4x4x4xbf16>
    "tpu.trace_start"() <{level = 10 : i32, message = "bqk,bkd->bqd"}> : () -> ()
    %cst_15 = arith.constant dense<0.000000e+00> : vector<4x4x8xf32>
    %54 = tpu.matmul %53, %39, %cst_15 {dimension_numbers = #tpu.dot_dimension_numbers<[2], [1], [1], [2], [0, 0, 0, 1, 1, 2], [0], [0]>} : vector<4x4x4xbf16>, vector<4x4x8xbf16>, vector<4x4x8xf32> -> vector<4x4x8xf32>
    "tpu.trace_stop"() : () -> ()
    %55 = vector.extract_strided_slice %0 {offsets = [0, 0, 24], sizes = [4, 4, 8], strides = [1, 1, 1]} : vector<4x4x96xbf16> to vector<4x4x8xbf16>
    %56 = vector.extract_strided_slice %0 {offsets = [0, 0, 56], sizes = [4, 4, 8], strides = [1, 1, 1]} : vector<4x4x96xbf16> to vector<4x4x8xbf16>
    %57 = vector.extract_strided_slice %0 {offsets = [0, 0, 88], sizes = [4, 4, 8], strides = [1, 1, 1]} : vector<4x4x96xbf16> to vector<4x4x8xbf16>
    "tpu.trace_start"() <{level = 10 : i32, message = "bqd,bkd->bqk"}> : () -> ()
    %cst_16 = arith.constant dense<0.000000e+00> : vector<4x4x4xf32>
    %58 = tpu.matmul %55, %56, %cst_16 {dimension_numbers = #tpu.dot_dimension_numbers<[2], [2], [1], [1], [0, 0, 0, 1, 1, 1], [0], [0]>} : vector<4x4x8xbf16>, vector<4x4x8xbf16>, vector<4x4x4xf32> -> vector<4x4x4xf32>
    "tpu.trace_stop"() : () -> ()
    %cst_17 = arith.constant 0.353553385 : f32
    %59 = vector.broadcast %cst_17 : f32 to vector<4x4x4xf32>
    %60 = arith.mulf %58, %59 : vector<4x4x4xf32>
    %cst_18 = arith.constant dense<0xFF800000> : vector<4x4xf32>
    %61 = vector.multi_reduction <maximumf>, %60, %cst_18 [2] : vector<4x4x4xf32> to vector<4x4xf32>
    %62 = vector.shape_cast %61 : vector<4x4xf32> to vector<4x4x1xf32>
    %63 = vector.broadcast %62 : vector<4x4x1xf32> to vector<4x4x4xf32>
    %64 = arith.subf %60, %63 : vector<4x4x4xf32>
    %65 = math.exp %64 : vector<4x4x4xf32>
    %cst_19 = arith.constant dense<0.000000e+00> : vector<4x4xf32>
    %66 = vector.multi_reduction <add>, %65, %cst_19 [2] : vector<4x4x4xf32> to vector<4x4xf32>
    %67 = vector.shape_cast %66 : vector<4x4xf32> to vector<4x4x1xf32>
    %68 = tpu.reciprocal %67 {approx = true} : vector<4x4x1xf32> -> vector<4x4x1xf32>
    %69 = vector.broadcast %68 : vector<4x4x1xf32> to vector<4x4x4xf32>
    %70 = arith.mulf %65, %69 : vector<4x4x4xf32>
    %71 = arith.truncf %70 : vector<4x4x4xf32> to vector<4x4x4xbf16>
    "tpu.trace_start"() <{level = 10 : i32, message = "bqk,bkd->bqd"}> : () -> ()
    %cst_20 = arith.constant dense<0.000000e+00> : vector<4x4x8xf32>
    %72 = tpu.matmul %71, %57, %cst_20 {dimension_numbers = #tpu.dot_dimension_numbers<[2], [1], [1], [2], [0, 0, 0, 1, 1, 2], [0], [0]>} : vector<4x4x4xbf16>, vector<4x4x8xbf16>, vector<4x4x8xf32> -> vector<4x4x8xf32>
    "tpu.trace_stop"() : () -> ()
    %73 = tpu.concatenate %18, %36, %54, %72 in 2 : vector<4x4x8xf32>, vector<4x4x8xf32>, vector<4x4x8xf32>, vector<4x4x8xf32> -> vector<4x4x32xf32>
    %74 = arith.truncf %73 : vector<4x4x32xf32> to vector<4x4x32xbf16>
    %c0_21 = arith.constant 0 : index
    %c0_22 = arith.constant 0 : index
    %c0_23 = arith.constant 0 : index
    %75 = vector.load %arg2[%c0_21, %c0_22, %c0_23] : memref<4x4x32xbf16, #tpu.memory_space<vmem>>, vector<4x4x32xbf16>
    tpu.vector_store %arg2[%c0_21, %c0_22, %c0_23], %74 {strides = array<i32>} : memref<4x4x32xbf16, #tpu.memory_space<vmem>>, vector<4x4x32xbf16>,
    %76 = tpu.concatenate %6, %24, %42, %60 in 2 : vector<4x4x4xf32>, vector<4x4x4xf32>, vector<4x4x4xf32>, vector<4x4x4xf32> -> vector<4x4x16xf32>
    %77 = arith.truncf %76 : vector<4x4x16xf32> to vector<4x4x16xbf16>
    %c0_24 = arith.constant 0 : index
    %c0_25 = arith.constant 0 : index
    %c0_26 = arith.constant 0 : index
    %78 = vector.load %arg3[%c0_24, %c0_25, %c0_26] : memref<4x4x16xbf16, #tpu.memory_space<vmem>>, vector<4x4x16xbf16>
    tpu.vector_store %arg3[%c0_24, %c0_25, %c0_26], %77 {strides = array<i32>} : memref<4x4x16xbf16, #tpu.memory_space<vmem>>, vector<4x4x16xbf16>,
    return
  }
  func.func @transform_0(%arg0: i32) -> (i32, i32, i32) {
    %c0_i32 = arith.constant 0 : i32
    %c0_i32_0 = arith.constant 0 : i32
    %c0_i32_1 = arith.constant 0 : i32
    return %arg0, %c0_i32, %c0_i32_0 : i32, i32, i32
  }
  func.func @transform_1(%arg0: i32) -> (i32, i32, i32) {
    %c0_i32 = arith.constant 0 : i32
    %c0_i32_0 = arith.constant 0 : i32
    %c0_i32_1 = arith.constant 0 : i32
    return %arg0, %c0_i32, %c0_i32_0 : i32, i32, i32
  }
  func.func @transform_2(%arg0: i32) -> (i32, i32, i32) {
    %c0_i32 = arith.constant 0 : i32
    %c0_i32_0 = arith.constant 0 : i32
    %c0_i32_1 = arith.constant 0 : i32
    return %arg0, %c0_i32, %c0_i32_0 : i32, i32, i32
  }
}

module attributes {stable_mosaic.version = 11 : i64} {
  func.func @_linear_kernel(%arg0: i32, %arg1: i32, %arg2: i32, %arg3: memref<32x32xbf16, #tpu.memory_space<vmem>>, %arg4: memref<32x32xbf16, #tpu.memory_space<vmem>>, %arg5: memref<1x32xf32, #tpu.memory_space<vmem>>, %arg6: memref<32x32xbf16, #tpu.memory_space<vmem>>, %arg7: memref<1x32xf32, #tpu.memory_space<vmem>>, %arg8: memref<1x32xf32, #tpu.memory_space<vmem>>, %arg9: memref<32x32xbf16, #tpu.memory_space<vmem>>, %arg10: memref<32x32xf32, #tpu.memory_space<vmem>>) attributes {dimension_semantics = [#tpu.dimension_semantics<parallel>, #tpu.dimension_semantics<parallel>, #tpu.dimension_semantics<arbitrary>], iteration_bounds = array<i64: 1, 1, 1>, scalar_prefetch = 0 : i64, scratch_operands = 1 : i64, tpu.core_type = #tpu.core_type<tc>, window_params = [{transform_indices = @transform_0, window_bounds = array<i64: 32, 32>}, {transform_indices = @transform_1, window_bounds = array<i64: 32, 32>}, {transform_indices = @transform_2, window_bounds = array<i64: 1, 32>}, {transform_indices = @transform_3, window_bounds = array<i64: 32, 32>}, {transform_indices = @transform_4, window_bounds = array<i64: 1, 32>}, {transform_indices = @transform_5, window_bounds = array<i64: 1, 32>}, {transform_indices = @transform_6, window_bounds = array<i64: 32, 32>}]} {
    %c0_i32 = arith.constant 0 : i32
    %0 = arith.cmpi eq, %arg2, %c0_i32 : i32
    %1 = arith.extui %0 : i1 to i32
    %c0_i32_0 = arith.constant 0 : i32
    %2 = arith.cmpi ne, %1, %c0_i32_0 : i32
    scf.if %2 {
      %cst_10 = arith.constant 0.000000e+00 : f32
      %12 = vector.broadcast %cst_10 : f32 to vector<32x32xf32>
      %c0_11 = arith.constant 0 : index
      %c0_12 = arith.constant 0 : index
      %13 = vector.load %arg10[%c0_11, %c0_12] : memref<32x32xf32, #tpu.memory_space<vmem>>, vector<32x32xf32>
      tpu.vector_store %arg10[%c0_11, %c0_12], %12 {strides = array<i32>} : memref<32x32xf32, #tpu.memory_space<vmem>>, vector<32x32xf32>,
    } else {
    }
    %c0 = arith.constant 0 : index
    %c0_1 = arith.constant 0 : index
    %3 = vector.load %arg3[%c0, %c0_1] : memref<32x32xbf16, #tpu.memory_space<vmem>>, vector<32x32xbf16>
    %c0_2 = arith.constant 0 : index
    %c0_3 = arith.constant 0 : index
    %4 = vector.load %arg4[%c0_2, %c0_3] : memref<32x32xbf16, #tpu.memory_space<vmem>>, vector<32x32xbf16>
    %c0_4 = arith.constant 0 : index
    %c0_5 = arith.constant 0 : index
    %5 = vector.load %arg10[%c0_4, %c0_5] : memref<32x32xf32, #tpu.memory_space<vmem>>, vector<32x32xf32>
    %cst = arith.constant dense<0.000000e+00> : vector<32x32xf32>
    %6 = tpu.matmul %3, %4, %cst {dimension_numbers = #tpu.dot_dimension_numbers<[1], [0], [0], [1], [0, 0, 1, 1], [], []>} : vector<32x32xbf16>, vector<32x32xbf16>, vector<32x32xf32> -> vector<32x32xf32>
    %7 = arith.addf %5, %6 : vector<32x32xf32>
    %c0_6 = arith.constant 0 : index
    %c0_7 = arith.constant 0 : index
    %8 = vector.load %arg10[%c0_6, %c0_7] : memref<32x32xf32, #tpu.memory_space<vmem>>, vector<32x32xf32>
    tpu.vector_store %arg10[%c0_6, %c0_7], %7 {strides = array<i32>} : memref<32x32xf32, #tpu.memory_space<vmem>>, vector<32x32xf32>,
    %c0_i32_8 = arith.constant 0 : i32
    %9 = arith.cmpi eq, %arg2, %c0_i32_8 : i32
    %10 = arith.extui %9 : i1 to i32
    %c0_i32_9 = arith.constant 0 : i32
    %11 = arith.cmpi ne, %10, %c0_i32_9 : i32
    scf.if %11 {
      %c0_10 = arith.constant 0 : index
      %c0_11 = arith.constant 0 : index
      %12 = vector.load %arg10[%c0_10, %c0_11] : memref<32x32xf32, #tpu.memory_space<vmem>>, vector<32x32xf32>
      %c0_12 = arith.constant 0 : index
      %c0_13 = arith.constant 0 : index
      %13 = vector.load %arg5[%c0_12, %c0_13] : memref<1x32xf32, #tpu.memory_space<vmem>>, vector<1x32xf32>
      %14 = vector.broadcast %13 : vector<1x32xf32> to vector<32x32xf32>
      %15 = arith.addf %12, %14 : vector<32x32xf32>
      %c0_14 = arith.constant 0 : index
      %c0_15 = arith.constant 0 : index
      %16 = vector.load %arg6[%c0_14, %c0_15] : memref<32x32xbf16, #tpu.memory_space<vmem>>, vector<32x32xbf16>
      %17 = arith.extf %16 : vector<32x32xbf16> to vector<32x32xf32>
      %18 = arith.addf %15, %17 : vector<32x32xf32>
      %c0_16 = arith.constant 0 : index
      %c0_17 = arith.constant 0 : index
      %19 = vector.load %arg7[%c0_16, %c0_17] : memref<1x32xf32, #tpu.memory_space<vmem>>, vector<1x32xf32>
      %20 = vector.broadcast %19 : vector<1x32xf32> to vector<32x32xf32>
      %21 = arith.mulf %18, %20 : vector<32x32xf32>
      %c0_18 = arith.constant 0 : index
      %c0_19 = arith.constant 0 : index
      %22 = vector.load %arg8[%c0_18, %c0_19] : memref<1x32xf32, #tpu.memory_space<vmem>>, vector<1x32xf32>
      %23 = vector.broadcast %22 : vector<1x32xf32> to vector<32x32xf32>
      %24 = arith.addf %21, %23 : vector<32x32xf32>
      %25 = arith.truncf %24 : vector<32x32xf32> to vector<32x32xbf16>
      %c0_20 = arith.constant 0 : index
      %c0_21 = arith.constant 0 : index
      %26 = vector.load %arg9[%c0_20, %c0_21] : memref<32x32xbf16, #tpu.memory_space<vmem>>, vector<32x32xbf16>
      tpu.vector_store %arg9[%c0_20, %c0_21], %25 {strides = array<i32>} : memref<32x32xbf16, #tpu.memory_space<vmem>>, vector<32x32xbf16>,
    } else {
    }
    return
  }
  func.func @transform_0(%arg0: i32, %arg1: i32, %arg2: i32) -> (i32, i32) {
    %c0_i32 = arith.constant 0 : i32
    return %arg0, %arg2 : i32, i32
  }
  func.func @transform_1(%arg0: i32, %arg1: i32, %arg2: i32) -> (i32, i32) {
    %c0_i32 = arith.constant 0 : i32
    return %arg2, %arg1 : i32, i32
  }
  func.func @transform_2(%arg0: i32, %arg1: i32, %arg2: i32) -> (i32, i32) {
    %c0_i32 = arith.constant 0 : i32
    %c0_i32_0 = arith.constant 0 : i32
    return %c0_i32, %arg1 : i32, i32
  }
  func.func @transform_3(%arg0: i32, %arg1: i32, %arg2: i32) -> (i32, i32) {
    %c0_i32 = arith.constant 0 : i32
    return %arg0, %arg1 : i32, i32
  }
  func.func @transform_4(%arg0: i32, %arg1: i32, %arg2: i32) -> (i32, i32) {
    %c0_i32 = arith.constant 0 : i32
    %c0_i32_0 = arith.constant 0 : i32
    return %c0_i32, %arg1 : i32, i32
  }
  func.func @transform_5(%arg0: i32, %arg1: i32, %arg2: i32) -> (i32, i32) {
    %c0_i32 = arith.constant 0 : i32
    %c0_i32_0 = arith.constant 0 : i32
    return %c0_i32, %arg1 : i32, i32
  }
  func.func @transform_6(%arg0: i32, %arg1: i32, %arg2: i32) -> (i32, i32) {
    %c0_i32 = arith.constant 0 : i32
    return %arg0, %arg1 : i32, i32
  }
}

module attributes {stable_mosaic.version = 11 : i64} {
  func.func @_linear_kernel(%arg0: i32, %arg1: i32, %arg2: i32, %arg3: memref<32x32xbf16, #tpu.memory_space<vmem>>, %arg4: memref<32x64xbf16, #tpu.memory_space<vmem>>, %arg5: memref<1x64xf32, #tpu.memory_space<vmem>>, %arg6: memref<32x64xbf16, #tpu.memory_space<vmem>>, %arg7: memref<32x64xf32, #tpu.memory_space<vmem>>) attributes {dimension_semantics = [#tpu.dimension_semantics<parallel>, #tpu.dimension_semantics<parallel>, #tpu.dimension_semantics<arbitrary>], iteration_bounds = array<i64: 1, 1, 1>, scalar_prefetch = 0 : i64, scratch_operands = 1 : i64, tpu.core_type = #tpu.core_type<tc>, window_params = [{transform_indices = @transform_0, window_bounds = array<i64: 32, 32>}, {transform_indices = @transform_1, window_bounds = array<i64: 32, 64>}, {transform_indices = @transform_2, window_bounds = array<i64: 1, 64>}, {transform_indices = @transform_3, window_bounds = array<i64: 32, 64>}]} {
    %c0_i32 = arith.constant 0 : i32
    %0 = arith.cmpi eq, %arg2, %c0_i32 : i32
    %1 = arith.extui %0 : i1 to i32
    %c0_i32_0 = arith.constant 0 : i32
    %2 = arith.cmpi ne, %1, %c0_i32_0 : i32
    scf.if %2 {
      %cst_10 = arith.constant 0.000000e+00 : f32
      %12 = vector.broadcast %cst_10 : f32 to vector<32x64xf32>
      %c0_11 = arith.constant 0 : index
      %c0_12 = arith.constant 0 : index
      %13 = vector.load %arg7[%c0_11, %c0_12] : memref<32x64xf32, #tpu.memory_space<vmem>>, vector<32x64xf32>
      tpu.vector_store %arg7[%c0_11, %c0_12], %12 {strides = array<i32>} : memref<32x64xf32, #tpu.memory_space<vmem>>, vector<32x64xf32>,
    } else {
    }
    %c0 = arith.constant 0 : index
    %c0_1 = arith.constant 0 : index
    %3 = vector.load %arg3[%c0, %c0_1] : memref<32x32xbf16, #tpu.memory_space<vmem>>, vector<32x32xbf16>
    %c0_2 = arith.constant 0 : index
    %c0_3 = arith.constant 0 : index
    %4 = vector.load %arg4[%c0_2, %c0_3] : memref<32x64xbf16, #tpu.memory_space<vmem>>, vector<32x64xbf16>
    %c0_4 = arith.constant 0 : index
    %c0_5 = arith.constant 0 : index
    %5 = vector.load %arg7[%c0_4, %c0_5] : memref<32x64xf32, #tpu.memory_space<vmem>>, vector<32x64xf32>
    %cst = arith.constant dense<0.000000e+00> : vector<32x64xf32>
    %6 = tpu.matmul %3, %4, %cst {dimension_numbers = #tpu.dot_dimension_numbers<[1], [0], [0], [1], [0, 0, 1, 1], [], []>} : vector<32x32xbf16>, vector<32x64xbf16>, vector<32x64xf32> -> vector<32x64xf32>
    %7 = arith.addf %5, %6 : vector<32x64xf32>
    %c0_6 = arith.constant 0 : index
    %c0_7 = arith.constant 0 : index
    %8 = vector.load %arg7[%c0_6, %c0_7] : memref<32x64xf32, #tpu.memory_space<vmem>>, vector<32x64xf32>
    tpu.vector_store %arg7[%c0_6, %c0_7], %7 {strides = array<i32>} : memref<32x64xf32, #tpu.memory_space<vmem>>, vector<32x64xf32>,
    %c0_i32_8 = arith.constant 0 : i32
    %9 = arith.cmpi eq, %arg2, %c0_i32_8 : i32
    %10 = arith.extui %9 : i1 to i32
    %c0_i32_9 = arith.constant 0 : i32
    %11 = arith.cmpi ne, %10, %c0_i32_9 : i32
    scf.if %11 {
      %c0_10 = arith.constant 0 : index
      %c0_11 = arith.constant 0 : index
      %12 = vector.load %arg7[%c0_10, %c0_11] : memref<32x64xf32, #tpu.memory_space<vmem>>, vector<32x64xf32>
      %c0_12 = arith.constant 0 : index
      %c0_13 = arith.constant 0 : index
      %13 = vector.load %arg5[%c0_12, %c0_13] : memref<1x64xf32, #tpu.memory_space<vmem>>, vector<1x64xf32>
      %14 = vector.broadcast %13 : vector<1x64xf32> to vector<32x64xf32>
      %15 = arith.addf %12, %14 : vector<32x64xf32>
      %cst_14 = arith.constant 0.707106769 : f32
      %16 = vector.broadcast %cst_14 : f32 to vector<32x64xf32>
      %17 = arith.mulf %15, %16 : vector<32x64xf32>
      %18 = math.absf %17 : vector<32x64xf32>
      %cst_15 = arith.constant 0.327591091 : f32
      %19 = vector.broadcast %cst_15 : f32 to vector<32x64xf32>
      %20 = arith.mulf %19, %18 : vector<32x64xf32>
      %cst_16 = arith.constant 1.000000e+00 : f32
      %21 = vector.broadcast %cst_16 : f32 to vector<32x64xf32>
      %22 = arith.addf %21, %20 : vector<32x64xf32>
      %23 = tpu.reciprocal %22 : vector<32x64xf32> -> vector<32x64xf32>
      %cst_17 = arith.constant 1.06140542 : f32
      %24 = vector.broadcast %cst_17 : f32 to vector<32x64xf32>
      %25 = arith.mulf %24, %23 : vector<32x64xf32>
      %cst_18 = arith.constant 1.45315206 : f32
      %26 = vector.broadcast %cst_18 : f32 to vector<32x64xf32>
      %27 = arith.subf %25, %26 : vector<32x64xf32>
      %28 = arith.mulf %27, %23 : vector<32x64xf32>
      %cst_19 = arith.constant 1.42141378 : f32
      %29 = vector.broadcast %cst_19 : f32 to vector<32x64xf32>
      %30 = arith.addf %28, %29 : vector<32x64xf32>
      %31 = arith.mulf %30, %23 : vector<32x64xf32>
      %cst_20 = arith.constant 0.284496725 : f32
      %32 = vector.broadcast %cst_20 : f32 to vector<32x64xf32>
      %33 = arith.subf %31, %32 : vector<32x64xf32>
      %34 = arith.mulf %33, %23 : vector<32x64xf32>
      %cst_21 = arith.constant 0.254829586 : f32
      %35 = vector.broadcast %cst_21 : f32 to vector<32x64xf32>
      %36 = arith.addf %34, %35 : vector<32x64xf32>
      %37 = arith.mulf %36, %23 : vector<32x64xf32>
      %cst_22 = arith.constant 0.000000e+00 : f32
      %38 = vector.broadcast %cst_22 : f32 to vector<32x64xf32>
      %39 = arith.subf %38, %18 : vector<32x64xf32>
      %40 = arith.mulf %39, %18 : vector<32x64xf32>
      %41 = math.exp %40 : vector<32x64xf32>
      %42 = arith.mulf %37, %41 : vector<32x64xf32>
      %cst_23 = arith.constant 1.000000e+00 : f32
      %43 = vector.broadcast %cst_23 : f32 to vector<32x64xf32>
      %44 = arith.subf %43, %42 : vector<32x64xf32>
      %cst_24 = arith.constant 0.000000e+00 : f32
      %45 = vector.broadcast %cst_24 : f32 to vector<32x64xf32>
      %46 = arith.cmpf olt, %17, %45 : vector<32x64xf32>
      %cst_25 = arith.constant 0.000000e+00 : f32
      %47 = vector.broadcast %cst_25 : f32 to vector<32x64xf32>
      %48 = arith.subf %47, %44 : vector<32x64xf32>
      %49 = arith.select %46, %48, %44 : vector<32x64xi1>, vector<32x64xf32>
      %cst_26 = arith.constant 5.000000e-01 : f32
      %50 = vector.broadcast %cst_26 : f32 to vector<32x64xf32>
      %51 = arith.mulf %50, %15 : vector<32x64xf32>
      %cst_27 = arith.constant 1.000000e+00 : f32
      %52 = vector.broadcast %cst_27 : f32 to vector<32x64xf32>
      %53 = arith.addf %52, %49 : vector<32x64xf32>
      %54 = arith.mulf %51, %53 : vector<32x64xf32>
      %55 = arith.truncf %54 : vector<32x64xf32> to vector<32x64xbf16>
      %c0_28 = arith.constant 0 : index
      %c0_29 = arith.constant 0 : index
      %56 = vector.load %arg6[%c0_28, %c0_29] : memref<32x64xbf16, #tpu.memory_space<vmem>>, vector<32x64xbf16>
      tpu.vector_store %arg6[%c0_28, %c0_29], %55 {strides = array<i32>} : memref<32x64xbf16, #tpu.memory_space<vmem>>, vector<32x64xbf16>,
    } else {
    }
    return
  }
  func.func @transform_0(%arg0: i32, %arg1: i32, %arg2: i32) -> (i32, i32) {
    %c0_i32 = arith.constant 0 : i32
    return %arg0, %arg2 : i32, i32
  }
  func.func @transform_1(%arg0: i32, %arg1: i32, %arg2: i32) -> (i32, i32) {
    %c0_i32 = arith.constant 0 : i32
    return %arg2, %arg1 : i32, i32
  }
  func.func @transform_2(%arg0: i32, %arg1: i32, %arg2: i32) -> (i32, i32) {
    %c0_i32 = arith.constant 0 : i32
    %c0_i32_0 = arith.constant 0 : i32
    return %c0_i32, %arg1 : i32, i32
  }
  func.func @transform_3(%arg0: i32, %arg1: i32, %arg2: i32) -> (i32, i32) {
    %c0_i32 = arith.constant 0 : i32
    return %arg0, %arg1 : i32, i32
  }
}

module attributes {stable_mosaic.version = 11 : i64} {
  func.func @_attn_kernel(%arg0: i32, %arg1: memref<4x4x96xbf16, #tpu.memory_space<vmem>>, %arg2: memref<4x4x16xbf16, #tpu.memory_space<vmem>>, %arg3: memref<4x4x32xbf16, #tpu.memory_space<vmem>>, %arg4: memref<4x4x16xbf16, #tpu.memory_space<vmem>>) attributes {dimension_semantics = [#tpu.dimension_semantics<parallel>], iteration_bounds = array<i64: 2>, scalar_prefetch = 0 : i64, scratch_operands = 0 : i64, tpu.core_type = #tpu.core_type<tc>, window_params = [{transform_indices = @transform_0, window_bounds = array<i64: 4, 4, 96>}, {transform_indices = @transform_1, window_bounds = array<i64: 4, 4, 16>}, {transform_indices = @transform_2, window_bounds = array<i64: 4, 4, 32>}, {transform_indices = @transform_3, window_bounds = array<i64: 4, 4, 16>}]} {
    %c0 = arith.constant 0 : index
    %c0_0 = arith.constant 0 : index
    %c0_1 = arith.constant 0 : index
    %0 = vector.load %arg1[%c0, %c0_0, %c0_1] : memref<4x4x96xbf16, #tpu.memory_space<vmem>>, vector<4x4x96xbf16>
    %c0_2 = arith.constant 0 : index
    %c0_3 = arith.constant 0 : index
    %c0_4 = arith.constant 0 : index
    %1 = vector.load %arg2[%c0_2, %c0_3, %c0_4] : memref<4x4x16xbf16, #tpu.memory_space<vmem>>, vector<4x4x16xbf16>
    %2 = vector.extract_strided_slice %0 {offsets = [0, 0, 0], sizes = [4, 4, 8], strides = [1, 1, 1]} : vector<4x4x96xbf16> to vector<4x4x8xbf16>
    %3 = vector.extract_strided_slice %0 {offsets = [0, 0, 32], sizes = [4, 4, 8], strides = [1, 1, 1]} : vector<4x4x96xbf16> to vector<4x4x8xbf16>
    %4 = vector.extract_strided_slice %0 {offsets = [0, 0, 64], sizes = [4, 4, 8], strides = [1, 1, 1]} : vector<4x4x96xbf16> to vector<4x4x8xbf16>
    "tpu.trace_start"() <{level = 10 : i32, message = "bqd,bkd->bqk"}> : () -> ()
    %cst = arith.constant dense<0.000000e+00> : vector<4x4x4xf32>
    %5 = tpu.matmul %2, %3, %cst {dimension_numbers = #tpu.dot_dimension_numbers<[2], [2], [1], [1], [0, 0, 0, 1, 1, 1], [0], [0]>} : vector<4x4x8xbf16>, vector<4x4x8xbf16>, vector<4x4x4xf32> -> vector<4x4x4xf32>
    "tpu.trace_stop"() : () -> ()
    %cst_5 = arith.constant 0.353553385 : f32
    %6 = vector.broadcast %cst_5 : f32 to vector<4x4x4xf32>
    %7 = arith.mulf %5, %6 : vector<4x4x4xf32>
    %8 = vector.extract_strided_slice %1 {offsets = [0, 0, 0], sizes = [4, 4, 4], strides = [1, 1, 1]} : vector<4x4x16xbf16> to vector<4x4x4xbf16>
    %9 = arith.extf %8 : vector<4x4x4xbf16> to vector<4x4x4xf32>
    %10 = arith.addf %7, %9 : vector<4x4x4xf32>
    %cst_6 = arith.constant dense<0xFF800000> : vector<4x4xf32>
    %11 = vector.multi_reduction <maximumf>, %10, %cst_6 [2] : vector<4x4x4xf32> to vector<4x4xf32>
    %12 = vector.shape_cast %11 : vector<4x4xf32> to vector<4x4x1xf32>
    %13 = vector.broadcast %12 : vector<4x4x1xf32> to vector<4x4x4xf32>
    %14 = arith.subf %10, %13 : vector<4x4x4xf32>
    %15 = math.exp %14 : vector<4x4x4xf32>
    %cst_7 = arith.constant dense<0.000000e+00> : vector<4x4xf32>
    %16 = vector.multi_reduction <add>, %15, %cst_7 [2] : vector<4x4x4xf32> to vector<4x4xf32>
    %17 = vector.shape_cast %16 : vector<4x4xf32> to vector<4x4x1xf32>
    %18 = tpu.reciprocal %17 {approx = true} : vector<4x4x1xf32> -> vector<4x4x1xf32>
    %19 = vector.broadcast %18 : vector<4x4x1xf32> to vector<4x4x4xf32>
    %20 = arith.mulf %15, %19 : vector<4x4x4xf32>
    %21 = arith.truncf %20 : vector<4x4x4xf32> to vector<4x4x4xbf16>
    "tpu.trace_start"() <{level = 10 : i32, message = "bqk,bkd->bqd"}> : () -> ()
    %cst_8 = arith.constant dense<0.000000e+00> : vector<4x4x8xf32>
    %22 = tpu.matmul %21, %4, %cst_8 {dimension_numbers = #tpu.dot_dimension_numbers<[2], [1], [1], [2], [0, 0, 0, 1, 1, 2], [0], [0]>} : vector<4x4x4xbf16>, vector<4x4x8xbf16>, vector<4x4x8xf32> -> vector<4x4x8xf32>
    "tpu.trace_stop"() : () -> ()
    %23 = vector.extract_strided_slice %0 {offsets = [0, 0, 8], sizes = [4, 4, 8], strides = [1, 1, 1]} : vector<4x4x96xbf16> to vector<4x4x8xbf16>
    %24 = vector.extract_strided_slice %0 {offsets = [0, 0, 40], sizes = [4, 4, 8], strides = [1, 1, 1]} : vector<4x4x96xbf16> to vector<4x4x8xbf16>
    %25 = vector.extract_strided_slice %0 {offsets = [0, 0, 72], sizes = [4, 4, 8], strides = [1, 1, 1]} : vector<4x4x96xbf16> to vector<4x4x8xbf16>
    "tpu.trace_start"() <{level = 10 : i32, message = "bqd,bkd->bqk"}> : () -> ()
    %cst_9 = arith.constant dense<0.000000e+00> : vector<4x4x4xf32>
    %26 = tpu.matmul %23, %24, %cst_9 {dimension_numbers = #tpu.dot_dimension_numbers<[2], [2], [1], [1], [0, 0, 0, 1, 1, 1], [0], [0]>} : vector<4x4x8xbf16>, vector<4x4x8xbf16>, vector<4x4x4xf32> -> vector<4x4x4xf32>
    "tpu.trace_stop"() : () -> ()
    %cst_10 = arith.constant 0.353553385 : f32
    %27 = vector.broadcast %cst_10 : f32 to vector<4x4x4xf32>
    %28 = arith.mulf %26, %27 : vector<4x4x4xf32>
    %29 = vector.extract_strided_slice %1 {offsets = [0, 0, 4], sizes = [4, 4, 4], strides = [1, 1, 1]} : vector<4x4x16xbf16> to vector<4x4x4xbf16>
    %30 = arith.extf %29 : vector<4x4x4xbf16> to vector<4x4x4xf32>
    %31 = arith.addf %28, %30 : vector<4x4x4xf32>
    %cst_11 = arith.constant dense<0xFF800000> : vector<4x4xf32>
    %32 = vector.multi_reduction <maximumf>, %31, %cst_11 [2] : vector<4x4x4xf32> to vector<4x4xf32>
    %33 = vector.shape_cast %32 : vector<4x4xf32> to vector<4x4x1xf32>
    %34 = vector.broadcast %33 : vector<4x4x1xf32> to vector<4x4x4xf32>
    %35 = arith.subf %31, %34 : vector<4x4x4xf32>
    %36 = math.exp %35 : vector<4x4x4xf32>
    %cst_12 = arith.constant dense<0.000000e+00> : vector<4x4xf32>
    %37 = vector.multi_reduction <add>, %36, %cst_12 [2] : vector<4x4x4xf32> to vector<4x4xf32>
    %38 = vector.shape_cast %37 : vector<4x4xf32> to vector<4x4x1xf32>
    %39 = tpu.reciprocal %38 {approx = true} : vector<4x4x1xf32> -> vector<4x4x1xf32>
    %40 = vector.broadcast %39 : vector<4x4x1xf32> to vector<4x4x4xf32>
    %41 = arith.mulf %36, %40 : vector<4x4x4xf32>
    %42 = arith.truncf %41 : vector<4x4x4xf32> to vector<4x4x4xbf16>
    "tpu.trace_start"() <{level = 10 : i32, message = "bqk,bkd->bqd"}> : () -> ()
    %cst_13 = arith.constant dense<0.000000e+00> : vector<4x4x8xf32>
    %43 = tpu.matmul %42, %25, %cst_13 {dimension_numbers = #tpu.dot_dimension_numbers<[2], [1], [1], [2], [0, 0, 0, 1, 1, 2], [0], [0]>} : vector<4x4x4xbf16>, vector<4x4x8xbf16>, vector<4x4x8xf32> -> vector<4x4x8xf32>
    "tpu.trace_stop"() : () -> ()
    %44 = vector.extract_strided_slice %0 {offsets = [0, 0, 16], sizes = [4, 4, 8], strides = [1, 1, 1]} : vector<4x4x96xbf16> to vector<4x4x8xbf16>
    %45 = vector.extract_strided_slice %0 {offsets = [0, 0, 48], sizes = [4, 4, 8], strides = [1, 1, 1]} : vector<4x4x96xbf16> to vector<4x4x8xbf16>
    %46 = vector.extract_strided_slice %0 {offsets = [0, 0, 80], sizes = [4, 4, 8], strides = [1, 1, 1]} : vector<4x4x96xbf16> to vector<4x4x8xbf16>
    "tpu.trace_start"() <{level = 10 : i32, message = "bqd,bkd->bqk"}> : () -> ()
    %cst_14 = arith.constant dense<0.000000e+00> : vector<4x4x4xf32>
    %47 = tpu.matmul %44, %45, %cst_14 {dimension_numbers = #tpu.dot_dimension_numbers<[2], [2], [1], [1], [0, 0, 0, 1, 1, 1], [0], [0]>} : vector<4x4x8xbf16>, vector<4x4x8xbf16>, vector<4x4x4xf32> -> vector<4x4x4xf32>
    "tpu.trace_stop"() : () -> ()
    %cst_15 = arith.constant 0.353553385 : f32
    %48 = vector.broadcast %cst_15 : f32 to vector<4x4x4xf32>
    %49 = arith.mulf %47, %48 : vector<4x4x4xf32>
    %50 = vector.extract_strided_slice %1 {offsets = [0, 0, 8], sizes = [4, 4, 4], strides = [1, 1, 1]} : vector<4x4x16xbf16> to vector<4x4x4xbf16>
    %51 = arith.extf %50 : vector<4x4x4xbf16> to vector<4x4x4xf32>
    %52 = arith.addf %49, %51 : vector<4x4x4xf32>
    %cst_16 = arith.constant dense<0xFF800000> : vector<4x4xf32>
    %53 = vector.multi_reduction <maximumf>, %52, %cst_16 [2] : vector<4x4x4xf32> to vector<4x4xf32>
    %54 = vector.shape_cast %53 : vector<4x4xf32> to vector<4x4x1xf32>
    %55 = vector.broadcast %54 : vector<4x4x1xf32> to vector<4x4x4xf32>
    %56 = arith.subf %52, %55 : vector<4x4x4xf32>
    %57 = math.exp %56 : vector<4x4x4xf32>
    %cst_17 = arith.constant dense<0.000000e+00> : vector<4x4xf32>
    %58 = vector.multi_reduction <add>, %57, %cst_17 [2] : vector<4x4x4xf32> to vector<4x4xf32>
    %59 = vector.shape_cast %58 : vector<4x4xf32> to vector<4x4x1xf32>
    %60 = tpu.reciprocal %59 {approx = true} : vector<4x4x1xf32> -> vector<4x4x1xf32>
    %61 = vector.broadcast %60 : vector<4x4x1xf32> to vector<4x4x4xf32>
    %62 = arith.mulf %57, %61 : vector<4x4x4xf32>
    %63 = arith.truncf %62 : vector<4x4x4xf32> to vector<4x4x4xbf16>
    "tpu.trace_start"() <{level = 10 : i32, message = "bqk,bkd->bqd"}> : () -> ()
    %cst_18 = arith.constant dense<0.000000e+00> : vector<4x4x8xf32>
    %64 = tpu.matmul %63, %46, %cst_18 {dimension_numbers = #tpu.dot_dimension_numbers<[2], [1], [1], [2], [0, 0, 0, 1, 1, 2], [0], [0]>} : vector<4x4x4xbf16>, vector<4x4x8xbf16>, vector<4x4x8xf32> -> vector<4x4x8xf32>
    "tpu.trace_stop"() : () -> ()
    %65 = vector.extract_strided_slice %0 {offsets = [0, 0, 24], sizes = [4, 4, 8], strides = [1, 1, 1]} : vector<4x4x96xbf16> to vector<4x4x8xbf16>
    %66 = vector.extract_strided_slice %0 {offsets = [0, 0, 56], sizes = [4, 4, 8], strides = [1, 1, 1]} : vector<4x4x96xbf16> to vector<4x4x8xbf16>
    %67 = vector.extract_strided_slice %0 {offsets = [0, 0, 88], sizes = [4, 4, 8], strides = [1, 1, 1]} : vector<4x4x96xbf16> to vector<4x4x8xbf16>
    "tpu.trace_start"() <{level = 10 : i32, message = "bqd,bkd->bqk"}> : () -> ()
    %cst_19 = arith.constant dense<0.000000e+00> : vector<4x4x4xf32>
    %68 = tpu.matmul %65, %66, %cst_19 {dimension_numbers = #tpu.dot_dimension_numbers<[2], [2], [1], [1], [0, 0, 0, 1, 1, 1], [0], [0]>} : vector<4x4x8xbf16>, vector<4x4x8xbf16>, vector<4x4x4xf32> -> vector<4x4x4xf32>
    "tpu.trace_stop"() : () -> ()
    %cst_20 = arith.constant 0.353553385 : f32
    %69 = vector.broadcast %cst_20 : f32 to vector<4x4x4xf32>
    %70 = arith.mulf %68, %69 : vector<4x4x4xf32>
    %71 = vector.extract_strided_slice %1 {offsets = [0, 0, 12], sizes = [4, 4, 4], strides = [1, 1, 1]} : vector<4x4x16xbf16> to vector<4x4x4xbf16>
    %72 = arith.extf %71 : vector<4x4x4xbf16> to vector<4x4x4xf32>
    %73 = arith.addf %70, %72 : vector<4x4x4xf32>
    %cst_21 = arith.constant dense<0xFF800000> : vector<4x4xf32>
    %74 = vector.multi_reduction <maximumf>, %73, %cst_21 [2] : vector<4x4x4xf32> to vector<4x4xf32>
    %75 = vector.shape_cast %74 : vector<4x4xf32> to vector<4x4x1xf32>
    %76 = vector.broadcast %75 : vector<4x4x1xf32> to vector<4x4x4xf32>
    %77 = arith.subf %73, %76 : vector<4x4x4xf32>
    %78 = math.exp %77 : vector<4x4x4xf32>
    %cst_22 = arith.constant dense<0.000000e+00> : vector<4x4xf32>
    %79 = vector.multi_reduction <add>, %78, %cst_22 [2] : vector<4x4x4xf32> to vector<4x4xf32>
    %80 = vector.shape_cast %79 : vector<4x4xf32> to vector<4x4x1xf32>
    %81 = tpu.reciprocal %80 {approx = true} : vector<4x4x1xf32> -> vector<4x4x1xf32>
    %82 = vector.broadcast %81 : vector<4x4x1xf32> to vector<4x4x4xf32>
    %83 = arith.mulf %78, %82 : vector<4x4x4xf32>
    %84 = arith.truncf %83 : vector<4x4x4xf32> to vector<4x4x4xbf16>
    "tpu.trace_start"() <{level = 10 : i32, message = "bqk,bkd->bqd"}> : () -> ()
    %cst_23 = arith.constant dense<0.000000e+00> : vector<4x4x8xf32>
    %85 = tpu.matmul %84, %67, %cst_23 {dimension_numbers = #tpu.dot_dimension_numbers<[2], [1], [1], [2], [0, 0, 0, 1, 1, 2], [0], [0]>} : vector<4x4x4xbf16>, vector<4x4x8xbf16>, vector<4x4x8xf32> -> vector<4x4x8xf32>
    "tpu.trace_stop"() : () -> ()
    %86 = tpu.concatenate %22, %43, %64, %85 in 2 : vector<4x4x8xf32>, vector<4x4x8xf32>, vector<4x4x8xf32>, vector<4x4x8xf32> -> vector<4x4x32xf32>
    %87 = arith.truncf %86 : vector<4x4x32xf32> to vector<4x4x32xbf16>
    %c0_24 = arith.constant 0 : index
    %c0_25 = arith.constant 0 : index
    %c0_26 = arith.constant 0 : index
    %88 = vector.load %arg3[%c0_24, %c0_25, %c0_26] : memref<4x4x32xbf16, #tpu.memory_space<vmem>>, vector<4x4x32xbf16>
    tpu.vector_store %arg3[%c0_24, %c0_25, %c0_26], %87 {strides = array<i32>} : memref<4x4x32xbf16, #tpu.memory_space<vmem>>, vector<4x4x32xbf16>,
    %89 = tpu.concatenate %10, %31, %52, %73 in 2 : vector<4x4x4xf32>, vector<4x4x4xf32>, vector<4x4x4xf32>, vector<4x4x4xf32> -> vector<4x4x16xf32>
    %90 = arith.truncf %89 : vector<4x4x16xf32> to vector<4x4x16xbf16>
    %c0_27 = arith.constant 0 : index
    %c0_28 = arith.constant 0 : index
    %c0_29 = arith.constant 0 : index
    %91 = vector.load %arg4[%c0_27, %c0_28, %c0_29] : memref<4x4x16xbf16, #tpu.memory_space<vmem>>, vector<4x4x16xbf16>
    tpu.vector_store %arg4[%c0_27, %c0_28, %c0_29], %90 {strides = array<i32>} : memref<4x4x16xbf16, #tpu.memory_space<vmem>>, vector<4x4x16xbf16>,
    return
  }
  func.func @transform_0(%arg0: i32) -> (i32, i32, i32) {
    %c0_i32 = arith.constant 0 : i32
    %c0_i32_0 = arith.constant 0 : i32
    %c0_i32_1 = arith.constant 0 : i32
    return %arg0, %c0_i32, %c0_i32_0 : i32, i32, i32
  }
  func.func @transform_1(%arg0: i32) -> (i32, i32, i32) {
    %c0_i32 = arith.constant 0 : i32
    %c0_i32_0 = arith.constant 0 : i32
    %c0_i32_1 = arith.constant 0 : i32
    return %arg0, %c0_i32, %c0_i32_0 : i32, i32, i32
  }
  func.func @transform_2(%arg0: i32) -> (i32, i32, i32) {
    %c0_i32 = arith.constant 0 : i32
    %c0_i32_0 = arith.constant 0 : i32
    %c0_i32_1 = arith.constant 0 : i32
    return %arg0, %c0_i32, %c0_i32_0 : i32, i32, i32
  }
  func.func @transform_3(%arg0: i32) -> (i32, i32, i32) {
    %c0_i32 = arith.constant 0 : i32
    %c0_i32_0 = arith.constant 0 : i32
    %c0_i32_1 = arith.constant 0 : i32
    return %arg0, %c0_i32, %c0_i32_0 : i32, i32, i32
  }
}

module attributes {stable_mosaic.version = 11 : i64} {
  func.func @_linear_kernel(%arg0: i32, %arg1: i32, %arg2: i32, %arg3: memref<32x64xbf16, #tpu.memory_space<vmem>>, %arg4: memref<64x32xbf16, #tpu.memory_space<vmem>>, %arg5: memref<1x32xf32, #tpu.memory_space<vmem>>, %arg6: memref<32x32xbf16, #tpu.memory_space<vmem>>, %arg7: memref<1x32xf32, #tpu.memory_space<vmem>>, %arg8: memref<1x32xf32, #tpu.memory_space<vmem>>, %arg9: memref<32x32xbf16, #tpu.memory_space<vmem>>, %arg10: memref<32x32xf32, #tpu.memory_space<vmem>>) attributes {dimension_semantics = [#tpu.dimension_semantics<parallel>, #tpu.dimension_semantics<parallel>, #tpu.dimension_semantics<arbitrary>], iteration_bounds = array<i64: 1, 1, 1>, scalar_prefetch = 0 : i64, scratch_operands = 1 : i64, tpu.core_type = #tpu.core_type<tc>, window_params = [{transform_indices = @transform_0, window_bounds = array<i64: 32, 64>}, {transform_indices = @transform_1, window_bounds = array<i64: 64, 32>}, {transform_indices = @transform_2, window_bounds = array<i64: 1, 32>}, {transform_indices = @transform_3, window_bounds = array<i64: 32, 32>}, {transform_indices = @transform_4, window_bounds = array<i64: 1, 32>}, {transform_indices = @transform_5, window_bounds = array<i64: 1, 32>}, {transform_indices = @transform_6, window_bounds = array<i64: 32, 32>}]} {
    %c0_i32 = arith.constant 0 : i32
    %0 = arith.cmpi eq, %arg2, %c0_i32 : i32
    %1 = arith.extui %0 : i1 to i32
    %c0_i32_0 = arith.constant 0 : i32
    %2 = arith.cmpi ne, %1, %c0_i32_0 : i32
    scf.if %2 {
      %cst_10 = arith.constant 0.000000e+00 : f32
      %12 = vector.broadcast %cst_10 : f32 to vector<32x32xf32>
      %c0_11 = arith.constant 0 : index
      %c0_12 = arith.constant 0 : index
      %13 = vector.load %arg10[%c0_11, %c0_12] : memref<32x32xf32, #tpu.memory_space<vmem>>, vector<32x32xf32>
      tpu.vector_store %arg10[%c0_11, %c0_12], %12 {strides = array<i32>} : memref<32x32xf32, #tpu.memory_space<vmem>>, vector<32x32xf32>,
    } else {
    }
    %c0 = arith.constant 0 : index
    %c0_1 = arith.constant 0 : index
    %3 = vector.load %arg3[%c0, %c0_1] : memref<32x64xbf16, #tpu.memory_space<vmem>>, vector<32x64xbf16>
    %c0_2 = arith.constant 0 : index
    %c0_3 = arith.constant 0 : index
    %4 = vector.load %arg4[%c0_2, %c0_3] : memref<64x32xbf16, #tpu.memory_space<vmem>>, vector<64x32xbf16>
    %c0_4 = arith.constant 0 : index
    %c0_5 = arith.constant 0 : index
    %5 = vector.load %arg10[%c0_4, %c0_5] : memref<32x32xf32, #tpu.memory_space<vmem>>, vector<32x32xf32>
    %cst = arith.constant dense<0.000000e+00> : vector<32x32xf32>
    %6 = tpu.matmul %3, %4, %cst {dimension_numbers = #tpu.dot_dimension_numbers<[1], [0], [0], [1], [0, 0, 1, 1], [], []>} : vector<32x64xbf16>, vector<64x32xbf16>, vector<32x32xf32> -> vector<32x32xf32>
    %7 = arith.addf %5, %6 : vector<32x32xf32>
    %c0_6 = arith.constant 0 : index
    %c0_7 = arith.constant 0 : index
    %8 = vector.load %arg10[%c0_6, %c0_7] : memref<32x32xf32, #tpu.memory_space<vmem>>, vector<32x32xf32>
    tpu.vector_store %arg10[%c0_6, %c0_7], %7 {strides = array<i32>} : memref<32x32xf32, #tpu.memory_space<vmem>>, vector<32x32xf32>,
    %c0_i32_8 = arith.constant 0 : i32
    %9 = arith.cmpi eq, %arg2, %c0_i32_8 : i32
    %10 = arith.extui %9 : i1 to i32
    %c0_i32_9 = arith.constant 0 : i32
    %11 = arith.cmpi ne, %10, %c0_i32_9 : i32
    scf.if %11 {
      %c0_10 = arith.constant 0 : index
      %c0_11 = arith.constant 0 : index
      %12 = vector.load %arg10[%c0_10, %c0_11] : memref<32x32xf32, #tpu.memory_space<vmem>>, vector<32x32xf32>
      %c0_12 = arith.constant 0 : index
      %c0_13 = arith.constant 0 : index
      %13 = vector.load %arg5[%c0_12, %c0_13] : memref<1x32xf32, #tpu.memory_space<vmem>>, vector<1x32xf32>
      %14 = vector.broadcast %13 : vector<1x32xf32> to vector<32x32xf32>
      %15 = arith.addf %12, %14 : vector<32x32xf32>
      %c0_14 = arith.constant 0 : index
      %c0_15 = arith.constant 0 : index
      %16 = vector.load %arg6[%c0_14, %c0_15] : memref<32x32xbf16, #tpu.memory_space<vmem>>, vector<32x32xbf16>
      %17 = arith.extf %16 : vector<32x32xbf16> to vector<32x32xf32>
      %18 = arith.addf %15, %17 : vector<32x32xf32>
      %c0_16 = arith.constant 0 : index
      %c0_17 = arith.constant 0 : index
      %19 = vector.load %arg7[%c0_16, %c0_17] : memref<1x32xf32, #tpu.memory_space<vmem>>, vector<1x32xf32>
      %20 = vector.broadcast %19 : vector<1x32xf32> to vector<32x32xf32>
      %21 = arith.mulf %18, %20 : vector<32x32xf32>
      %c0_18 = arith.constant 0 : index
      %c0_19 = arith.constant 0 : index
      %22 = vector.load %arg8[%c0_18, %c0_19] : memref<1x32xf32, #tpu.memory_space<vmem>>, vector<1x32xf32>
      %23 = vector.broadcast %22 : vector<1x32xf32> to vector<32x32xf32>
      %24 = arith.addf %21, %23 : vector<32x32xf32>
      %25 = arith.truncf %24 : vector<32x32xf32> to vector<32x32xbf16>
      %c0_20 = arith.constant 0 : index
      %c0_21 = arith.constant 0 : index
      %26 = vector.load %arg9[%c0_20, %c0_21] : memref<32x32xbf16, #tpu.memory_space<vmem>>, vector<32x32xbf16>
      tpu.vector_store %arg9[%c0_20, %c0_21], %25 {strides = array<i32>} : memref<32x32xbf16, #tpu.memory_space<vmem>>, vector<32x32xbf16>,
    } else {
    }
    return
  }
  func.func @transform_0(%arg0: i32, %arg1: i32, %arg2: i32) -> (i32, i32) {
    %c0_i32 = arith.constant 0 : i32
    return %arg0, %arg2 : i32, i32
  }
  func.func @transform_1(%arg0: i32, %arg1: i32, %arg2: i32) -> (i32, i32) {
    %c0_i32 = arith.constant 0 : i32
    return %arg2, %arg1 : i32, i32
  }
  func.func @transform_2(%arg0: i32, %arg1: i32, %arg2: i32) -> (i32, i32) {
    %c0_i32 = arith.constant 0 : i32
    %c0_i32_0 = arith.constant 0 : i32
    return %c0_i32, %arg1 : i32, i32
  }
  func.func @transform_3(%arg0: i32, %arg1: i32, %arg2: i32) -> (i32, i32) {
    %c0_i32 = arith.constant 0 : i32
    return %arg0, %arg1 : i32, i32
  }
  func.func @transform_4(%arg0: i32, %arg1: i32, %arg2: i32) -> (i32, i32) {
    %c0_i32 = arith.constant 0 : i32
    %c0_i32_0 = arith.constant 0 : i32
    return %c0_i32, %arg1 : i32, i32
  }
  func.func @transform_5(%arg0: i32, %arg1: i32, %arg2: i32) -> (i32, i32) {
    %c0_i32 = arith.constant 0 : i32
    %c0_i32_0 = arith.constant 0 : i32
    return %c0_i32, %arg1 : i32, i32
  }
  func.func @transform_6(%arg0: i32, %arg1: i32, %arg2: i32) -> (i32, i32) {
    %c0_i32 = arith.constant 0 : i32
    return %arg0, %arg1 : i32, i32
  }
}

module attributes {stable_mosaic.version = 11 : i64} {
  func.func @_linear_kernel(%arg0: i32, %arg1: i32, %arg2: i32, %arg3: memref<8x128xbf16, #tpu.memory_space<vmem>>, %arg4: memref<128x8xbf16, #tpu.memory_space<vmem>>, %arg5: memref<1x8xf32, #tpu.memory_space<vmem>>, %arg6: memref<8x8xf32, #tpu.memory_space<vmem>>, %arg7: memref<8x8xf32, #tpu.memory_space<vmem>>) attributes {dimension_semantics = [#tpu.dimension_semantics<parallel>, #tpu.dimension_semantics<parallel>, #tpu.dimension_semantics<arbitrary>], iteration_bounds = array<i64: 1, 1, 1>, scalar_prefetch = 0 : i64, scratch_operands = 1 : i64, tpu.core_type = #tpu.core_type<tc>, window_params = [{transform_indices = @transform_0, window_bounds = array<i64: 8, 128>}, {transform_indices = @transform_1, window_bounds = array<i64: 128, 8>}, {transform_indices = @transform_2, window_bounds = array<i64: 1, 8>}, {transform_indices = @transform_3, window_bounds = array<i64: 8, 8>}]} {
    %c0_i32 = arith.constant 0 : i32
    %0 = arith.cmpi eq, %arg2, %c0_i32 : i32
    %1 = arith.extui %0 : i1 to i32
    %c0_i32_0 = arith.constant 0 : i32
    %2 = arith.cmpi ne, %1, %c0_i32_0 : i32
    scf.if %2 {
      %cst_10 = arith.constant 0.000000e+00 : f32
      %12 = vector.broadcast %cst_10 : f32 to vector<8x8xf32>
      %c0_11 = arith.constant 0 : index
      %c0_12 = arith.constant 0 : index
      %13 = vector.load %arg7[%c0_11, %c0_12] : memref<8x8xf32, #tpu.memory_space<vmem>>, vector<8x8xf32>
      tpu.vector_store %arg7[%c0_11, %c0_12], %12 {strides = array<i32>} : memref<8x8xf32, #tpu.memory_space<vmem>>, vector<8x8xf32>,
    } else {
    }
    %c0 = arith.constant 0 : index
    %c0_1 = arith.constant 0 : index
    %3 = vector.load %arg3[%c0, %c0_1] : memref<8x128xbf16, #tpu.memory_space<vmem>>, vector<8x128xbf16>
    %c0_2 = arith.constant 0 : index
    %c0_3 = arith.constant 0 : index
    %4 = vector.load %arg4[%c0_2, %c0_3] : memref<128x8xbf16, #tpu.memory_space<vmem>>, vector<128x8xbf16>
    %c0_4 = arith.constant 0 : index
    %c0_5 = arith.constant 0 : index
    %5 = vector.load %arg7[%c0_4, %c0_5] : memref<8x8xf32, #tpu.memory_space<vmem>>, vector<8x8xf32>
    %cst = arith.constant dense<0.000000e+00> : vector<8x8xf32>
    %6 = tpu.matmul %3, %4, %cst {dimension_numbers = #tpu.dot_dimension_numbers<[1], [0], [0], [1], [0, 0, 1, 1], [], []>} : vector<8x128xbf16>, vector<128x8xbf16>, vector<8x8xf32> -> vector<8x8xf32>
    %7 = arith.addf %5, %6 : vector<8x8xf32>
    %c0_6 = arith.constant 0 : index
    %c0_7 = arith.constant 0 : index
    %8 = vector.load %arg7[%c0_6, %c0_7] : memref<8x8xf32, #tpu.memory_space<vmem>>, vector<8x8xf32>
    tpu.vector_store %arg7[%c0_6, %c0_7], %7 {strides = array<i32>} : memref<8x8xf32, #tpu.memory_space<vmem>>, vector<8x8xf32>,
    %c0_i32_8 = arith.constant 0 : i32
    %9 = arith.cmpi eq, %arg2, %c0_i32_8 : i32
    %10 = arith.extui %9 : i1 to i32
    %c0_i32_9 = arith.constant 0 : i32
    %11 = arith.cmpi ne, %10, %c0_i32_9 : i32
    scf.if %11 {
      %c0_10 = arith.constant 0 : index
      %c0_11 = arith.constant 0 : index
      %12 = vector.load %arg7[%c0_10, %c0_11] : memref<8x8xf32, #tpu.memory_space<vmem>>, vector<8x8xf32>
      %c0_12 = arith.constant 0 : index
      %c0_13 = arith.constant 0 : index
      %13 = vector.load %arg5[%c0_12, %c0_13] : memref<1x8xf32, #tpu.memory_space<vmem>>, vector<1x8xf32>
      %14 = vector.broadcast %13 : vector<1x8xf32> to vector<8x8xf32>
      %15 = arith.addf %12, %14 : vector<8x8xf32>
      %c0_14 = arith.constant 0 : index
      %c0_15 = arith.constant 0 : index
      %16 = vector.load %arg6[%c0_14, %c0_15] : memref<8x8xf32, #tpu.memory_space<vmem>>, vector<8x8xf32>
      tpu.vector_store %arg6[%c0_14, %c0_15], %15 {strides = array<i32>} : memref<8x8xf32, #tpu.memory_space<vmem>>, vector<8x8xf32>,
    } else {
    }
    return
  }
  func.func @transform_0(%arg0: i32, %arg1: i32, %arg2: i32) -> (i32, i32) {
    %c0_i32 = arith.constant 0 : i32
    return %arg0, %arg2 : i32, i32
  }
  func.func @transform_1(%arg0: i32, %arg1: i32, %arg2: i32) -> (i32, i32) {
    %c0_i32 = arith.constant 0 : i32
    return %arg2, %arg1 : i32, i32
  }
  func.func @transform_2(%arg0: i32, %arg1: i32, %arg2: i32) -> (i32, i32) {
    %c0_i32 = arith.constant 0 : i32
    %c0_i32_0 = arith.constant 0 : i32
    return %c0_i32, %arg1 : i32, i32
  }
  func.func @transform_3(%arg0: i32, %arg1: i32, %arg2: i32) -> (i32, i32) {
    %c0_i32 = arith.constant 0 : i32
    return %arg0, %arg1 : i32, i32
  }
}

</mosaic_0001>

<bundles_post_ra>
// kernel: patchtst_forward.13
= control target key start
LH: loop header
LB: loop body
LE: loop exit
PB: predicated region body
PF: predicated region fallthrough
CT: control target
= control target key end

     0   :  { %vm19_vm0 = vcmask 785408   ;;  %v198_v1 = vmov 0.0   ;;  %vm58_vm1 = vcmask 261120   ;;  %vm157_vm2 = vcmask 781312   ;;  %s254_s1 = inlined_call_operand.vmem [shape: bf16[32,96], index: 1, kind: input, shape index: {}]   ;;  %s255_s0 = inlined_call_operand.vmem [shape: bf16[32,32], index: 0, kind: input, shape index: {}]   ;;  %s256_s2 = inlined_call_operand.vmem [shape: f32[1,96], index: 2, kind: input, shape index: {}]   ;;  %s257_s3 = inlined_call_operand.vmem [shape: bf16[32,96], index: 3, kind: output, shape index: {}]  }
   0x1   :  { %v194_v0 = vld [vmem:[%s254_s1 + $0x8] sm:$0xff]   ;;  %22 = vst.msk [vmem:[#allocation2 + $0x10] sm:$0xff] %vm19_vm0, %v198_v1  ;;  %20 = vst.msk [vmem:[#allocation2] sm:$0xff] %vm19_vm0, %v198_v1  ;;  %v195_v2 = vld [vmem:[%s254_s1] sm:$0xff]  }
   0x2   :  { %21 = vst.msk [vmem:[#allocation2 + $0x8] sm:$0xff] %vm19_vm0, %v198_v1  ;;  %23 = vst.msk [vmem:[#allocation2 + $0x18] sm:$0xff] %vm19_vm0, %v198_v1  ;;  %185 = vmatprep.subr.bf16.mxu0 %v194_v0  ;;  %v196_v3 = vld [vmem:[%s255_s0] sm:$0xff]   ;;  %v197_v4 = vld [vmem:[%s255_s0 + $0x8] sm:$0xff]  }
   0x3   :  { %186 = vmatpush3.bf16.msra.mxu0 %v194_v0  ;;  %189 = vmatprep.mubr.msk.bf16.mxu0 %vm58_vm1, %v196_v3  ;;  %v172_v17 = vld [vmem:[%s256_s2] ss:$0 sm:$0xff] }
   0x4   :  { %187 = vmatprep.subr.bf16.mxu0 %v195_v2 }
   0x7   :  { %188 = vmatpush3.bf16.msra.mxu0 %v195_v2 }
   0x8   :  { %v34_v5 = vld [vmem:[#allocation2 + $0x10] sm:$0xff]  ;;  %v32_v7 = vld [vmem:[#allocation2] sm:$0xff] }
   0x9   :  { %v35_v10 = vld [vmem:[#allocation2 + $0x18] sm:$0xff]  ;;  %v33_v13 = vld [vmem:[#allocation2 + $0x8] sm:$0xff] }
   0xa   :  { %190 = vmatmul.mubr.msk.bf16.vlgmr.msra.gmra.mxu0 %vm58_vm1, %v197_v4 }
  0xca   :  { %v191_v6 = vpop.f32.mrf.mxu0 }
  0xcb   :  { %v116_v8 = vadd.f32 %v191_v6, %v34_v5 }
  0xcc   :  { %v99_v9 = vpop.f32.mrf.mxu0 }
  0xcd   :  { %121 = vst.msk [vmem:[#allocation2 + $0x10] sm:$0xff] %vm19_vm0, %v116_v8  ;;  %v114_v11 = vadd.f32 %v99_v9, %v32_v7 }
  0xce   :  { %v192_v12 = vpop.f32.mrf.mxu0 }
  0xcf   :  { %119 = vst.msk [vmem:[#allocation2] sm:$0xff] %vm19_vm0, %v114_v11  ;;  %v117_v14 = vadd.f32 %v192_v12, %v35_v10 }
  0xd0   :  { %v102_v15 = vpop.f32.mrf.mxu0 }
  0xd1   :  { %122 = vst.msk [vmem:[#allocation2 + $0x18] sm:$0xff] %vm19_vm0, %v117_v14  ;;  %v115_v16 = vadd.f32 %v102_v15, %v33_v13 }
  0xd3   :  { %120 = vst.msk [vmem:[#allocation2 + $0x8] sm:$0xff] %vm19_vm0, %v115_v16 }
  0xd4   :  { %v128_v18 = vld [vmem:[#allocation2 + $0x10] sm:$0xff] }
  0xd5   :  { %v139_v19 = vadd.f32 %v172_v17, %v128_v18 }
  0xd6   :  { %v126_v20 = vld [vmem:[#allocation2] sm:$0xff] }
  0xd7   :  { %v179_v21 = vpack.c.bf16 %v139_v19, %v139_v19  ;;  %v137_v22 = vadd.f32 %v172_v17, %v126_v20 }
  0xd8   :  { %v129_v23 = vld [vmem:[#allocation2 + $0x18] sm:$0xff] }
  0xd9   :  { %160 = vst.msk [vmem:[%s257_s3 + $0x8] sm:$0xf] %vm157_vm2, %v179_v21  ;;  %v177_v24 = vpack.c.bf16 %v137_v22, %v137_v22  ;;  %v140_v25 = vadd.f32 %v172_v17, %v129_v23 }
  0xda   :  { %v127_v26 = vld [vmem:[#allocation2 + $0x8] sm:$0xff] }
  0xdb   :  { %158 = vst.msk [vmem:[%s257_s3] sm:$0xf] %vm157_vm2, %v177_v24  ;;  %v180_v27 = vpack.c.bf16 %v140_v25, %v140_v25  ;;  %v138_v28 = vadd.f32 %v172_v17, %v127_v26 }
  0xdd   :  { %161 = vst.msk [vmem:[%s257_s3 + $0xc] sm:$0xf] %vm157_vm2, %v180_v27  ;;  %v178_v29 = vpack.c.bf16 %v138_v28, %v138_v28 }
  0xdf   :  { %159 = vst.msk [vmem:[%s257_s3 + $0x4] sm:$0xf] %vm157_vm2, %v178_v29 }

// kernel: patchtst_forward.12
= control target key start
LH: loop header
LB: loop body
LE: loop exit
PB: predicated region body
PF: predicated region fallthrough
CT: control target
= control target key end

     0   :  { %s361_s12 = smov 0   ;;  %s387_s0 = inlined_call_operand.vmem [shape: f32[32,4], index: 0, kind: input, shape index: {}]   ;;  %s388_s1 = inlined_call_operand.vmem [shape: bf16[4,32], index: 1, kind: input, shape index: {}]   ;;  %s389_s2 = inlined_call_operand.vmem [shape: f32[16,32], index: 2, kind: input, shape index: {}]   ;;  %s390_s3 = inlined_call_operand.vmem [shape: bf16[32,32], index: 3, kind: output, shape index: {}]  }
   0x1 LB: > { %s297_s13 = sadd.s32 4294967295, %s337_s12   ;;  %p301_p0 = scmp.ge.s32.totalorder %s337_s12, 1  ;;  %s337_s12 = sphi %s361_s12, %s13_s12  }
   0x2   : > { %p138_p1 = scmp.lt.s32.totalorder %s337_s12, 3 }
   0x4   : > { %p139_p2 = pnand %p301_p0, %p138_p1 }
   0x5   : > { %s302_s16 = sshll.u32 (!%p139_p2), %s297_s13, 1 }
   0x6   : > { %142 = sbr.rel (%p139_p2) target bundleno = 219 (0xdb), region = 32  ;;  %p163_p3 = scmp.lt.s32.totalorder (!%p139_p2), %s302_s16, 3 }
   0xb   : > { %v177_v0 = vld [vmem:[%s388_s1] sm:$0x3]  ;;  %vm185_vm0 = vcmask 1041408   ;;  %v339_v1 = vmov 0.0   ;;  %vm340_vm1 = vmmov 0   ;;  %s392_s16 = smov (!%p163_p3, %s302_s16), 3 }
   0xc   : > { %315 = vmatprep.subr.bf16.mxu0 %v339_v1  ;;  %v187_v2 = vsel %vm185_vm0, %v177_v0, 0  ;;  %317 = vmatprep.mubr.msk.bf16.mxu0 %vm340_vm1, %v339_v1  ;;  %s303_s17 = sshll.u32 %s392_s16, 3  ;;  %vm181_vm2 = vcmask 31744   ;;  %v179_v6 = vld [vmem:[%s389_s2] sm:$0xff]  ;;  %s305_s23 = sshll.u32 %s392_s16, 2  ;;  %vm238_vm3 = vcmask 257024  }
   0xd   : > { %316 = vmatpush3.bf16.msra.mxu0 %v187_v2  ;;  %s166_s20 = scalar_lea.vmem %s387_s0, %s303_s17  ;;  %s172_s26 = scalar_lea.vmem %s390_s3, %s305_s23  ;;  %v180_v10 = vld [vmem:[%s389_s2 + $0x8] sm:$0xff] }
   0xe   : > { %v175_v3 = vld [vmem:[%s166_s20] sm:$0xff]  ;;  %v176_v4 = vld [vmem:[%s166_s20 + $0x8] sm:$0xff] }
   0xf   : > { %v178_v5 = vpack.c.bf16 %v176_v4, %v175_v3 }
  0x11   : > { %318 = vmatmul.mubr.msk.bf16.vlgmr.msra.gmra.mxu0 %vm181_vm2, %v178_v5 }
  0xd1   : > { %v223_v7 = vpop.f32.mrf.mxu0 }
  0xd2   : > { %v224_v8 = vadd.f32 %v223_v7, %v179_v6 }
  0xd3   : > { %v319_v9 = vpop.f32.mrf.mxu0 }
  0xd4   : > { %v311_v11 = vpack.c.bf16 %v224_v8, %v224_v8 }
  0xd5   : > { %v226_v12 = vpop.f32.mrf.mxu0 }
  0xd6   : > { %239 = vst.msk [vmem:[%s172_s26] sm:$0xf] %vm238_vm3, %v311_v11  ;;  %v227_v13 = vadd.f32 %v226_v12, %v180_v10 }
  0xd7   : > { %v320_v14 = vpop.f32.mrf.mxu0 }
  0xd8   : > { %v312_v15 = vpack.c.bf16 %v227_v13, %v227_v13 }
  0xda   : > { %240 = vst.msk [vmem:[%s172_s26 + $0x4] sm:$0xf] %vm238_vm3, %v312_v15 }
  0xdb PF: > { %s13_s12 = sadd.s32 1, %s337_s12  }
  0xdc   : > { %p10_p4 = scmp.ge.s32.totalorder %s13_s12, 4  }
  0xde   :  { %12 = sbr.rel (!%p10_p4) target bundleno = 1 (0x1), region = 62 }

// kernel: patchtst_forward.15
= control target key start
LH: loop header
LB: loop body
LE: loop exit
PB: predicated region body
PF: predicated region fallthrough
CT: control target
= control target key end

     0   :  { %vm28_vm0 = vcmask 261120   ;;  %v251_v1 = vmov 0.0   ;;  %vm199_vm1 = vcmask 257024   ;;  %s336_s1 = inlined_call_operand.vmem [shape: bf16[32,32], index: 1, kind: input, shape index: {}]   ;;  %s337_s0 = inlined_call_operand.vmem [shape: bf16[32,32], index: 0, kind: input, shape index: {}]   ;;  %s338_s3 = inlined_call_operand.vmem [shape: bf16[32,32], index: 3, kind: input, shape index: {}]   ;;  %s339_s2 = inlined_call_operand.vmem [shape: f32[1,32], index: 2, kind: input, shape index: {}]   ;;  %s340_s4 = inlined_call_operand.vmem [shape: f32[1,32], index: 4, kind: input, shape index: {}]   ;;  %s341_s5 = inlined_call_operand.vmem [shape: f32[1,32], index: 5, kind: input, shape index: {}]   ;;  %s342_s6 = inlined_call_operand.vmem [shape: bf16[32,32], index: 6, kind: output, shape index: {}]  }
   0x1   :  { %v247_v0 = vld [vmem:[%s336_s1 + $0x8] sm:$0xff]   ;;  %31 = vst.msk [vmem:[#allocation2 + $0x10] sm:$0xff] %vm28_vm0, %v251_v1  ;;  %29 = vst.msk [vmem:[#allocation2] sm:$0xff] %vm28_vm0, %v251_v1  ;;  %v248_v2 = vld [vmem:[%s336_s1] sm:$0xff]  }
   0x2   :  { %30 = vst.msk [vmem:[#allocation2 + $0x8] sm:$0xff] %vm28_vm0, %v251_v1  ;;  %32 = vst.msk [vmem:[#allocation2 + $0x18] sm:$0xff] %vm28_vm0, %v251_v1  ;;  %238 = vmatprep.subr.bf16.mxu0 %v247_v0  ;;  %v249_v3 = vld [vmem:[%s337_s0] sm:$0xff]   ;;  %v250_v4 = vld [vmem:[%s337_s0 + $0x8] sm:$0xff]  }
   0x3   :  { %239 = vmatpush3.bf16.msra.mxu0 %v247_v0  ;;  %242 = vmatprep.mubr.msk.bf16.mxu0 %vm28_vm0, %v249_v3  ;;  %v233_v15 = vld [vmem:[%s338_s3 + $0x8] sm:$0xff]   ;;  %v214_v18 = vld [vmem:[%s339_s2] ss:$0 sm:$0xff] }
   0x4   :  { %240 = vmatprep.subr.bf16.mxu0 %v248_v2  ;;  %v226_v19 = vld [vmem:[%s338_s3] sm:$0xff]   ;;  %v231_v20 = vunpack.c.l.bf16 %v233_v15  ;;  %v232_v28 = vunpack.c.h.bf16 %v233_v15 }
   0x5   :  { %v227_v23 = vunpack.c.l.bf16 %v226_v19  ;;  %v215_v24 = vld [vmem:[%s340_s4] ss:$0 sm:$0xff]  ;;  %v228_v34 = vunpack.c.h.bf16 %v226_v19 }
   0x6   :  { %v216_v29 = vld [vmem:[%s341_s5] ss:$0 sm:$0xff] }
   0x7   :  { %241 = vmatpush3.bf16.msra.mxu0 %v248_v2 }
   0x8   :  { %v43_v5 = vld [vmem:[#allocation2 + $0x10] sm:$0xff]  ;;  %v41_v7 = vld [vmem:[#allocation2] sm:$0xff] }
   0x9   :  { %v44_v10 = vld [vmem:[#allocation2 + $0x18] sm:$0xff]  ;;  %v42_v13 = vld [vmem:[#allocation2 + $0x8] sm:$0xff] }
   0xa   :  { %243 = vmatmul.mubr.msk.bf16.vlgmr.msra.gmra.mxu0 %vm28_vm0, %v250_v4 }
  0xca   :  { %v244_v6 = vpop.f32.mrf.mxu0 }
  0xcb   :  { %v125_v8 = vadd.f32 %v244_v6, %v43_v5 }
  0xcc   :  { %v108_v9 = vpop.f32.mrf.mxu0 }
  0xcd   :  { %129 = vst.msk [vmem:[#allocation2 + $0x10] sm:$0xff] %vm28_vm0, %v125_v8  ;;  %v123_v11 = vadd.f32 %v108_v9, %v41_v7 }
  0xce   :  { %v245_v12 = vpop.f32.mrf.mxu0 }
  0xcf   :  { %127 = vst.msk [vmem:[#allocation2] sm:$0xff] %vm28_vm0, %v123_v11  ;;  %v126_v14 = vadd.f32 %v245_v12, %v44_v10 }
  0xd0   :  { %v111_v16 = vpop.f32.mrf.mxu0 }
  0xd1   :  { %130 = vst.msk [vmem:[#allocation2 + $0x18] sm:$0xff] %vm28_vm0, %v126_v14  ;;  %v124_v17 = vadd.f32 %v111_v16, %v42_v13 }
  0xd3   :  { %128 = vst.msk [vmem:[#allocation2 + $0x8] sm:$0xff] %vm28_vm0, %v124_v17 }
  0xd4   :  { %v136_v21 = vld [vmem:[#allocation2 + $0x10] sm:$0xff] }
  0xd5   :  { %v147_v22 = vadd.f32 %v214_v18, %v136_v21 }
  0xd6   :  { %v134_v25 = vld [vmem:[#allocation2] sm:$0xff] }
  0xd7   :  { %v159_v26 = vadd.f32 %v231_v20, %v147_v22  ;;  %v145_v27 = vadd.f32 %v214_v18, %v134_v25 }
  0xd8   :  { %v137_v30 = vld [vmem:[#allocation2 + $0x18] sm:$0xff] }
  0xd9   :  { %v170_v31 = vmul.f32 %v215_v24, %v159_v26  ;;  %v157_v32 = vadd.f32 %v227_v23, %v145_v27  ;;  %v148_v33 = vadd.f32 %v214_v18, %v137_v30 }
  0xda   :  { %v135_v35 = vld [vmem:[#allocation2 + $0x8] sm:$0xff] }
  0xdb   :  { %v181_v36 = vadd.f32 %v216_v29, %v170_v31  ;;  %v168_v37 = vmul.f32 %v215_v24, %v157_v32  ;;  %v160_v38 = vadd.f32 %v232_v28, %v148_v33  ;;  %v146_v39 = vadd.f32 %v214_v18, %v135_v35 }
  0xdd   :  { %v223_v40 = vpack.c.bf16 %v181_v36, %v181_v36  ;;  %v179_v41 = vadd.f32 %v216_v29, %v168_v37  ;;  %v171_v42 = vmul.f32 %v215_v24, %v160_v38  ;;  %v158_v43 = vadd.f32 %v228_v34, %v146_v39 }
  0xdf   :  { %202 = vst.msk [vmem:[%s342_s6 + $0x8] sm:$0xf] %vm199_vm1, %v223_v40  ;;  %v221_v44 = vpack.c.bf16 %v179_v41, %v179_v41  ;;  %v182_v45 = vadd.f32 %v216_v29, %v171_v42  ;;  %v169_v46 = vmul.f32 %v215_v24, %v158_v43 }
  0xe1   :  { %200 = vst.msk [vmem:[%s342_s6] sm:$0xf] %vm199_vm1, %v221_v44  ;;  %v224_v47 = vpack.c.bf16 %v182_v45, %v182_v45  ;;  %v180_v48 = vadd.f32 %v216_v29, %v169_v46 }
  0xe3   :  { %203 = vst.msk [vmem:[%s342_s6 + $0xc] sm:$0xf] %vm199_vm1, %v224_v47  ;;  %v222_v49 = vpack.c.bf16 %v180_v48, %v180_v48 }
  0xe5   :  { %201 = vst.msk [vmem:[%s342_s6 + $0x4] sm:$0xf] %vm199_vm1, %v222_v49 }

// kernel: patchtst_forward.16
= control target key start
LH: loop header
LB: loop body
LE: loop exit
PB: predicated region body
PF: predicated region fallthrough
CT: control target
= control target key end

     0   :  { %vm19_vm0 = vcmask 523264   ;;  %v326_v1 = vmov 0.0   ;;  %vm58_vm1 = vcmask 261120   ;;  %vm261_vm4 = vcmask 519168   ;;  %s418_s1 = inlined_call_operand.vmem [shape: bf16[32,64], index: 1, kind: input, shape index: {}]   ;;  %s419_s0 = inlined_call_operand.vmem [shape: bf16[32,32], index: 0, kind: input, shape index: {}]   ;;  %s420_s2 = inlined_call_operand.vmem [shape: f32[1,64], index: 2, kind: input, shape index: {}]   ;;  %s421_s3 = inlined_call_operand.vmem [shape: bf16[32,64], index: 3, kind: output, shape index: {}]  }
   0x1   :  { %v306_v0 = vld [vmem:[%s418_s1 + $0x8] sm:$0xff]   ;;  %22 = vst.msk [vmem:[#allocation2 + $0x10] sm:$0xff] %vm19_vm0, %v326_v1  ;;  %20 = vst.msk [vmem:[#allocation2] sm:$0xff] %vm19_vm0, %v326_v1  ;;  %v307_v2 = vld [vmem:[%s418_s1] sm:$0xff]  }
   0x2   :  { %21 = vst.msk [vmem:[#allocation2 + $0x8] sm:$0xff] %vm19_vm0, %v326_v1  ;;  %23 = vst.msk [vmem:[#allocation2 + $0x18] sm:$0xff] %vm19_vm0, %v326_v1  ;;  %297 = vmatprep.subr.bf16.mxu0 %v306_v0  ;;  %v308_v3 = vld [vmem:[%s419_s0] sm:$0xff]   ;;  %v309_v4 = vld [vmem:[%s419_s0 + $0x8] sm:$0xff]  }
   0x3   :  { %298 = vmatpush3.bf16.msra.mxu0 %v306_v0  ;;  %301 = vmatprep.mubr.msk.bf16.mxu0 %vm58_vm1, %v308_v3  ;;  %v276_v17 = vld [vmem:[%s420_s2] ss:$0 sm:$0xff] }
   0x4   :  { %299 = vmatprep.subr.bf16.mxu0 %v307_v2 }
   0x7   :  { %300 = vmatpush3.bf16.msra.mxu0 %v307_v2 }
   0x8   :  { %v34_v5 = vld [vmem:[#allocation2 + $0x10] sm:$0xff]  ;;  %v32_v7 = vld [vmem:[#allocation2] sm:$0xff] }
   0x9   :  { %v35_v10 = vld [vmem:[#allocation2 + $0x18] sm:$0xff]  ;;  %v33_v13 = vld [vmem:[#allocation2 + $0x8] sm:$0xff] }
   0xa   :  { %302 = vmatmul.mubr.msk.bf16.vlgmr.msra.gmra.mxu0 %vm58_vm1, %v309_v4 }
  0xca   :  { %v303_v6 = vpop.f32.mrf.mxu0 }
  0xcb   :  { %v116_v8 = vadd.f32 %v303_v6, %v34_v5 }
  0xcc   :  { %v99_v9 = vpop.f32.mrf.mxu0 }
  0xcd   :  { %121 = vst.msk [vmem:[#allocation2 + $0x10] sm:$0xff] %vm19_vm0, %v116_v8  ;;  %v114_v11 = vadd.f32 %v99_v9, %v32_v7 }
  0xce   :  { %v304_v12 = vpop.f32.mrf.mxu0 }
  0xcf   :  { %119 = vst.msk [vmem:[#allocation2] sm:$0xff] %vm19_vm0, %v114_v11  ;;  %v117_v14 = vadd.f32 %v304_v12, %v35_v10 }
  0xd0   :  { %v102_v15 = vpop.f32.mrf.mxu0 }
  0xd1   :  { %122 = vst.msk [vmem:[#allocation2 + $0x18] sm:$0xff] %vm19_vm0, %v117_v14  ;;  %v115_v16 = vadd.f32 %v102_v15, %v33_v13 }
  0xd3   :  { %120 = vst.msk [vmem:[#allocation2 + $0x8] sm:$0xff] %vm19_vm0, %v115_v16 }
  0xd4   :  { %v128_v18 = vld [vmem:[#allocation2 + $0x10] sm:$0xff] }
  0xd5   :  { %v370_v19 = vadd.f32 %v276_v17, %v128_v18 }
  0xd6   :  { %v126_v20 = vld [vmem:[#allocation2] sm:$0xff] }
  0xd7   :  { %v373_v21 = vmul.f32 0.70710677, %v370_v19  ;;  %v375_v22 = vadd.f32 %v276_v17, %v126_v20 }
  0xd8   :  { %v129_v23 = vld [vmem:[#allocation2 + $0x18] sm:$0xff] }
  0xd9   :  { %v147_v24 = vand.u32 2147483647, %v373_v21  ;;  %v379_v25 = vmul.f32 0.70710677, %v375_v22  ;;  %v381_v26 = vadd.f32 %v276_v17, %v129_v23  ;;  %vm223_vm2 = vcmp.lt.f32.partialorder %v373_v21, 0.0 }
  0xda   :  { %v127_v27 = vld [vmem:[#allocation2 + $0x8] sm:$0xff] }
  0xdb   :  { %v151_v28 = vmul.f32 0.3275911, %v147_v24  ;;  %v145_v29 = vand.u32 2147483647, %v379_v25  ;;  %v385_v30 = vmul.f32 0.70710677, %v381_v26  ;;  %v387_v31 = vadd.f32 %v276_v17, %v127_v27 }
  0xdc   :  { %v199_v42 = vsub.f32 0.0, %v147_v24  ;;  %vm221_vm3 = vcmp.lt.f32.partialorder %v379_v25, 0.0 }
  0xdd   :  { %v155_v32 = vadd.f32 1.0, %v151_v28  ;;  %v149_v33 = vmul.f32 0.3275911, %v145_v29  ;;  %v148_v34 = vand.u32 2147483647, %v385_v30  ;;  %v197_v43 = vsub.f32 0.0, %v145_v29 }
  0xde   :  { %v391_v35 = vmul.f32 0.70710677, %v387_v31  ;;  %v203_v44 = vmul.f32 %v199_v42, %v147_v24  ;;  %vm224_vm5 = vcmp.lt.f32.partialorder %v385_v30, 0.0  ;;  %v234_v30 = vmul.f32 0.5, %v387_v31 }
  0xdf   :  { %310 = vrcp.f32 %v155_v32  ;;  %v153_v36 = vadd.f32 1.0, %v149_v33  ;;  %v152_v37 = vmul.f32 0.3275911, %v148_v34  ;;  %v200_v45 = vsub.f32 0.0, %v148_v34 }
  0xe0   :  { %v146_v38 = vand.u32 2147483647, %v391_v35  ;;  %v201_v47 = vmul.f32 %v197_v43, %v145_v29  ;;  %v209_v49 = vmul.f32 1.442695, %v203_v44  ;;  %vm222_vm6 = vcmp.lt.f32.partialorder %v391_v35, 0.0 }
  0xe1   :  { %312 = vrcp.f32 %v153_v36  ;;  %v156_v39 = vadd.f32 1.0, %v152_v37  ;;  %v204_v51 = vmul.f32 %v200_v45, %v148_v34 }
  0xe2   :  { %v150_v40 = vmul.f32 0.3275911, %v146_v38  ;;  %v198_v50 = vsub.f32 0.0, %v146_v38  ;;  %v205_v55 = vmul.f32 1.442695, %v201_v47 }
  0xe3   :  { %314 = vrcp.f32 %v156_v39  ;;  %v211_v61 = vmul.f32 1.442695, %v204_v51 }
  0xe4   :  { %v154_v41 = vadd.f32 1.0, %v150_v40  ;;  %v202_v58 = vmul.f32 %v198_v50, %v146_v38 }
  0xe6   :  { %316 = vrcp.f32 %v154_v41  ;;  %v207_v4 = vmul.f32 1.442695, %v202_v58 }
  0xe7   :  { %318 = vpow2.f32 %v209_v49  ;;  %v235_v49 = vmul.f32 0.5, %v370_v19  ;;  %v236_v19 = vmul.f32 0.5, %v381_v26 }
  0xe8   :  { %320 = vpow2.f32 %v205_v55 }
  0xe9   :  { %322 = vpow2.f32 %v211_v61 }
  0xea   :  { %324 = vpow2.f32 %v207_v4 }
  0xec   :  { %v311_v46 = vpop.eup %310 }
  0xed   :  { %v163_v48 = vmul.f32 1.0614054, %v311_v46 }
  0xee   :  { %v313_v52 = vpop.eup %312 }
  0xef   :  { %v279_v53 = vadd.f32 -1.4531521, %v163_v48  ;;  %v161_v54 = vmul.f32 1.0614054, %v313_v52 }
  0xf0   :  { %v315_v56 = vpop.eup %314 }
  0xf1   :  { %v171_v57 = vmul.f32 %v311_v46, %v279_v53  ;;  %v277_v59 = vadd.f32 -1.4531521, %v161_v54  ;;  %v164_v60 = vmul.f32 1.0614054, %v315_v56 }
  0xf3   :  { %v175_v62 = vadd.f32 1.4214138, %v171_v57  ;;  %v317_v63 = vpop.eup %316  ;;  %v169_v0 = vmul.f32 %v313_v52, %v277_v59  ;;  %v280_v1 = vadd.f32 -1.4531521, %v164_v60  ;;  %v233_v57 = vmul.f32 0.5, %v375_v22 }
  0xf4   :  { %v162_v3 = vmul.f32 1.0614054, %v317_v63  ;;  %v319_v24 = vpop.eup %318 }
  0xf5   :  { %v179_v2 = vmul.f32 %v311_v46, %v175_v62  ;;  %v173_v5 = vadd.f32 1.4214138, %v169_v0  ;;  %v172_v6 = vmul.f32 %v315_v56, %v280_v1  ;;  %v321_v36 = vpop.eup %320 }
  0xf6   :  { %v278_v8 = vadd.f32 -1.4531521, %v162_v3  ;;  %v323_v41 = vpop.eup %322 }
  0xf7   :  { %v283_v7 = vadd.f32 -0.28449672, %v179_v2  ;;  %v177_v9 = vmul.f32 %v313_v52, %v173_v5  ;;  %v176_v10 = vadd.f32 1.4214138, %v172_v6  ;;  %v325_v48 = vpop.eup %324 }
  0xf8   :  { %v170_v12 = vmul.f32 %v317_v63, %v278_v8 }
  0xf9   :  { %v187_v11 = vmul.f32 %v311_v46, %v283_v7  ;;  %v281_v13 = vadd.f32 -0.28449672, %v177_v9  ;;  %v180_v14 = vmul.f32 %v315_v56, %v176_v10 }
  0xfa   :  { %v174_v16 = vadd.f32 1.4214138, %v170_v12 }
  0xfb   :  { %v191_v15 = vadd.f32 0.2548296, %v187_v11  ;;  %v185_v17 = vmul.f32 %v313_v52, %v281_v13  ;;  %v284_v18 = vadd.f32 -0.28449672, %v180_v14 }
  0xfc   :  { %v178_v23 = vmul.f32 %v317_v63, %v174_v16 }
  0xfd   :  { %v195_v20 = vmul.f32 %v311_v46, %v191_v15  ;;  %v189_v27 = vadd.f32 0.2548296, %v185_v17  ;;  %v188_v28 = vmul.f32 %v315_v56, %v284_v18 }
  0xfe   :  { %v282_v32 = vadd.f32 -0.28449672, %v178_v23 }
  0xff   :  { %v215_v29 = vmul.f32 %v319_v24, %v195_v20  ;;  %v193_v33 = vmul.f32 %v313_v52, %v189_v27  ;;  %v192_v34 = vadd.f32 0.2548296, %v188_v28 }
 0x100   :  { %v186_v38 = vmul.f32 %v317_v63, %v282_v32 }
 0x101   :  { %v219_v37 = vsub.f32 1.0, %v215_v29  ;;  %v213_v39 = vmul.f32 %v321_v36, %v193_v33  ;;  %v196_v40 = vmul.f32 %v315_v56, %v192_v34 }
 0x102   :  { %v190_v43 = vadd.f32 0.2548296, %v186_v38 }
 0x103   :  { %v227_v42 = vsub.f32 0.0, %v219_v37  ;;  %v217_v44 = vsub.f32 1.0, %v213_v39  ;;  %v216_v45 = vmul.f32 %v323_v41, %v196_v40 }
 0x104   :  { %v194_v47 = vmul.f32 %v317_v63, %v190_v43 }
 0x105   :  { %v231_v46 = vsel %vm223_vm2, %v227_v42, %v219_v37  ;;  %v225_v51 = vsub.f32 0.0, %v217_v44  ;;  %v220_v52 = vsub.f32 1.0, %v216_v45 }
 0x106   :  { %v239_v50 = vadd.f32 1.0, %v231_v46  ;;  %v214_v53 = vmul.f32 %v325_v48, %v194_v47 }
 0x107   :  { %v229_v55 = vsel %vm221_vm3, %v225_v51, %v217_v44  ;;  %v228_v56 = vsub.f32 0.0, %v220_v52 }
 0x108   :  { %v243_v54 = vmul.f32 %v239_v50, %v235_v49  ;;  %v237_v21 = vadd.f32 1.0, %v229_v55  ;;  %v218_v58 = vsub.f32 1.0, %v214_v53 }
 0x109   :  { %v232_v60 = vsel %vm224_vm5, %v228_v56, %v220_v52 }
 0x10a   :  { %v291_v59 = vpack.c.bf16 %v243_v54, %v243_v54  ;;  %v241_v61 = vmul.f32 %v237_v21, %v233_v57  ;;  %v240_v62 = vadd.f32 1.0, %v232_v60  ;;  %v226_v63 = vsub.f32 0.0, %v218_v58 }
 0x10c   :  { %264 = vst.msk [vmem:[%s421_s3 + $0x8] sm:$0xf] %vm261_vm4, %v291_v59  ;;  %v289_v25 = vpack.c.bf16 %v241_v61, %v241_v61  ;;  %v244_v22 = vmul.f32 %v240_v62, %v236_v19  ;;  %v230_v0 = vsel %vm222_vm6, %v226_v63, %v218_v58 }
 0x10d   :  { %v238_v1 = vadd.f32 1.0, %v230_v0 }
 0x10e   :  { %262 = vst.msk [vmem:[%s421_s3] sm:$0xf] %vm261_vm4, %v289_v25  ;;  %v292_v26 = vpack.c.bf16 %v244_v22, %v244_v22 }
 0x10f   :  { %v242_v2 = vmul.f32 %v238_v1, %v234_v30 }
 0x110   :  { %265 = vst.msk [vmem:[%s421_s3 + $0xc] sm:$0xf] %vm261_vm4, %v292_v26 }
 0x111   :  { %v290_v3 = vpack.c.bf16 %v242_v2, %v242_v2 }
 0x113   :  { %263 = vst.msk [vmem:[%s421_s3 + $0x4] sm:$0xf] %vm261_vm4, %v290_v3 }

// kernel: patchtst_forward.14
= control target key start
LH: loop header
LB: loop body
LE: loop exit
PB: predicated region body
PF: predicated region fallthrough
CT: control target
= control target key end

     0   :  { %s2695_s9 = smov 0   ;;  %s3147_s0 = inlined_call_operand.vmem [shape: bf16[8,4,96], index: 0, kind: input, shape index: {}]   ;;  %s3148_s1 = inlined_call_operand.vmem [shape: bf16[8,4,32], index: 1, kind: output, shape index: {0}]   ;;  %s3149_s2 = inlined_call_operand.vmem [shape: bf16[8,4,16], index: 2, kind: output, shape index: {1}]  }
   0x1 LB: > { %s2201_s10 = sadd.s32 4294967295, %s2659_s9   ;;  %p2205_p0 = scmp.ge.s32.totalorder %s2659_s9, 1  ;;  %s2659_s9 = sphi %s2695_s9, %s13_s9  }
   0x2   : > { %p116_p1 = scmp.lt.s32.totalorder %s2659_s9, 3 }
   0x4   : > { %p117_p2 = pnand %p2205_p0, %p116_p1 }
   0x5   : > { %s2206_s11 = sshll.u32 (!%p117_p2), %s2201_s10, 2  ;;  %s2664_s16 = smov (!%p117_p2), 96  }
   0x6   : > { %120 = sbr.rel (%p117_p2) target bundleno = 2702 (0xa8e), region = 24  ;;  %p144_p3 = scmp.lt.s32.totalorder (!%p117_p2), %s2206_s11, 7 }
   0x7   : > { %s2665_s17 = smov (!%p117_p2), 64   ;;  %s2666_s18 = smov (!%p117_p2), 88  }
   0x8   : > { %s2667_s19 = smov (!%p117_p2), 120   ;;  %s2668_s20 = smov (!%p117_p2), 56  }
   0x9   : > { %s2669_s21 = smov (!%p117_p2), 80   ;;  %s2670_s22 = smov (!%p117_p2), 112  }
   0xa   : > { %s2671_s23 = smov (!%p117_p2), 48   ;;  %s2672_s24 = smov (!%p117_p2), 72  }
   0xb   : > { %v170_v0 = vlaneseq  ;;  %v2661_v1 = vmov 1983009808   ;;  %v2662_v3 = vmov 0.0   ;;  %s3151_s11 = smov (!%p144_p3, %s2206_s11), 7  ;;  %vm2663_vm0 = vmmov 0   ;;  %s2673_s25 = smov 104  }
   0xc   : > { %v168_v2 = vunpack.c.l.s4 %v2661_v1  ;;  %2310 = vmatprep.subr.bf16.mxu0 %v2662_v3  ;;  %2316 = vmatprep.subr.bf16.mxu1 %v2662_v3  ;;  %s2709_s12 = sshll.u32 %s3151_s11, 1  ;;  %vm176_vm1 = vcmask 64512   ;;  %vm395_vm2 = vcmask 27648   ;;  %vm450_vm3 = vcmask 1041408   ;;  %s2674_s26 = smov 40  }
   0xd   : > { %v171_v4 = vshrl.u32 %v170_v0, 7  ;;  %2312 = vmatprep.mubr.msk.bf16.mxu0 %vm2663_vm0, %v2662_v3  ;;  %2318 = vmatprep.mubr.msk.bf16.mxu1 %vm2663_vm0, %v2662_v3  ;;  %s147_s15 = scalar_lea.vmem %s3147_s0, %s2709_s12  ;;  %vm446_vm4 = vcmask 31744   ;;  %s2675_s27 = smov 4   ;;  %vm2022_vm5 = vcmask 130048   ;;  %vm2097_vm6 = vcmask 97280  }
   0xe   : > { %v169_v5 = vunpack.c.0.s8 %v168_v2  ;;  %v162_v7 = vld [vmem:[%s147_s15] sm:$0x3]  ;;  %v163_v8 = vld [vmem:[%s147_s15 + $0x2] sm:$0x3]  ;;  %v164_v9 = vld [vmem:[%s147_s15 + $0x4] sm:$0x3]  ;;  %s159_s5 = scalar_lea.vmem %s3149_s2, %s2709_s12  ;;  %s153_s10 = scalar_lea.vmem %s3148_s1, %s2709_s12 }
   0xf   : > { %v165_v12 = vld [vmem:[%s147_s15 + $0x6] sm:$0x3]  ;;  %s2676_s28 = smov 8   ;;  %s2677_s29 = smov 16   ;;  %vm2106_vm7 = vcmask 123904   ;;  %vm2027_vm8 = vcmask 195584  }
  0x10   : > { %v172_v6 = vsub.s32 %v169_v5, %v171_v4  ;;  %s2678_s30 = smov 12   ;;  %s2679_s6 = smov 24   ;;  %vm2036_vm9 = vcmask 254976  }
  0x12   : > { %v2715_v10 = vrot.slane %v162_v7, %v172_v6  ;;  %v2717_v11 = vrot.slane %v164_v9, %v172_v6  ;;  %v2720_v13 = vrot.slane %v163_v8, %v172_v6  ;;  %v2723_v14 = vrot.slane %v165_v12, %v172_v6 }
  0x14   : > { %174 = vrot.lane.b32.xlu0 %v2715_v10, %s2664_s16  ;;  %287 = vrot.lane.b32.xlu1 %v2717_v11, %s2664_s16 }
  0x18   : > { %231 = vrot.lane.b32.xlu0 %v2720_v13, %s2664_s16  ;;  %343 = vrot.lane.b32.xlu1 %v2723_v14, %s2664_s16 }
  0x86   : > { %v175_v15 = vpop.permute.xlu0 %174  ;;  %v288_v17 = vpop.permute.xlu1 %287 }
  0x87   : > { %v181_v16 = vsel %vm176_vm1, %v175_v15, 0  ;;  %v293_v20 = vsel %vm176_vm1, %v288_v17, 0 }
  0x88   : > { %2311 = vmatpush3.bf16.xpose.msra.mxu0 %v181_v16 }
  0x89   : > { %2322 = vmatprep.subr.bf16.mxu0 %v2662_v3 }
  0x8a   : > { %v232_v18 = vpop.permute.xlu0 %231  ;;  %v344_v21 = vpop.permute.xlu1 %343 }
  0x8b   : > { %v237_v19 = vsel %vm176_vm1, %v232_v18, 0  ;;  %v349_v22 = vsel %vm176_vm1, %v344_v21, 0 }
  0x8c   : > { %2317 = vmatpush3.bf16.xpose.msra.mxu1 %v237_v19 }
  0x8d   : > { %2328 = vmatprep.subr.bf16.mxu1 %v2662_v3 }
  0x8f   : > { %2313 = vmatmul.mubr.msk.bf16.vlgmr.msra.gmra.mxu0 %vm176_vm1, %v162_v7 }
  0x90   : > { %2323 = vmatpush3.bf16.xpose.msra.mxu0 %v293_v20  ;;  %2324 = vmatprep.mubr.msk.bf16.mxu0 %vm2663_vm0, %v2662_v3 }
  0x91   : > { %2334 = vmatprep.subr.bf16.mxu0 %v2662_v3 }
  0x93   : > { %2319 = vmatmul.mubr.msk.bf16.vlgmr.msra.gmra.mxu1 %vm176_vm1, %v163_v8 }
  0x94   : > { %2329 = vmatpush3.bf16.xpose.msra.mxu1 %v349_v22  ;;  %2330 = vmatprep.mubr.msk.bf16.mxu1 %vm2663_vm0, %v2662_v3 }
  0x95   : > { %2340 = vmatprep.subr.bf16.mxu1 %v2662_v3 }
  0x97   : > { %2325 = vmatmul.mubr.msk.bf16.vlgmr.msra.gmra.mxu0 %vm176_vm1, %v164_v9 }
  0x98   : > { %2336 = vmatprep.mubr.msk.bf16.mxu0 %vm2663_vm0, %v2662_v3 }
  0x9b   : > { %2331 = vmatmul.mubr.msk.bf16.vlgmr.msra.gmra.mxu1 %vm176_vm1, %v165_v12 }
  0x9c   : > { %2342 = vmatprep.mubr.msk.bf16.mxu1 %vm2663_vm0, %v2662_v3 }
 0x14f   : > { %v217_v23 = vpop.f32.mrf.mxu0 }
 0x150   : > { %v2747_v24 = vmul.f32 0.35355338, %v217_v23 }
 0x151   : > { %v2314_v25 = vpop.f32.mrf.mxu0 }
 0x152   : > { %v396_v26 = vsel %vm395_vm2, %v2747_v24, -inf }
 0x153   : > { %397 = vmax.xlane.f32.xlu0 %v396_v26  ;;  %v220_v27 = vpop.f32.mrf.mxu0  ;;  %v273_v28 = vpop.f32.mrf.mxu1 }
 0x154   : > { %v2751_v29 = vmul.f32 0.35355338, %v273_v28 }
 0x155   : > { %v2315_v30 = vpop.f32.mrf.mxu0  ;;  %v2320_v31 = vpop.f32.mrf.mxu1 }
 0x156   : > { %v399_v32 = vsel %vm395_vm2, %v2751_v29, -inf }
 0x157   : > { %v329_v33 = vpop.f32.mrf.mxu0  ;;  %400 = vmax.xlane.f32.xlu1 %v399_v32  ;;  %v276_v34 = vpop.f32.mrf.mxu1 }
 0x158   : > { %v2755_v35 = vmul.f32 0.35355338, %v329_v33 }
 0x159   : > { %v2321_v36 = vpop.f32.mrf.mxu1  ;;  %v2326_v37 = vpop.f32.mrf.mxu0 }
 0x15a   : > { %v402_v38 = vsel %vm395_vm2, %v2755_v35, -inf }
 0x15b   : > { %403 = vmax.xlane.f32.xlu0 %v402_v38  ;;  %v385_v39 = vpop.f32.mrf.mxu1  ;;  %v332_v40 = vpop.f32.mrf.mxu0 }
 0x15c   : > { %v2759_v41 = vmul.f32 0.35355338, %v385_v39 }
 0x15d   : > { %v2327_v42 = vpop.f32.mrf.mxu0  ;;  %v2332_v43 = vpop.f32.mrf.mxu1 }
 0x15e   : > { %v405_v44 = vsel %vm395_vm2, %v2759_v41, -inf }
 0x15f   : > { %406 = vmax.xlane.f32.xlu0 %v405_v44  ;;  %v388_v45 = vpop.f32.mrf.mxu1 }
 0x161   : > { %v2333_v46 = vpop.f32.mrf.mxu1 }
 0x168   : > { %444 = vrot.lane.b32.xlu1 %v2715_v10, %s2665_s17 }
 0x1dc   : > { %v398_v47 = vpop.xlane.xlu0 %397 }
 0x1dd   : > { %v408_v48 = vsub.f32 %v2747_v24, %v398_v47 }
 0x1df   : > { %v412_v49 = vmul.f32 1.442695, %v408_v48 }
 0x1e0   : > { %v401_v50 = vpop.xlane.xlu1 %400 }
 0x1e1   : > { %2589 = vpow2.f32 %v412_v49  ;;  %v409_v51 = vsub.f32 %v2751_v29, %v401_v50 }
 0x1e3   : > { %v414_v52 = vmul.f32 1.442695, %v409_v51 }
 0x1e4   : > { %v445_v53 = vpop.permute.xlu1 %444  ;;  %v404_v59 = vpop.xlane.xlu0 %403 }
 0x1e5   : > { %2591 = vpow2.f32 %v414_v52  ;;  %v452_v54 = vsel %vm450_vm3, %v445_v53, 0  ;;  %v410_v61 = vsub.f32 %v2755_v35, %v404_v59 }
 0x1e6   : > { %2335 = vmatpush3.bf16.msra.mxu0 %v452_v54 }
 0x1e7   : > { %2346 = vmatprep.subr.bf16.mxu0 %v2662_v3  ;;  %v416_v63 = vmul.f32 1.442695, %v410_v61 }
 0x1e8   : > { %v407_v60 = vpop.xlane.xlu0 %406 }
 0x1e9   : > { %v411_v62 = vsub.f32 %v2759_v41, %v407_v60  ;;  %2593 = vpow2.f32 %v416_v63 }
 0x1eb   : > { %v418_v0 = vmul.f32 1.442695, %v411_v62 }
 0x1ed   : > { %2595 = vpow2.f32 %v418_v0 }
 0x1ee   : > { %v2590_v55 = vpop.eup %2589 }
 0x1ef   : > { %v420_v56 = vsel %vm395_vm2, %v2590_v55, 0.0 }
 0x1f0   : > { %421 = vadd.xlane.f32.xlu1 %v420_v56 }
 0x1f2   : > { %v2592_v57 = vpop.eup %2591 }
 0x1f3   : > { %v423_v58 = vsel %vm395_vm2, %v2592_v57, 0.0 }
 0x1f4   : > { %424 = vadd.xlane.f32.xlu0 %v423_v58 }
 0x1f6   : > { %v2594_v1 = vpop.eup %2593 }
 0x1f7   : > { %v426_v4 = vsel %vm395_vm2, %v2594_v1, 0.0 }
 0x1fa   : > { %v2596_v2 = vpop.eup %2595 }
 0x1fb   : > { %v429_v5 = vsel %vm395_vm2, %v2596_v2, 0.0 }
 0x201   : > { %542 = vrot.lane.b32.xlu1 %v2717_v11, %s2665_s17 }
 0x205   : > { %590 = vrot.lane.b32.xlu1 %v2723_v14, %s2665_s17 }
 0x20a   : > { %494 = vrot.lane.b32.xlu0 %v2720_v13, %s2665_s17 }
 0x229   : > { %427 = vadd.xlane.f32.xlu1 %v426_v4  ;;  %430 = vadd.xlane.f32.xlu0 %v429_v5 }
 0x23a   : > { %690 = vrot.lane.b32.xlu1 %v2720_v13, %s2666_s18 }
 0x23e   : > { %740 = vrot.lane.b32.xlu1 %v2717_v11, %s2666_s18 }
 0x23f   : > { %640 = vrot.lane.b32.xlu0 %v2715_v10, %s2666_s18 }
 0x242   : > { %790 = vrot.lane.b32.xlu1 %v2723_v14, %s2666_s18 }
 0x243   : > { %638 = vrot.lane.b32.xlu0 %v2715_v10, %s2667_s19 }
 0x246   : > { %788 = vrot.lane.b32.xlu1 %v2723_v14, %s2667_s19 }
 0x247   : > { %688 = vrot.lane.b32.xlu0 %v2720_v13, %s2667_s19 }
 0x24b   : > { %738 = vrot.lane.b32.xlu0 %v2717_v11, %s2667_s19 }
 0x279   : > { %v422_v6 = vpop.xlane.xlu1 %421 }
 0x27a   : > { %2597 = vrcp.f32 %v422_v6 }
 0x27d   : > { %v425_v7 = vpop.xlane.xlu0 %424  ;;  %v543_v15 = vpop.permute.xlu1 %542 }
 0x27e   : > { %2599 = vrcp.f32 %v425_v7  ;;  %v548_v19 = vsel %vm450_vm3, %v543_v15, 0 }
 0x281   : > { %v495_v8 = vpop.permute.xlu0 %494  ;;  %v591_v21 = vpop.permute.xlu1 %590 }
 0x282   : > { %v500_v9 = vsel %vm450_vm3, %v495_v8, 0  ;;  %v596_v23 = vsel %vm450_vm3, %v591_v21, 0 }
 0x283   : > { %2341 = vmatpush3.bf16.msra.mxu1 %v500_v9 }
 0x284   : > { %2352 = vmatprep.subr.bf16.mxu1 %v2662_v3 }
 0x287   : > { %v2598_v12 = vpop.eup %2597 }
 0x288   : > { %v436_v16 = vmul.f32 %v2598_v12, %v2590_v55 }
 0x28a   : > { %v440_v17 = vpack.c.bf16 %v436_v16, %v436_v16 }
 0x28b   : > { %v2600_v18 = vpop.eup %2599 }
 0x28c   : > { %2337 = vmatmul.mubr.msk.bf16.vlgmr.msra.gmra.mxu0 %vm446_vm4, %v440_v17  ;;  %v437_v20 = vmul.f32 %v2600_v18, %v2592_v57 }
 0x28d   : > { %2347 = vmatpush3.bf16.msra.mxu0 %v548_v19  ;;  %2348 = vmatprep.mubr.msk.bf16.mxu0 %vm2663_vm0, %v2662_v3 }
 0x28e   : > { %v441_v22 = vpack.c.bf16 %v437_v20, %v437_v20  ;;  %2358 = vmatprep.subr.bf16.mxu0 %v2662_v3 }
 0x290   : > { %2343 = vmatmul.mubr.msk.bf16.vlgmr.msra.gmra.mxu1 %vm446_vm4, %v441_v22 }
 0x291   : > { %2353 = vmatpush3.bf16.msra.mxu1 %v596_v23  ;;  %2354 = vmatprep.mubr.msk.bf16.mxu1 %vm2663_vm0, %v2662_v3 }
 0x292   : > { %2364 = vmatprep.subr.bf16.mxu1 %v2662_v3 }
 0x2b2   : > { %v428_v25 = vpop.xlane.xlu1 %427  ;;  %v431_v26 = vpop.xlane.xlu0 %430 }
 0x2b3   : > { %2601 = vrcp.f32 %v428_v25 }
 0x2b4   : > { %2603 = vrcp.f32 %v431_v26 }
 0x2b6   : > { %v691_v27 = vpop.permute.xlu1 %690  ;;  %v641_v28 = vpop.permute.xlu0 %640 }
 0x2b7   : > { %v646_v34 = vsel %vm176_vm1, %v641_v28, 0  ;;  %v696_v38 = vsel %vm176_vm1, %v691_v27, 0 }
 0x2ba   : > { %v741_v37 = vpop.permute.xlu1 %740  ;;  %v639_v40 = vpop.permute.xlu0 %638 }
 0x2bb   : > { %v746_v43 = vsel %vm176_vm1, %v741_v37, 0 }
 0x2be   : > { %v791_v42 = vpop.permute.xlu1 %790  ;;  %v689_v44 = vpop.permute.xlu0 %688 }
 0x2bf   : > { %v796_v45 = vsel %vm176_vm1, %v791_v42, 0 }
 0x2c0   : > { %v2602_v30 = vpop.eup %2601 }
 0x2c1   : > { %v2604_v31 = vpop.eup %2603  ;;  %v438_v32 = vmul.f32 %v2602_v30, %v2594_v1 }
 0x2c2   : > { %v439_v33 = vmul.f32 %v2604_v31, %v2596_v2  ;;  %v739_v46 = vpop.permute.xlu0 %738  ;;  %v789_v47 = vpop.permute.xlu1 %788 }
 0x2c3   : > { %v442_v36 = vpack.c.bf16 %v438_v32, %v438_v32 }
 0x2c4   : > { %v443_v39 = vpack.c.bf16 %v439_v33, %v439_v33 }
 0x2c5   : > { %2349 = vmatmul.mubr.msk.bf16.vlgmr.msra.gmra.mxu0 %vm446_vm4, %v442_v36 }
 0x2c6   : > { %2355 = vmatmul.mubr.msk.bf16.vlgmr.msra.gmra.mxu1 %vm446_vm4, %v443_v39  ;;  %2359 = vmatpush3.bf16.xpose.msra.mxu0 %v646_v34 }
 0x2c7   : > { %2365 = vmatpush3.bf16.xpose.msra.mxu1 %v696_v38  ;;  %2360 = vmatprep.mubr.msk.bf16.mxu0 %vm2663_vm0, %v2662_v3 }
 0x2c8   : > { %2366 = vmatprep.mubr.msk.bf16.mxu1 %vm2663_vm0, %v2662_v3  ;;  %2370 = vmatprep.subr.bf16.mxu0 %v2662_v3 }
 0x2c9   : > { %2376 = vmatprep.subr.bf16.mxu1 %v2662_v3 }
 0x2cd   : > { %2361 = vmatmul.mubr.msk.bf16.vlgmr.msra.gmra.mxu0 %vm176_vm1, %v639_v40 }
 0x2ce   : > { %2367 = vmatmul.mubr.msk.bf16.vlgmr.msra.gmra.mxu1 %vm176_vm1, %v689_v44  ;;  %2371 = vmatpush3.bf16.xpose.msra.mxu0 %v746_v43 }
 0x2cf   : > { %2377 = vmatpush3.bf16.xpose.msra.mxu1 %v796_v45  ;;  %2372 = vmatprep.mubr.msk.bf16.mxu0 %vm2663_vm0, %v2662_v3 }
 0x2d0   : > { %2378 = vmatprep.mubr.msk.bf16.mxu1 %vm2663_vm0, %v2662_v3  ;;  %2382 = vmatprep.subr.bf16.mxu0 %v2662_v3 }
 0x2d1   : > { %2388 = vmatprep.subr.bf16.mxu1 %v2662_v3 }
 0x2d5   : > { %2373 = vmatmul.mubr.msk.bf16.vlgmr.msra.gmra.mxu0 %vm176_vm1, %v739_v46 }
 0x2d6   : > { %2379 = vmatmul.mubr.msk.bf16.vlgmr.msra.gmra.mxu1 %vm176_vm1, %v789_v47  ;;  %2384 = vmatprep.mubr.msk.bf16.mxu0 %vm2663_vm0, %v2662_v3 }
 0x2d7   : > { %2390 = vmatprep.mubr.msk.bf16.mxu1 %vm2663_vm0, %v2662_v3 }
 0x34c   : > { %v2823_v48 = vpop.f32.mrf.mxu0 }
 0x34e   : > { %v2338_v49 = vpop.f32.mrf.mxu0 }
 0x350   : > { %v491_v50 = vpop.f32.mrf.mxu0  ;;  %v2825_v51 = vpop.f32.mrf.mxu1 }
 0x352   : > { %v2339_v52 = vpop.f32.mrf.mxu0  ;;  %v2344_v53 = vpop.f32.mrf.mxu1 }
 0x354   : > { %v539_v54 = vpop.f32.mrf.mxu1 }
 0x356   : > { %v2345_v55 = vpop.f32.mrf.mxu1 }
 0x385   : > { %v2827_v56 = vpop.f32.mrf.mxu0 }
 0x386   : > { %v2829_v57 = vpop.f32.mrf.mxu1 }
 0x387   : > { %v2350_v58 = vpop.f32.mrf.mxu0 }
 0x388   : > { %v2356_v59 = vpop.f32.mrf.mxu1 }
 0x389   : > { %v587_v60 = vpop.f32.mrf.mxu0 }
 0x38a   : > { %v635_v61 = vpop.f32.mrf.mxu1 }
 0x38b   : > { %v2351_v62 = vpop.f32.mrf.mxu0 }
 0x38c   : > { %v2357_v63 = vpop.f32.mrf.mxu1 }
 0x38d   : > { %v682_v0 = vpop.f32.mrf.mxu0 }
 0x38e   : > { %v2831_v1 = vmul.f32 0.35355338, %v682_v0  ;;  %v732_v2 = vpop.f32.mrf.mxu1 }
 0x38f   : > { %v2833_v4 = vmul.f32 0.35355338, %v732_v2  ;;  %v2362_v5 = vpop.f32.mrf.mxu0 }
 0x390   : > { %v842_v6 = vsel %vm395_vm2, %v2831_v1, -inf  ;;  %v2368_v7 = vpop.f32.mrf.mxu1 }
 0x391   : > { %843 = vmax.xlane.f32.xlu0 %v842_v6  ;;  %v685_v8 = vpop.f32.mrf.mxu0  ;;  %v845_v9 = vsel %vm395_vm2, %v2833_v4, -inf }
 0x392   : > { %846 = vmax.xlane.f32.xlu1 %v845_v9  ;;  %v735_v12 = vpop.f32.mrf.mxu1 }
 0x393   : > { %v2363_v15 = vpop.f32.mrf.mxu0 }
 0x394   : > { %v2369_v16 = vpop.f32.mrf.mxu1 }
 0x395   : > { %v782_v17 = vpop.f32.mrf.mxu0 }
 0x396   : > { %v2839_v18 = vmul.f32 0.35355338, %v782_v17  ;;  %v832_v19 = vpop.f32.mrf.mxu1 }
 0x397   : > { %v2841_v20 = vmul.f32 0.35355338, %v832_v19  ;;  %v2374_v21 = vpop.f32.mrf.mxu0 }
 0x398   : > { %v848_v22 = vsel %vm395_vm2, %v2839_v18, -inf  ;;  %v2380_v23 = vpop.f32.mrf.mxu1 }
 0x399   : > { %849 = vmax.xlane.f32.xlu0 %v848_v22  ;;  %v785_v25 = vpop.f32.mrf.mxu0  ;;  %v851_v26 = vsel %vm395_vm2, %v2841_v20, -inf }
 0x39a   : > { %v835_v27 = vpop.f32.mrf.mxu1 }
 0x39b   : > { %v2375_v28 = vpop.f32.mrf.mxu0 }
 0x39c   : > { %v2381_v30 = vpop.f32.mrf.mxu1 }
 0x39d   : > { %852 = vmax.xlane.f32.xlu0 %v851_v26 }
 0x3a3   : > { %890 = vrot.lane.b32.xlu1 %v2715_v10, %s2668_s20 }
 0x41a   : > { %v844_v31 = vpop.xlane.xlu0 %843 }
 0x41b   : > { %v847_v32 = vpop.xlane.xlu1 %846  ;;  %v854_v33 = vsub.f32 %v2831_v1, %v844_v31 }
 0x41c   : > { %v855_v34 = vsub.f32 %v2833_v4, %v847_v32 }
 0x41d   : > { %v858_v36 = vmul.f32 1.442695, %v854_v33 }
 0x41e   : > { %v860_v37 = vmul.f32 1.442695, %v855_v34 }
 0x41f   : > { %2605 = vpow2.f32 %v858_v36  ;;  %v891_v38 = vpop.permute.xlu1 %890 }
 0x420   : > { %2607 = vpow2.f32 %v860_v37  ;;  %v896_v39 = vsel %vm450_vm3, %v891_v38, 0 }
 0x421   : > { %2383 = vmatpush3.bf16.msra.mxu0 %v896_v39 }
 0x422   : > { %2394 = vmatprep.subr.bf16.mxu0 %v2662_v3  ;;  %v850_v45 = vpop.xlane.xlu0 %849 }
 0x423   : > { %v856_v49 = vsub.f32 %v2839_v18, %v850_v45 }
 0x425   : > { %v862_v52 = vmul.f32 1.442695, %v856_v49 }
 0x426   : > { %v853_v46 = vpop.xlane.xlu0 %852 }
 0x427   : > { %v857_v47 = vsub.f32 %v2841_v20, %v853_v46 }
 0x429   : > { %v864_v50 = vmul.f32 1.442695, %v857_v47 }
 0x42b   : > { %2609 = vpow2.f32 %v864_v50 }
 0x42c   : > { %v2606_v40 = vpop.eup %2605  ;;  %2611 = vpow2.f32 %v862_v52 }
 0x42d   : > { %v2608_v42 = vpop.eup %2607  ;;  %v866_v43 = vsel %vm395_vm2, %v2606_v40, 0.0 }
 0x42e   : > { %v869_v44 = vsel %vm395_vm2, %v2608_v42, 0.0  ;;  %867 = vadd.xlane.f32.xlu1 %v866_v43 }
 0x42f   : > { %870 = vadd.xlane.f32.xlu0 %v869_v44 }
 0x438   : > { %v2610_v53 = vpop.eup %2609 }
 0x439   : > { %v2612_v54 = vpop.eup %2611  ;;  %v875_v55 = vsel %vm395_vm2, %v2610_v53, 0.0 }
 0x43a   : > { %v872_v58 = vsel %vm395_vm2, %v2612_v54, 0.0 }
 0x43f   : > { %986 = vrot.lane.b32.xlu1 %v2717_v11, %s2668_s20 }
 0x443   : > { %1034 = vrot.lane.b32.xlu1 %v2723_v14, %s2668_s20 }
 0x445   : > { %938 = vrot.lane.b32.xlu0 %v2720_v13, %s2668_s20 }
 0x464   : > { %876 = vadd.xlane.f32.xlu0 %v875_v55 }
 0x467   : > { %873 = vadd.xlane.f32.xlu1 %v872_v58 }
 0x478   : > { %1134 = vrot.lane.b32.xlu1 %v2720_v13, %s2669_s21 }
 0x47a   : > { %1084 = vrot.lane.b32.xlu0 %v2715_v10, %s2669_s21 }
 0x47c   : > { %1184 = vrot.lane.b32.xlu1 %v2717_v11, %s2669_s21 }
 0x47e   : > { %1082 = vrot.lane.b32.xlu0 %v2715_v10, %s2670_s22 }
 0x480   : > { %1234 = vrot.lane.b32.xlu1 %v2723_v14, %s2669_s21 }
 0x482   : > { %1132 = vrot.lane.b32.xlu0 %v2720_v13, %s2670_s22 }
 0x484   : > { %1232 = vrot.lane.b32.xlu1 %v2723_v14, %s2670_s22 }
 0x486   : > { %1182 = vrot.lane.b32.xlu0 %v2717_v11, %s2670_s22 }
 0x4b7   : > { %v868_v59 = vpop.xlane.xlu1 %867 }
 0x4b8   : > { %2613 = vrcp.f32 %v868_v59  ;;  %v871_v60 = vpop.xlane.xlu0 %870 }
 0x4b9   : > { %2615 = vrcp.f32 %v871_v60 }
 0x4bb   : > { %v987_v63 = vpop.permute.xlu1 %986 }
 0x4bc   : > { %v939_v61 = vpop.permute.xlu0 %938  ;;  %v992_v12 = vsel %vm450_vm3, %v987_v63, 0 }
 0x4bd   : > { %v944_v62 = vsel %vm450_vm3, %v939_v61, 0 }
 0x4be   : > { %2389 = vmatpush3.bf16.msra.mxu1 %v944_v62 }
 0x4bf   : > { %2400 = vmatprep.subr.bf16.mxu1 %v2662_v3  ;;  %v1035_v7 = vpop.permute.xlu1 %1034 }
 0x4c0   : > { %v1040_v15 = vsel %vm450_vm3, %v1035_v7, 0 }
 0x4c5   : > { %v2614_v0 = vpop.eup %2613 }
 0x4c6   : > { %v2616_v2 = vpop.eup %2615  ;;  %v882_v5 = vmul.f32 %v2614_v0, %v2606_v40 }
 0x4c7   : > { %v883_v6 = vmul.f32 %v2616_v2, %v2608_v42 }
 0x4c8   : > { %v886_v8 = vpack.c.bf16 %v882_v5, %v882_v5 }
 0x4c9   : > { %v887_v9 = vpack.c.bf16 %v883_v6, %v883_v6 }
 0x4ca   : > { %2385 = vmatmul.mubr.msk.bf16.vlgmr.msra.gmra.mxu0 %vm446_vm4, %v886_v8 }
 0x4cb   : > { %2391 = vmatmul.mubr.msk.bf16.vlgmr.msra.gmra.mxu1 %vm446_vm4, %v887_v9  ;;  %2395 = vmatpush3.bf16.msra.mxu0 %v992_v12 }
 0x4cc   : > { %2401 = vmatpush3.bf16.msra.mxu1 %v1040_v15  ;;  %2402 = vmatprep.mubr.msk.bf16.mxu1 %vm2663_vm0, %v2662_v3 }
 0x4cd   : > { %2412 = vmatprep.subr.bf16.mxu1 %v2662_v3  ;;  %2396 = vmatprep.mubr.msk.bf16.mxu0 %vm2663_vm0, %v2662_v3 }
 0x4ce   : > { %2406 = vmatprep.subr.bf16.mxu0 %v2662_v3 }
 0x4ed   : > { %v877_v16 = vpop.xlane.xlu0 %876 }
 0x4ee   : > { %2617 = vrcp.f32 %v877_v16 }
 0x4f0   : > { %v874_v17 = vpop.xlane.xlu1 %873 }
 0x4f1   : > { %2619 = vrcp.f32 %v874_v17  ;;  %v1085_v21 = vpop.permute.xlu0 %1084 }
 0x4f2   : > { %v1090_v32 = vsel %vm176_vm1, %v1085_v21, 0 }
 0x4f4   : > { %v1135_v19 = vpop.permute.xlu1 %1134 }
 0x4f5   : > { %v1140_v27 = vsel %vm176_vm1, %v1135_v19, 0  ;;  %v1083_v30 = vpop.permute.xlu0 %1082 }
 0x4f8   : > { %v1185_v25 = vpop.permute.xlu1 %1184 }
 0x4f9   : > { %v1133_v36 = vpop.permute.xlu0 %1132  ;;  %v1190_v38 = vsel %vm176_vm1, %v1185_v25, 0 }
 0x4fb   : > { %v2618_v22 = vpop.eup %2617 }
 0x4fc   : > { %v885_v23 = vmul.f32 %v2618_v22, %v2610_v53  ;;  %v1235_v34 = vpop.permute.xlu1 %1234 }
 0x4fd   : > { %v1240_v37 = vsel %vm176_vm1, %v1235_v34, 0  ;;  %v1183_v40 = vpop.permute.xlu0 %1182 }
 0x4fe   : > { %v2620_v26 = vpop.eup %2619  ;;  %v889_v28 = vpack.c.bf16 %v885_v23, %v885_v23 }
 0x4ff   : > { %v884_v31 = vmul.f32 %v2620_v26, %v2612_v54 }
 0x500   : > { %2403 = vmatmul.mubr.msk.bf16.vlgmr.msra.gmra.mxu1 %vm446_vm4, %v889_v28  ;;  %v1233_v39 = vpop.permute.xlu1 %1232 }
 0x501   : > { %2413 = vmatpush3.bf16.xpose.msra.mxu1 %v1140_v27  ;;  %v888_v33 = vpack.c.bf16 %v884_v31, %v884_v31  ;;  %2414 = vmatprep.mubr.msk.bf16.mxu1 %vm2663_vm0, %v2662_v3 }
 0x502   : > { %2424 = vmatprep.subr.bf16.mxu1 %v2662_v3 }
 0x503   : > { %2397 = vmatmul.mubr.msk.bf16.vlgmr.msra.gmra.mxu0 %vm446_vm4, %v888_v33 }
 0x504   : > { %2407 = vmatpush3.bf16.xpose.msra.mxu0 %v1090_v32  ;;  %2408 = vmatprep.mubr.msk.bf16.mxu0 %vm2663_vm0, %v2662_v3 }
 0x505   : > { %2418 = vmatprep.subr.bf16.mxu0 %v2662_v3 }
 0x508   : > { %2415 = vmatmul.mubr.msk.bf16.vlgmr.msra.gmra.mxu1 %vm176_vm1, %v1133_v36 }
 0x509   : > { %2425 = vmatpush3.bf16.xpose.msra.mxu1 %v1240_v37  ;;  %2426 = vmatprep.mubr.msk.bf16.mxu1 %vm2663_vm0, %v2662_v3 }
 0x50a   : > { %2436 = vmatprep.subr.bf16.mxu1 %v2662_v3 }
 0x50b   : > { %2409 = vmatmul.mubr.msk.bf16.vlgmr.msra.gmra.mxu0 %vm176_vm1, %v1083_v30 }
 0x50c   : > { %2419 = vmatpush3.bf16.xpose.msra.mxu0 %v1190_v38  ;;  %2420 = vmatprep.mubr.msk.bf16.mxu0 %vm2663_vm0, %v2662_v3 }
 0x50d   : > { %2430 = vmatprep.subr.bf16.mxu0 %v2662_v3 }
 0x510   : > { %2427 = vmatmul.mubr.msk.bf16.vlgmr.msra.gmra.mxu1 %vm176_vm1, %v1233_v39 }
 0x511   : > { %2438 = vmatprep.mubr.msk.bf16.mxu1 %vm2663_vm0, %v2662_v3 }
 0x513   : > { %2421 = vmatmul.mubr.msk.bf16.vlgmr.msra.gmra.mxu0 %vm176_vm1, %v1183_v40 }
 0x514   : > { %2432 = vmatprep.mubr.msk.bf16.mxu0 %vm2663_vm0, %v2662_v3 }
 0x58a   : > { %v2907_v42 = vpop.f32.mrf.mxu0 }
 0x58b   : > { %v2909_v43 = vpop.f32.mrf.mxu1 }
 0x58c   : > { %v2529_v44 = vpack.i.bf16 %v2909_v43, %v2907_v42  ;;  %v2386_v45 = vpop.f32.mrf.mxu0 }
 0x58d   : > { %v2392_v46 = vpop.f32.mrf.mxu1 }
 0x58e   : > { %v935_v47 = vpop.f32.mrf.mxu0 }
 0x58f   : > { %v983_v49 = vpop.f32.mrf.mxu1 }
 0x590   : > { %v2387_v50 = vpop.f32.mrf.mxu0 }
 0x591   : > { %v2393_v52 = vpop.f32.mrf.mxu1 }
 0x5c0   : > { %v2913_v53 = vpop.f32.mrf.mxu1 }
 0x5c2   : > { %v2404_v54 = vpop.f32.mrf.mxu1 }
 0x5c3   : > { %v2915_v55 = vpop.f32.mrf.mxu0 }
 0x5c4   : > { %v1079_v58 = vpop.f32.mrf.mxu1 }
 0x5c5   : > { %v2398_v59 = vpop.f32.mrf.mxu0 }
 0x5c6   : > { %v2405_v60 = vpop.f32.mrf.mxu1 }
 0x5c7   : > { %v1031_v61 = vpop.f32.mrf.mxu0 }
 0x5c8   : > { %v1176_v62 = vpop.f32.mrf.mxu1 }
 0x5c9   : > { %v2917_v63 = vmul.f32 0.35355338, %v1176_v62  ;;  %v2399_v0 = vpop.f32.mrf.mxu0 }
 0x5ca   : > { %v2416_v2 = vpop.f32.mrf.mxu1 }
 0x5cb   : > { %v1126_v5 = vpop.f32.mrf.mxu0  ;;  %v1289_v6 = vsel %vm395_vm2, %v2917_v63, -inf }
 0x5cc   : > { %v2921_v7 = vmul.f32 0.35355338, %v1126_v5  ;;  %1290 = vmax.xlane.f32.xlu1 %v1289_v6  ;;  %v1179_v8 = vpop.f32.mrf.mxu1 }
 0x5cd   : > { %v2410_v9 = vpop.f32.mrf.mxu0 }
 0x5ce   : > { %v1286_v12 = vsel %vm395_vm2, %v2921_v7, -inf  ;;  %v2417_v15 = vpop.f32.mrf.mxu1 }
 0x5cf   : > { %1287 = vmax.xlane.f32.xlu0 %v1286_v12  ;;  %v1129_v16 = vpop.f32.mrf.mxu0 }
 0x5d0   : > { %v1276_v17 = vpop.f32.mrf.mxu1 }
 0x5d1   : > { %v2411_v19 = vpop.f32.mrf.mxu0  ;;  %v2927_v25 = vmul.f32 0.35355338, %v1276_v17 }
 0x5d2   : > { %v2428_v21 = vpop.f32.mrf.mxu1 }
 0x5d3   : > { %v1226_v22 = vpop.f32.mrf.mxu0  ;;  %v1295_v32 = vsel %vm395_vm2, %v2927_v25, -inf }
 0x5d4   : > { %v2925_v23 = vmul.f32 0.35355338, %v1226_v22  ;;  %v1279_v26 = vpop.f32.mrf.mxu1 }
 0x5d5   : > { %v2422_v27 = vpop.f32.mrf.mxu0 }
 0x5d6   : > { %v1292_v28 = vsel %vm395_vm2, %v2925_v23, -inf  ;;  %v2429_v30 = vpop.f32.mrf.mxu1 }
 0x5d7   : > { %1293 = vmax.xlane.f32.xlu0 %v1292_v28  ;;  %v1229_v31 = vpop.f32.mrf.mxu0 }
 0x5d9   : > { %v2423_v33 = vpop.f32.mrf.mxu0 }
 0x5db   : > { %1296 = vmax.xlane.f32.xlu0 %v1295_v32 }
 0x5dd   : > { %1334 = vrot.lane.b32.xlu1 %v2715_v10, %s2671_s23 }
 0x655   : > { %v1291_v34 = vpop.xlane.xlu1 %1290 }
 0x656   : > { %v1299_v36 = vsub.f32 %v2917_v63, %v1291_v34 }
 0x658   : > { %v1304_v37 = vmul.f32 1.442695, %v1299_v36  ;;  %v1288_v38 = vpop.xlane.xlu0 %1287 }
 0x659   : > { %v1298_v39 = vsub.f32 %v2921_v7, %v1288_v38  ;;  %v1335_v40 = vpop.permute.xlu1 %1334 }
 0x65a   : > { %2621 = vpow2.f32 %v1304_v37  ;;  %v1340_v45 = vsel %vm450_vm3, %v1335_v40, 0 }
 0x65b   : > { %v1302_v46 = vmul.f32 1.442695, %v1298_v39  ;;  %2431 = vmatpush3.bf16.msra.mxu0 %v1340_v45 }
 0x65c   : > { %2442 = vmatprep.subr.bf16.mxu0 %v2662_v3 }
 0x65d   : > { %2623 = vpow2.f32 %v1302_v46 }
 0x660   : > { %v1294_v54 = vpop.xlane.xlu0 %1293 }
 0x661   : > { %v1300_v61 = vsub.f32 %v2925_v23, %v1294_v54 }
 0x663   : > { %v1306_v62 = vmul.f32 1.442695, %v1300_v61 }
 0x664   : > { %v1297_v58 = vpop.xlane.xlu0 %1296 }
 0x665   : > { %v1301_v59 = vsub.f32 %v2927_v25, %v1297_v58 }
 0x667   : > { %v2622_v47 = vpop.eup %2621  ;;  %v1308_v60 = vmul.f32 1.442695, %v1301_v59 }
 0x668   : > { %v1313_v49 = vsel %vm395_vm2, %v2622_v47, 0.0 }
 0x669   : > { %1314 = vadd.xlane.f32.xlu0 %v1313_v49  ;;  %2625 = vpow2.f32 %v1308_v60 }
 0x66a   : > { %v2624_v50 = vpop.eup %2623  ;;  %2627 = vpow2.f32 %v1306_v62 }
 0x66b   : > { %v1310_v52 = vsel %vm395_vm2, %v2624_v50, 0.0 }
 0x66c   : > { %1311 = vadd.xlane.f32.xlu1 %v1310_v52 }
 0x676   : > { %v2626_v0 = vpop.eup %2625 }
 0x677   : > { %v1319_v2 = vsel %vm395_vm2, %v2626_v0, 0.0  ;;  %v2628_v5 = vpop.eup %2627 }
 0x678   : > { %v1316_v6 = vsel %vm395_vm2, %v2628_v5, 0.0 }
 0x67d   : > { %1430 = vrot.lane.b32.xlu1 %v2717_v11, %s2671_s23 }
 0x67f   : > { %1382 = vrot.lane.b32.xlu0 %v2720_v13, %s2671_s23 }
 0x681   : > { %1478 = vrot.lane.b32.xlu1 %v2723_v14, %s2671_s23 }
 0x69e   : > { %1320 = vadd.xlane.f32.xlu0 %v1319_v2 }
 0x6a5   : > { %1317 = vadd.xlane.f32.xlu1 %v1316_v6 }
 0x6b4   : > { %1528 = vrot.lane.b32.xlu0 %v2715_v10, %s2672_s24 }
 0x6b6   : > { %1578 = vrot.lane.b32.xlu1 %v2720_v13, %s2672_s24 }
 0x6b8   : > { %1526 = vrot.lane.b32.xlu0 %v2715_v10, %s2673_s25 }
 0x6ba   : > { %1628 = vrot.lane.b32.xlu1 %v2717_v11, %s2672_s24 }
 0x6bc   : > { %1576 = vrot.lane.b32.xlu0 %v2720_v13, %s2673_s25 }
 0x6be   : > { %1678 = vrot.lane.b32.xlu1 %v2723_v14, %s2672_s24 }
 0x6c0   : > { %1626 = vrot.lane.b32.xlu0 %v2717_v11, %s2673_s25 }
 0x6c2   : > { %1676 = vrot.lane.b32.xlu1 %v2723_v14, %s2673_s25 }
 0x6f2   : > { %v1315_v8 = vpop.xlane.xlu0 %1314 }
 0x6f3   : > { %2629 = vrcp.f32 %v1315_v8 }
 0x6f5   : > { %v1312_v9 = vpop.xlane.xlu1 %1311 }
 0x6f6   : > { %2631 = vrcp.f32 %v1312_v9  ;;  %v1383_v12 = vpop.permute.xlu0 %1382 }
 0x6f7   : > { %v1388_v15 = vsel %vm450_vm3, %v1383_v12, 0 }
 0x6f8   : > { %2437 = vmatpush3.bf16.msra.mxu1 %v1388_v15 }
 0x6f9   : > { %2448 = vmatprep.subr.bf16.mxu1 %v2662_v3  ;;  %v1431_v16 = vpop.permute.xlu1 %1430 }
 0x6fa   : > { %v1436_v31 = vsel %vm450_vm3, %v1431_v16, 0 }
 0x6fd   : > { %v1479_v21 = vpop.permute.xlu1 %1478 }
 0x6fe   : > { %v1484_v28 = vsel %vm450_vm3, %v1479_v21, 0 }
 0x700   : > { %v2630_v17 = vpop.eup %2629 }
 0x701   : > { %v1327_v19 = vmul.f32 %v2630_v17, %v2622_v47 }
 0x703   : > { %v2632_v22 = vpop.eup %2631  ;;  %v1331_v26 = vpack.c.bf16 %v1327_v19, %v1327_v19 }
 0x704   : > { %v1326_v27 = vmul.f32 %v2632_v22, %v2624_v50 }
 0x705   : > { %2439 = vmatmul.mubr.msk.bf16.vlgmr.msra.gmra.mxu1 %vm446_vm4, %v1331_v26 }
 0x706   : > { %2449 = vmatpush3.bf16.msra.mxu1 %v1484_v28  ;;  %v1330_v30 = vpack.c.bf16 %v1326_v27, %v1326_v27  ;;  %2450 = vmatprep.mubr.msk.bf16.mxu1 %vm2663_vm0, %v2662_v3 }
 0x707   : > { %2460 = vmatprep.subr.bf16.mxu1 %v2662_v3 }
 0x708   : > { %2433 = vmatmul.mubr.msk.bf16.vlgmr.msra.gmra.mxu0 %vm446_vm4, %v1330_v30 }
 0x709   : > { %2443 = vmatpush3.bf16.msra.mxu0 %v1436_v31  ;;  %2444 = vmatprep.mubr.msk.bf16.mxu0 %vm2663_vm0, %v2662_v3 }
 0x70a   : > { %2454 = vmatprep.subr.bf16.mxu0 %v2662_v3 }
 0x727   : > { %v1321_v32 = vpop.xlane.xlu0 %1320 }
 0x728   : > { %2633 = vrcp.f32 %v1321_v32 }
 0x72b   : > { %v1529_v36 = vpop.permute.xlu0 %1528 }
 0x72c   : > { %v1534_v52 = vsel %vm176_vm1, %v1529_v36, 0 }
 0x72e   : > { %v1318_v33 = vpop.xlane.xlu1 %1317 }
 0x72f   : > { %2635 = vrcp.f32 %v1318_v33  ;;  %v1527_v46 = vpop.permute.xlu0 %1526 }
 0x732   : > { %v1579_v34 = vpop.permute.xlu1 %1578 }
 0x733   : > { %v1584_v40 = vsel %vm176_vm1, %v1579_v34, 0  ;;  %v1577_v54 = vpop.permute.xlu0 %1576 }
 0x735   : > { %v2634_v37 = vpop.eup %2633 }
 0x736   : > { %v1329_v38 = vmul.f32 %v2634_v37, %v2626_v0  ;;  %v1629_v39 = vpop.permute.xlu1 %1628 }
 0x737   : > { %v1634_v60 = vsel %vm176_vm1, %v1629_v39, 0  ;;  %v1627_v62 = vpop.permute.xlu0 %1626 }
 0x738   : > { %v1333_v45 = vpack.c.bf16 %v1329_v38, %v1329_v38 }
 0x73a   : > { %2451 = vmatmul.mubr.msk.bf16.vlgmr.msra.gmra.mxu1 %vm446_vm4, %v1333_v45  ;;  %v1679_v50 = vpop.permute.xlu1 %1678 }
 0x73b   : > { %2461 = vmatpush3.bf16.xpose.msra.mxu1 %v1584_v40  ;;  %2462 = vmatprep.mubr.msk.bf16.mxu1 %vm2663_vm0, %v2662_v3  ;;  %v1684_v59 = vsel %vm176_vm1, %v1679_v50, 0 }
 0x73c   : > { %v2636_v47 = vpop.eup %2635  ;;  %2472 = vmatprep.subr.bf16.mxu1 %v2662_v3 }
 0x73d   : > { %v1328_v49 = vmul.f32 %v2636_v47, %v2628_v5 }
 0x73e   : > { %v1677_v61 = vpop.permute.xlu1 %1676 }
 0x73f   : > { %v1332_v58 = vpack.c.bf16 %v1328_v49, %v1328_v49 }
 0x741   : > { %2445 = vmatmul.mubr.msk.bf16.vlgmr.msra.gmra.mxu0 %vm446_vm4, %v1332_v58 }
 0x742   : > { %2463 = vmatmul.mubr.msk.bf16.vlgmr.msra.gmra.mxu1 %vm176_vm1, %v1577_v54  ;;  %2455 = vmatpush3.bf16.xpose.msra.mxu0 %v1534_v52 }
 0x743   : > { %2456 = vmatprep.mubr.msk.bf16.mxu0 %vm2663_vm0, %v2662_v3  ;;  %2473 = vmatpush3.bf16.xpose.msra.mxu1 %v1684_v59 }
 0x744   : > { %2466 = vmatprep.subr.bf16.mxu0 %v2662_v3  ;;  %2474 = vmatprep.mubr.msk.bf16.mxu1 %vm2663_vm0, %v2662_v3 }
 0x745   : > { %2484 = vmatprep.subr.bf16.mxu1 %v2662_v3 }
 0x749   : > { %2457 = vmatmul.mubr.msk.bf16.vlgmr.msra.gmra.mxu0 %vm176_vm1, %v1527_v46 }
 0x74a   : > { %2467 = vmatpush3.bf16.xpose.msra.mxu0 %v1634_v60  ;;  %2475 = vmatmul.mubr.msk.bf16.vlgmr.msra.gmra.mxu1 %vm176_vm1, %v1677_v61 }
 0x74b   : > { %2468 = vmatprep.mubr.msk.bf16.mxu0 %vm2663_vm0, %v2662_v3  ;;  %2478 = vmatprep.subr.bf16.mxu0 %v2662_v3 }
 0x74c   : > { %2486 = vmatprep.mubr.msk.bf16.mxu1 %vm2663_vm0, %v2662_v3 }
 0x751   : > { %2469 = vmatmul.mubr.msk.bf16.vlgmr.msra.gmra.mxu0 %vm176_vm1, %v1627_v62 }
 0x752   : > { %2480 = vmatprep.mubr.msk.bf16.mxu0 %vm2663_vm0, %v2662_v3 }
 0x7c5   : > { %v2993_v0 = vpop.f32.mrf.mxu1 }
 0x7c7   : > { %v2440_v2 = vpop.f32.mrf.mxu1 }
 0x7c8   : > { %v2995_v5 = vpop.f32.mrf.mxu0 }
 0x7c9   : > { %v2539_v6 = vpack.i.bf16 %v2993_v0, %v2995_v5  ;;  %v1427_v8 = vpop.f32.mrf.mxu1 }
 0x7ca   : > { %v2434_v9 = vpop.f32.mrf.mxu0 }
 0x7cb   : > { %v2441_v12 = vpop.f32.mrf.mxu1 }
 0x7cc   : > { %v1379_v15 = vpop.f32.mrf.mxu0 }
 0x7ce   : > { %v2435_v16 = vpop.f32.mrf.mxu0 }
 0x7fa   : > { %v2999_v17 = vpop.f32.mrf.mxu1 }
 0x7fc   : > { %v2452_v19 = vpop.f32.mrf.mxu1 }
 0x7fe   : > { %v1523_v21 = vpop.f32.mrf.mxu1 }
 0x800   : > { %v2453_v22 = vpop.f32.mrf.mxu1 }
 0x801   : > { %v3001_v26 = vpop.f32.mrf.mxu0 }
 0x802   : > { %v2564_v27 = vpack.i.bf16 %v2999_v17, %v3001_v26  ;;  %v1620_v28 = vpop.f32.mrf.mxu1 }
 0x803   : > { %v3005_v30 = vmul.f32 0.35355338, %v1620_v28  ;;  %v2446_v31 = vpop.f32.mrf.mxu0 }
 0x804   : > { %v2464_v32 = vpop.f32.mrf.mxu1 }
 0x805   : > { %v1475_v33 = vpop.f32.mrf.mxu0  ;;  %v1733_v34 = vsel %vm395_vm2, %v3005_v30, -inf }
 0x806   : > { %1734 = vmax.xlane.f32.xlu1 %v1733_v34  ;;  %v1623_v36 = vpop.f32.mrf.mxu1 }
 0x807   : > { %v2447_v37 = vpop.f32.mrf.mxu0 }
 0x808   : > { %v2465_v38 = vpop.f32.mrf.mxu1 }
 0x809   : > { %v1570_v39 = vpop.f32.mrf.mxu0 }
 0x80a   : > { %v3009_v40 = vmul.f32 0.35355338, %v1570_v39  ;;  %v1720_v45 = vpop.f32.mrf.mxu1 }
 0x80b   : > { %v2458_v46 = vpop.f32.mrf.mxu0  ;;  %v3015_v62 = vmul.f32 0.35355338, %v1720_v45 }
 0x80c   : > { %v1730_v47 = vsel %vm395_vm2, %v3009_v40, -inf  ;;  %v2476_v49 = vpop.f32.mrf.mxu1 }
 0x80d   : > { %1731 = vmax.xlane.f32.xlu0 %v1730_v47  ;;  %v1573_v50 = vpop.f32.mrf.mxu0  ;;  %v1739_v9 = vsel %vm395_vm2, %v3015_v62, -inf }
 0x80e   : > { %v1723_v52 = vpop.f32.mrf.mxu1 }
 0x80f   : > { %v2459_v54 = vpop.f32.mrf.mxu0 }
 0x810   : > { %v2477_v58 = vpop.f32.mrf.mxu1 }
 0x811   : > { %v1670_v59 = vpop.f32.mrf.mxu0  ;;  %v2534_v58 = vpack.i.bf16 %v2833_v4, %v2831_v1  ;;  %v2569_v1 = vpack.i.bf16 %v2927_v25, %v2925_v23 }
 0x812   : > { %v3013_v60 = vmul.f32 0.35355338, %v1670_v59  ;;  %v2544_v59 = vpack.i.bf16 %v2915_v55, %v2921_v7 }
 0x813   : > { %v2470_v61 = vpop.f32.mrf.mxu0 }
 0x814   : > { %v1736_v2 = vsel %vm395_vm2, %v3013_v60, -inf  ;;  %v2584_v4 = vpack.i.bf16 %v3015_v62, %v3013_v60 }
 0x815   : > { %1737 = vmax.xlane.f32.xlu0 %v1736_v2  ;;  %v1673_v8 = vpop.f32.mrf.mxu0 }
 0x817   : > { %v2471_v12 = vpop.f32.mrf.mxu0  ;;  %1778 = vrot.lane.b32.xlu1 %v2715_v10, %s2674_s26 }
 0x819   : > { %1740 = vmax.xlane.f32.xlu0 %v1739_v9 }
 0x88f   : > { %v1735_v15 = vpop.xlane.xlu1 %1734 }
 0x890   : > { %v1743_v16 = vsub.f32 %v3005_v30, %v1735_v15 }
 0x892   : > { %v1748_v19 = vmul.f32 1.442695, %v1743_v16 }
 0x893   : > { %v1779_v21 = vpop.permute.xlu1 %1778 }
 0x894   : > { %2637 = vpow2.f32 %v1748_v19  ;;  %v1784_v22 = vsel %vm450_vm3, %v1779_v21, 0 }
 0x895   : > { %2479 = vmatpush3.bf16.msra.mxu0 %v1784_v22 }
 0x896   : > { %v1732_v28 = vpop.xlane.xlu0 %1731  ;;  %2490 = vmatprep.subr.bf16.mxu0 %v2662_v3 }
 0x897   : > { %v1742_v31 = vsub.f32 %v3009_v40, %v1732_v28 }
 0x899   : > { %v1746_v32 = vmul.f32 1.442695, %v1742_v31 }
 0x89b   : > { %2639 = vpow2.f32 %v1746_v32 }
 0x89e   : > { %v1738_v33 = vpop.xlane.xlu0 %1737 }
 0x89f   : > { %v1744_v10 = vsub.f32 %v3013_v60, %v1738_v33 }
 0x8a1   : > { %v2638_v34 = vpop.eup %2637  ;;  %v1750_v36 = vmul.f32 1.442695, %v1744_v10 }
 0x8a2   : > { %v1757_v37 = vsel %vm395_vm2, %v2638_v34, 0.0  ;;  %v1741_v38 = vpop.xlane.xlu0 %1740 }
 0x8a3   : > { %2641 = vpow2.f32 %v1750_v36  ;;  %1758 = vadd.xlane.f32.xlu0 %v1757_v37  ;;  %v1745_v39 = vsub.f32 %v3015_v62, %v1741_v38 }
 0x8a5   : > { %v1752_v45 = vmul.f32 1.442695, %v1745_v39 }
 0x8a7   : > { %2643 = vpow2.f32 %v1752_v45 }
 0x8a8   : > { %v2640_v46 = vpop.eup %2639 }
 0x8a9   : > { %v1754_v47 = vsel %vm395_vm2, %v2640_v46, 0.0 }
 0x8aa   : > { %1755 = vadd.xlane.f32.xlu1 %v1754_v47 }
 0x8b0   : > { %v3031_v49 = vpop.eup %2641 }
 0x8b1   : > { %v1760_v50 = vsel %vm395_vm2, %v3031_v49, 0.0 }
 0x8b2   : > { %1761 = vadd.xlane.f32.xlu1 %v1760_v50 }
 0x8b4   : > { %v3035_v52 = vpop.eup %2643 }
 0x8b5   : > { %v1763_v54 = vsel %vm395_vm2, %v3035_v52, 0.0 }
 0x8b6   : > { %1764 = vadd.xlane.f32.xlu0 %v1763_v54 }
 0x8c3   : > { %1874 = vrot.lane.b32.xlu1 %v2717_v11, %s2674_s26  ;;  %v2549_v11 = vpack.i.bf16 %v2841_v20, %v2839_v18 }
 0x8c7   : > { %1922 = vrot.lane.b32.xlu1 %v2723_v14, %s2674_s26  ;;  %v2554_v14 = vpack.i.bf16 %v2913_v53, %v2917_v63 }
 0x8cb   : > { %2535 = vrot.lane.b32.xlu1 %v2534_v58, %s2675_s27 }
 0x8cc   : > { %1826 = vrot.lane.b32.xlu0 %v2720_v13, %s2674_s26  ;;  %v2559_v13 = vpack.i.bf16 %v3005_v30, %v3009_v40 }
 0x8cf   : > { %2545 = vrot.lane.b32.xlu1 %v2544_v59, %s2676_s28 }
 0x8d0   : > { %2530 = vrot.lane.b32.xlu0 %v2529_v44, %s2676_s28 }
 0x8d3   : > { %2550 = vrot.lane.b32.xlu1 %v2549_v11, %s2675_s27 }
 0x8d4   : > { %2540 = vrot.lane.b32.xlu0 %v2539_v6, %s2677_s29 }
 0x8d7   : > { %2560 = vrot.lane.b32.xlu1 %v2559_v13, %s2678_s30 }
 0x8d8   : > { %2555 = vrot.lane.b32.xlu0 %v2554_v14, %s2676_s28 }
 0x8db   : > { %2570 = vrot.lane.b32.xlu1 %v2569_v1, %s2676_s28 }
 0x8dc   : > { %2565 = vrot.lane.b32.xlu0 %v2564_v27, %s2677_s29 }
 0x8df   : > { %2585 = vrot.lane.b32.xlu1 %v2584_v4, %s2678_s30 }
 0x92c   : > { %v1759_v18 = vpop.xlane.xlu0 %1758 }
 0x92d   : > { %2645 = vrcp.f32 %v1759_v18 }
 0x933   : > { %v1756_v20 = vpop.xlane.xlu1 %1755 }
 0x934   : > { %2647 = vrcp.f32 %v1756_v20 }
 0x93a   : > { %v2646_v43 = vpop.eup %2645 }
 0x93b   : > { %v1762_v42 = vpop.xlane.xlu1 %1761  ;;  %v1771_v7 = vmul.f32 %v2646_v43, %v2638_v34 }
 0x93c   : > { %2649 = vrcp.f32 %v1762_v42 }
 0x93d   : > { %v1775_v26 = vpack.c.bf16 %v1771_v7, %v1771_v7 }
 0x93f   : > { %v1875_v44 = vpop.permute.xlu1 %1874  ;;  %v1765_v53 = vpop.xlane.xlu0 %1764 }
 0x940   : > { %2651 = vrcp.f32 %v1765_v53  ;;  %v1880_v0 = vsel %vm450_vm3, %v1875_v44, 0 }
 0x941   : > { %v2648_v55 = vpop.eup %2647 }
 0x942   : > { %v1770_v63 = vmul.f32 %v2648_v55, %v2640_v46 }
 0x943   : > { %v1923_v23 = vpop.permute.xlu1 %1922  ;;  %v1827_v25 = vpop.permute.xlu0 %1826 }
 0x944   : > { %v1832_v5 = vsel %vm450_vm3, %v1827_v25, 0  ;;  %v1774_v6 = vpack.c.bf16 %v1770_v63, %v1770_v63  ;;  %v1928_v17 = vsel %vm450_vm3, %v1923_v23, 0 }
 0x945   : > { %2485 = vmatpush3.bf16.msra.mxu1 %v1832_v5 }
 0x946   : > { %2481 = vmatmul.mubr.msk.bf16.vlgmr.msra.gmra.mxu0 %vm446_vm4, %v1774_v6  ;;  %2496 = vmatprep.subr.bf16.mxu1 %v2662_v3 }
 0x947   : > { %v2536_v27 = vpop.permute.xlu1 %2535  ;;  %v2531_v30 = vpop.permute.xlu0 %2530  ;;  %2491 = vmatpush3.bf16.msra.mxu0 %v1880_v0  ;;  %2492 = vmatprep.mubr.msk.bf16.mxu0 %vm2663_vm0, %v2662_v3 }
 0x948   : > { %2487 = vmatmul.mubr.msk.bf16.vlgmr.msra.gmra.mxu1 %vm446_vm4, %v1775_v26  ;;  %v2533_v60 = vunpack.i.h.bf16 %v2531_v30  ;;  %v2532_v61 = vunpack.i.l.bf16 %v2531_v30  ;;  %v2538_v33 = vunpack.i.h.bf16 %v2536_v27 }
 0x949   : > { %v2650_v40 = vpop.eup %2649  ;;  %2497 = vmatpush3.bf16.msra.mxu1 %v1928_v17  ;;  %2498 = vmatprep.mubr.msk.bf16.mxu1 %vm2663_vm0, %v2662_v3 }
 0x94a   : > { %v1772_v8 = vmul.f32 %v2650_v40, %v3031_v49  ;;  %v2019_v16 = vsel %vm176_vm1, %v2825_v51, %v2533_v60  ;;  %v2018_v19 = vsel %vm176_vm1, %v2823_v48, %v2532_v61  ;;  %v2537_v51 = vunpack.i.l.bf16 %v2536_v27 }
 0x94b   : > { %v3078_v62 = vpop.permute.xlu1 %2545  ;;  %v2541_v2 = vpop.permute.xlu0 %2540  ;;  %v2090_v37 = vsel %vm446_vm4, %v2751_v29, %v2538_v33 }
 0x94c   : > { %v2543_v9 = vunpack.i.h.bf16 %v2541_v2  ;;  %v2542_v12 = vunpack.i.l.bf16 %v2541_v2  ;;  %v1776_v21 = vpack.c.bf16 %v1772_v8, %v1772_v8  ;;  %v2547_v10 = vunpack.i.l.bf16 %v3078_v62 }
 0x94d   : > { %v2652_v15 = vpop.eup %2651  ;;  %v2089_v38 = vsel %vm446_vm4, %v2747_v24, %v2537_v51  ;;  %v2548_v33 = vunpack.i.h.bf16 %v3078_v62 }
 0x94e   : > { %v3086_v22 = vsel %vm2022_vm5, %v2018_v19, %v2542_v12  ;;  %v3089_v3 = vsel %vm2022_vm5, %v2019_v16, %v2543_v9  ;;  %2493 = vmatmul.mubr.msk.bf16.vlgmr.msra.gmra.mxu0 %vm446_vm4, %v1776_v21  ;;  %v1773_v32 = vmul.f32 %v2652_v15, %v3035_v52  ;;  %v2093_v46 = vsel %vm176_vm1, %v2089_v38, %v2547_v10 }
 0x94f   : > { %v2551_v28 = vpop.permute.xlu1 %2550  ;;  %v3092_v31 = vpop.permute.xlu0 %2555 }
 0x950   : > { %v2557_v48 = vunpack.i.l.bf16 %v3092_v31  ;;  %v1777_v34 = vpack.c.bf16 %v1773_v32, %v1773_v32  ;;  %v2553_v58 = vunpack.i.h.bf16 %v2551_v28  ;;  %v2552_v24 = vunpack.i.l.bf16 %v2551_v28 }
 0x951   : > { %v2558_v51 = vunpack.i.h.bf16 %v3092_v31 }
 0x952   : > { %2499 = vmatmul.mubr.msk.bf16.vlgmr.msra.gmra.mxu1 %vm446_vm4, %v1777_v34  ;;  %v2094_v47 = vsel %vm176_vm1, %v2090_v37, %v2557_v48  ;;  %v2092_v14 = vsel %vm446_vm4, %v2759_v41, %v2553_v58  ;;  %v2091_v1 = vsel %vm446_vm4, %v2755_v35, %v2552_v24 }
 0x953   : > { %v2561_v36 = vpop.permute.xlu1 %2560  ;;  %v2566_v9 = vpop.permute.xlu0 %2565 }
 0x954   : > { %v2563_v39 = vunpack.i.h.bf16 %v2561_v36  ;;  %v2562_v45 = vunpack.i.l.bf16 %v2561_v36  ;;  %v2568_v10 = vunpack.i.h.bf16 %v2566_v9  ;;  %v2567_v48 = vunpack.i.l.bf16 %v2566_v9 }
 0x955   : > { %v2020_v36 = vsel %vm176_vm1, %v2827_v56, %v2548_v33 }
 0x956   : > { %v2098_v49 = vsel %vm2097_vm6, %v2093_v46, %v2562_v45  ;;  %v2099_v50 = vsel %vm2097_vm6, %v2094_v47, %v2563_v39  ;;  %v2025_v38 = vsel %vm2022_vm5, %v2020_v36, %v2567_v48 }
 0x957   : > { %v2102_v52 = vpack.c.bf16 %v2098_v49, %v2098_v49  ;;  %v2103_v29 = vpack.c.bf16 %v2099_v50, %v2099_v50  ;;  %v2571_v54 = vpop.permute.xlu1 %2570 }
 0x958   : > { %v2573_v59 = vunpack.i.h.bf16 %v2571_v54  ;;  %v2572_v11 = vunpack.i.l.bf16 %v2571_v54 }
 0x959   : > { %2107 = vst.msk [vmem:[%s159_s5] sm:$0x3] %vm2106_vm7, %v2102_v52  ;;  %2108 = vst.msk [vmem:[%s159_s5 + $0x2] sm:$0x3] %vm2106_vm7, %v2103_v29 }
 0x95a   : > { %v2095_v20 = vsel %vm176_vm1, %v2091_v1, %v2572_v11  ;;  %v2096_v42 = vsel %vm176_vm1, %v2092_v14, %v2573_v59 }
 0x95b   : > { %v2586_v13 = vpop.permute.xlu1 %2585 }
 0x95c   : > { %v2588_v4 = vunpack.i.h.bf16 %v2586_v13  ;;  %v2587_v18 = vunpack.i.l.bf16 %v2586_v13 }
 0x95e   : > { %v2100_v43 = vsel %vm2097_vm6, %v2095_v20, %v2587_v18  ;;  %v2101_v44 = vsel %vm2097_vm6, %v2096_v42, %v2588_v4 }
 0x95f   : > { %v2104_v53 = vpack.c.bf16 %v2100_v43, %v2100_v43  ;;  %v2105_v55 = vpack.c.bf16 %v2101_v44, %v2101_v44 }
 0x961   : > { %2109 = vst.msk [vmem:[%s159_s5 + $0x4] sm:$0x3] %vm2106_vm7, %v2104_v53  ;;  %2110 = vst.msk [vmem:[%s159_s5 + $0x6] sm:$0x3] %vm2106_vm7, %v2105_v55 }
 0xa06   : > { %v1820_v41 = vpop.f32.mrf.mxu0 }
 0xa08   : > { %v2482_v63 = vpop.f32.mrf.mxu0  ;;  %v1868_v7 = vpop.f32.mrf.mxu1 }
 0xa09   : > { %v2574_v35 = vpack.i.bf16 %v1868_v7, %v1820_v41 }
 0xa0a   : > { %v1823_v23 = vpop.f32.mrf.mxu0  ;;  %v2488_v25 = vpop.f32.mrf.mxu1 }
 0xa0b   : > { %2575 = vrot.lane.b32.xlu0 %v2574_v35, %s2679_s6 }
 0xa0c   : > { %v2483_v0 = vpop.f32.mrf.mxu0  ;;  %v1871_v5 = vpop.f32.mrf.mxu1 }
 0xa0e   : > { %v2489_v6 = vpop.f32.mrf.mxu1  ;;  %v1916_v17 = vpop.f32.mrf.mxu0 }
 0xa10   : > { %v2494_v26 = vpop.f32.mrf.mxu0 }
 0xa12   : > { %v1919_v27 = vpop.f32.mrf.mxu0  ;;  %v1964_v30 = vpop.f32.mrf.mxu1 }
 0xa13   : > { %v2579_v40 = vpack.i.bf16 %v1964_v30, %v1916_v17 }
 0xa14   : > { %v2495_v60 = vpop.f32.mrf.mxu0  ;;  %v2500_v61 = vpop.f32.mrf.mxu1 }
 0xa15   : > { %2580 = vrot.lane.b32.xlu0 %v2579_v40, %s2679_s6 }
 0xa16   : > { %v1967_v2 = vpop.f32.mrf.mxu1 }
 0xa18   : > { %v2501_v8 = vpop.f32.mrf.mxu1 }
 0xa7d   : > { %v2576_v12 = vpop.permute.xlu0 %2575 }
 0xa7e   : > { %v2578_v15 = vunpack.i.h.bf16 %v2576_v12  ;;  %v2577_v16 = vunpack.i.l.bf16 %v2576_v12 }
 0xa80   : > { %v2028_v19 = vsel %vm2027_vm8, %v3086_v22, %v2577_v16  ;;  %v2029_v21 = vsel %vm2027_vm8, %v3089_v3, %v2578_v15  ;;  %v2021_v22 = vsel %vm176_vm1, %v2829_v57, %v2558_v51 }
 0xa81   : > { %v2032_v28 = vpack.c.bf16 %v2028_v19, %v2028_v19  ;;  %v2033_v32 = vpack.c.bf16 %v2029_v21, %v2029_v21  ;;  %v2026_v39 = vsel %vm2022_vm5, %v2021_v22, %v2568_v10 }
 0xa83   : > { %2037 = vst.msk [vmem:[%s153_s10] sm:$0x3] %vm2036_vm9, %v2032_v28  ;;  %2038 = vst.msk [vmem:[%s153_s10 + $0x2] sm:$0x3] %vm2036_vm9, %v2033_v32 }
 0xa87   : > { %v2581_v34 = vpop.permute.xlu0 %2580 }
 0xa88   : > { %v2583_v3 = vunpack.i.h.bf16 %v2581_v34  ;;  %v2582_v37 = vunpack.i.l.bf16 %v2581_v34 }
 0xa8a   : > { %v2030_v45 = vsel %vm2027_vm8, %v2025_v38, %v2582_v37  ;;  %v2031_v62 = vsel %vm2027_vm8, %v2026_v39, %v2583_v3 }
 0xa8b   : > { %v2034_v31 = vpack.c.bf16 %v2030_v45, %v2030_v45  ;;  %v2035_v46 = vpack.c.bf16 %v2031_v62, %v2031_v62 }
 0xa8d   : > { %2039 = vst.msk [vmem:[%s153_s10 + $0x4] sm:$0x3] %vm2036_vm9, %v2034_v31  ;;  %2040 = vst.msk [vmem:[%s153_s10 + $0x6] sm:$0x3] %vm2036_vm9, %v2035_v46 }
 0xa8e PF: > { %s13_s9 = sadd.s32 1, %s2659_s9  }
 0xa8f   : > { %p10_p4 = scmp.ge.s32.totalorder %s13_s9, 4  }
 0xa91   :  { %12 = sbr.rel (!%p10_p4) target bundleno = 1 (0x1), region = 66 }

// kernel: patchtst_forward.17
= control target key start
LH: loop header
LB: loop body
LE: loop exit
PB: predicated region body
PF: predicated region fallthrough
CT: control target
= control target key end

     0   :  { %vm28_vm0 = vcmask 261120   ;;  %v278_v1 = vmov 0.0   ;;  %vm83_vm1 = vcmask 523264   ;;  %vm216_vm2 = vcmask 257024   ;;  %s367_s1 = inlined_call_operand.vmem [shape: bf16[64,32], index: 1, kind: input, shape index: {}]   ;;  %s368_s0 = inlined_call_operand.vmem [shape: bf16[32,64], index: 0, kind: input, shape index: {}]   ;;  %s369_s3 = inlined_call_operand.vmem [shape: bf16[32,32], index: 3, kind: input, shape index: {}]   ;;  %s370_s2 = inlined_call_operand.vmem [shape: f32[1,32], index: 2, kind: input, shape index: {}]   ;;  %s371_s4 = inlined_call_operand.vmem [shape: f32[1,32], index: 4, kind: input, shape index: {}]   ;;  %s372_s5 = inlined_call_operand.vmem [shape: f32[1,32], index: 5, kind: input, shape index: {}]   ;;  %s373_s6 = inlined_call_operand.vmem [shape: bf16[32,32], index: 6, kind: output, shape index: {}]  }
   0x1   :  { %v272_v0 = vld [vmem:[%s367_s1 + $0x18] sm:$0xff]   ;;  %31 = vst.msk [vmem:[#allocation2 + $0x10] sm:$0xff] %vm28_vm0, %v278_v1  ;;  %29 = vst.msk [vmem:[#allocation2] sm:$0xff] %vm28_vm0, %v278_v1  ;;  %v273_v2 = vld [vmem:[%s367_s1 + $0x10] sm:$0xff]  }
   0x2   :  { %30 = vst.msk [vmem:[#allocation2 + $0x8] sm:$0xff] %vm28_vm0, %v278_v1  ;;  %32 = vst.msk [vmem:[#allocation2 + $0x18] sm:$0xff] %vm28_vm0, %v278_v1  ;;  %259 = vmatprep.subr.bf16.mxu0 %v272_v0  ;;  %v274_v3 = vld [vmem:[%s367_s1 + $0x8] sm:$0xff]   ;;  %v276_v4 = vld [vmem:[%s368_s0] sm:$0xff]  }
   0x3   :  { %260 = vmatpush3.bf16.msra.mxu0 %v272_v0  ;;  %267 = vmatprep.mubr.msk.bf16.mxu0 %vm83_vm1, %v276_v4  ;;  %v275_v5 = vld [vmem:[%s367_s1] sm:$0xff]   ;;  %v277_v6 = vld [vmem:[%s368_s0 + $0x8] sm:$0xff]  }
   0x4   :  { %261 = vmatprep.subr.bf16.mxu0 %v273_v2  ;;  %v252_v17 = vld [vmem:[%s369_s3 + $0x8] sm:$0xff]   ;;  %v233_v20 = vld [vmem:[%s370_s2] ss:$0 sm:$0xff] }
   0x5   :  { %v245_v21 = vld [vmem:[%s369_s3] sm:$0xff]   ;;  %v250_v22 = vunpack.c.l.bf16 %v252_v17  ;;  %v251_v30 = vunpack.c.h.bf16 %v252_v17 }
   0x6   :  { %v246_v25 = vunpack.c.l.bf16 %v245_v21  ;;  %v234_v26 = vld [vmem:[%s371_s4] ss:$0 sm:$0xff]  ;;  %v247_v36 = vunpack.c.h.bf16 %v245_v21 }
   0x7   :  { %262 = vmatpush3.bf16.msra.mxu0 %v273_v2  ;;  %v235_v31 = vld [vmem:[%s372_s5] ss:$0 sm:$0xff] }
   0x8   :  { %263 = vmatprep.subr.bf16.mxu0 %v274_v3  ;;  %v47_v7 = vld [vmem:[#allocation2 + $0x10] sm:$0xff]  ;;  %v45_v9 = vld [vmem:[#allocation2] sm:$0xff] }
   0x9   :  { %v48_v12 = vld [vmem:[#allocation2 + $0x18] sm:$0xff]  ;;  %v46_v15 = vld [vmem:[#allocation2 + $0x8] sm:$0xff] }
   0xb   :  { %264 = vmatpush3.bf16.msra.mxu0 %v274_v3 }
   0xc   :  { %265 = vmatprep.subr.bf16.mxu0 %v275_v5 }
   0xf   :  { %266 = vmatpush3.bf16.msra.mxu0 %v275_v5 }
  0x12   :  { %268 = vmatmul.mubr.msk.bf16.vlgmr.msra.gmra.mxu0 %vm83_vm1, %v277_v6 }
  0xd2   :  { %v269_v8 = vpop.f32.mrf.mxu0 }
  0xd3   :  { %v141_v10 = vadd.f32 %v269_v8, %v47_v7 }
  0xd4   :  { %v124_v11 = vpop.f32.mrf.mxu0 }
  0xd5   :  { %146 = vst.msk [vmem:[#allocation2 + $0x10] sm:$0xff] %vm28_vm0, %v141_v10  ;;  %v139_v13 = vadd.f32 %v124_v11, %v45_v9 }
  0xd6   :  { %v270_v14 = vpop.f32.mrf.mxu0 }
  0xd7   :  { %144 = vst.msk [vmem:[#allocation2] sm:$0xff] %vm28_vm0, %v139_v13  ;;  %v142_v16 = vadd.f32 %v270_v14, %v48_v12 }
  0xd8   :  { %v127_v18 = vpop.f32.mrf.mxu0 }
  0xd9   :  { %147 = vst.msk [vmem:[#allocation2 + $0x18] sm:$0xff] %vm28_vm0, %v142_v16  ;;  %v140_v19 = vadd.f32 %v127_v18, %v46_v15 }
  0xdb   :  { %145 = vst.msk [vmem:[#allocation2 + $0x8] sm:$0xff] %vm28_vm0, %v140_v19 }
  0xdc   :  { %v153_v23 = vld [vmem:[#allocation2 + $0x10] sm:$0xff] }
  0xdd   :  { %v164_v24 = vadd.f32 %v233_v20, %v153_v23 }
  0xde   :  { %v151_v27 = vld [vmem:[#allocation2] sm:$0xff] }
  0xdf   :  { %v176_v28 = vadd.f32 %v250_v22, %v164_v24  ;;  %v162_v29 = vadd.f32 %v233_v20, %v151_v27 }
  0xe0   :  { %v154_v32 = vld [vmem:[#allocation2 + $0x18] sm:$0xff] }
  0xe1   :  { %v187_v33 = vmul.f32 %v234_v26, %v176_v28  ;;  %v174_v34 = vadd.f32 %v246_v25, %v162_v29  ;;  %v165_v35 = vadd.f32 %v233_v20, %v154_v32 }
  0xe2   :  { %v152_v37 = vld [vmem:[#allocation2 + $0x8] sm:$0xff] }
  0xe3   :  { %v198_v38 = vadd.f32 %v235_v31, %v187_v33  ;;  %v185_v39 = vmul.f32 %v234_v26, %v174_v34  ;;  %v177_v40 = vadd.f32 %v251_v30, %v165_v35  ;;  %v163_v41 = vadd.f32 %v233_v20, %v152_v37 }
  0xe5   :  { %v242_v42 = vpack.c.bf16 %v198_v38, %v198_v38  ;;  %v196_v43 = vadd.f32 %v235_v31, %v185_v39  ;;  %v188_v44 = vmul.f32 %v234_v26, %v177_v40  ;;  %v175_v45 = vadd.f32 %v247_v36, %v163_v41 }
  0xe7   :  { %219 = vst.msk [vmem:[%s373_s6 + $0x8] sm:$0xf] %vm216_vm2, %v242_v42  ;;  %v240_v46 = vpack.c.bf16 %v196_v43, %v196_v43  ;;  %v199_v47 = vadd.f32 %v235_v31, %v188_v44  ;;  %v186_v48 = vmul.f32 %v234_v26, %v175_v45 }
  0xe9   :  { %217 = vst.msk [vmem:[%s373_s6] sm:$0xf] %vm216_vm2, %v240_v46  ;;  %v243_v49 = vpack.c.bf16 %v199_v47, %v199_v47  ;;  %v197_v50 = vadd.f32 %v235_v31, %v186_v48 }
  0xeb   :  { %220 = vst.msk [vmem:[%s373_s6 + $0xc] sm:$0xf] %vm216_vm2, %v243_v49  ;;  %v241_v51 = vpack.c.bf16 %v197_v50, %v197_v50 }
  0xed   :  { %218 = vst.msk [vmem:[%s373_s6 + $0x4] sm:$0xf] %vm216_vm2, %v241_v51 }

// kernel: patchtst_forward.23
= control target key start
LH: loop header
LB: loop body
LE: loop exit
PB: predicated region body
PF: predicated region fallthrough
CT: control target
= control target key end

     0   :  { %vm19_vm0 = vcmask 64512   ;;  %v195_v0 = vmov 0.0   ;;  %vm196_vm1 = vmmov 0   ;;  %s253_s1 = inlined_call_operand.vmem [shape: bf16[128,8], index: 1, kind: input, shape index: {}]   ;;  %s254_s0 = inlined_call_operand.vmem [shape: bf16[8,128], index: 0, kind: input, shape index: {}]   ;;  %s255_s2 = inlined_call_operand.vmem [shape: f32[1,8], index: 2, kind: input, shape index: {}]   ;;  %s256_s3 = inlined_call_operand.vmem [shape: f32[8,8], index: 3, kind: output, shape index: {}]  }
   0x1   :  { %165 = vmatprep.subr.bf16.mxu0 %v195_v0  ;;  %v187_v1 = vld [vmem:[%s253_s1 + $0x38] sm:$0xff]   ;;  %181 = vmatprep.mubr.msk.bf16.mxu0 %vm196_vm1, %v195_v0  ;;  %20 = vst.msk [vmem:[#allocation2] sm:$0xff] %vm19_vm0, %v195_v0  ;;  %v188_v2 = vld [vmem:[%s253_s1 + $0x30] sm:$0xff]   ;;  %v189_v3 = vld [vmem:[%s253_s1 + $0x28] sm:$0xff]  }
   0x2   :  { %166 = vmatpush3.bf16.msra.mxu0 %v187_v1  ;;  %v190_v4 = vld [vmem:[%s253_s1 + $0x20] sm:$0xff]   ;;  %v191_v5 = vld [vmem:[%s253_s1 + $0x18] sm:$0xff]   ;;  %v192_v6 = vld [vmem:[%s253_s1 + $0x10] sm:$0xff]  }
   0x3   :  { %167 = vmatprep.subr.bf16.mxu0 %v195_v0  ;;  %v193_v7 = vld [vmem:[%s253_s1 + $0x8] sm:$0xff]   ;;  %v194_v8 = vld [vmem:[%s253_s1] sm:$0xff]  }
   0x4   :  { %v21_v9 = vld [vmem:[%s254_s0] sm:$0xf] }
   0x5   :  { %v155_v16 = vld [vmem:[%s255_s2] ss:$0 sm:$0xff] }
   0x6   :  { %168 = vmatpush3.bf16.msra.mxu0 %v188_v2 }
   0x7   :  { %169 = vmatprep.subr.bf16.mxu0 %v195_v0 }
   0x8   :  { %v38_v10 = vld [vmem:[#allocation2] sm:$0xff] }
   0xa   :  { %170 = vmatpush3.bf16.msra.mxu0 %v189_v3 }
   0xb   :  { %171 = vmatprep.subr.bf16.mxu0 %v195_v0 }
   0xe   :  { %172 = vmatpush3.bf16.msra.mxu0 %v190_v4 }
   0xf   :  { %173 = vmatprep.subr.bf16.mxu0 %v195_v0 }
  0x12   :  { %174 = vmatpush3.bf16.msra.mxu0 %v191_v5 }
  0x13   :  { %175 = vmatprep.subr.bf16.mxu0 %v195_v0 }
  0x16   :  { %176 = vmatpush3.bf16.msra.mxu0 %v192_v6 }
  0x17   :  { %177 = vmatprep.subr.bf16.mxu0 %v195_v0 }
  0x1a   :  { %178 = vmatpush3.bf16.msra.mxu0 %v193_v7 }
  0x1b   :  { %179 = vmatprep.subr.bf16.mxu0 %v195_v0 }
  0x1e   :  { %180 = vmatpush3.bf16.msra.mxu0 %v194_v8 }
  0x21   :  { %182 = vmatmul.mubr.bf16.vlgmr.msra.gmra.mxu0 %v21_v9 }
  0xe1   :  { %v121_v11 = vpop.f32.mrf.mxu0 }
  0xe2   :  { %v127_v12 = vadd.f32 %v121_v11, %v38_v10 }
  0xe3   :  { %v183_v13 = vpop.f32.mrf.mxu0 }
  0xe4   :  { %129 = vst.msk [vmem:[#allocation2] sm:$0xff] %vm19_vm0, %v127_v12 }
  0xe5   :  { %v124_v14 = vpop.f32.mrf.mxu0 }
  0xe7   :  { %v184_v15 = vpop.f32.mrf.mxu0 }
  0xeb   :  { %v133_v17 = vld [vmem:[#allocation2] sm:$0xff] }
  0xec   :  { %v141_v18 = vadd.f32 %v155_v16, %v133_v17 }
  0xee   :  { %142 = vst.msk [vmem:[%s256_s3] sm:$0xff] %vm19_vm0, %v141_v18 }

// kernel: patchtst_forward.19
= control target key start
LH: loop header
LB: loop body
LE: loop exit
PB: predicated region body
PF: predicated region fallthrough
CT: control target
= control target key end

     0   :  { %s2873_s12 = smov 0   ;;  %s3369_s0 = inlined_call_operand.vmem [shape: bf16[8,4,96], index: 0, kind: input, shape index: {}]   ;;  %s3370_s1 = inlined_call_operand.vmem [shape: bf16[8,4,16], index: 1, kind: input, shape index: {}, may-alias: {1,3}]   ;;  %s3371_s2 = inlined_call_operand.vmem [shape: bf16[8,4,32], index: 2, kind: output, shape index: {0}]   ;;  %s3372_s3 = inlined_call_operand.vmem [shape: bf16[8,4,16], index: 3, kind: output, shape index: {1}, may-alias: {1,3}]  }
   0x1 LB: > { %s2326_s13 = sadd.s32 4294967295, %s2830_s12   ;;  %p2330_p0 = scmp.ge.s32.totalorder %s2830_s12, 1  ;;  %s2830_s12 = sphi %s2873_s12, %s14_s12  }
   0x2   : > { %p152_p1 = scmp.lt.s32.totalorder %s2830_s12, 3 }
   0x4   : > { %p153_p2 = pnand %p2330_p0, %p152_p1 }
   0x5   : > { %s2331_s14 = sshll.u32 (!%p153_p2), %s2326_s13, 2  ;;  %s2835_s19 = smov (!%p153_p2), 96  }
   0x6   : > { %156 = sbr.rel (%p153_p2) target bundleno = 2710 (0xa96), region = 28  ;;  %p187_p3 = scmp.lt.s32.totalorder (!%p153_p2), %s2331_s14, 7 }
   0x7   : > { %s2836_s23 = smov (!%p153_p2), 64   ;;  %s2837_s24 = smov (!%p153_p2), 88  }
   0x8   : > { %s2838_s25 = smov (!%p153_p2), 120   ;;  %s2839_s26 = smov (!%p153_p2), 124  }
   0x9   : > { %s2840_s27 = smov (!%p153_p2), 56   ;;  %s2841_s28 = smov (!%p153_p2), 80  }
   0xa   : > { %s2842_s29 = smov (!%p153_p2), 112   ;;  %s2843_s30 = smov (!%p153_p2), 48  }
   0xb   : > { %v223_v0 = vlaneseq  ;;  %v2832_v1 = vmov 1983009808   ;;  %v2833_v3 = vmov 0.0   ;;  %s3374_s14 = smov (!%p187_p3, %s2331_s14), 7  ;;  %vm2834_vm0 = vmmov 0   ;;  %s2844_s4 = smov 72  }
   0xc   : > { %v221_v2 = vunpack.c.l.s4 %v2832_v1  ;;  %2437 = vmatprep.subr.bf16.mxu0 %v2833_v3  ;;  %2443 = vmatprep.subr.bf16.mxu1 %v2833_v3  ;;  %s2887_s15 = sshll.u32 %s3374_s14, 1  ;;  %vm229_vm1 = vcmask 64512   ;;  %vm456_vm2 = vcmask 27648   ;;  %vm511_vm3 = vcmask 1041408   ;;  %s2845_s5 = smov 104  }
   0xd   : > { %v224_v4 = vshrl.u32 %v223_v0, 7  ;;  %2439 = vmatprep.mubr.msk.bf16.mxu0 %vm2834_vm0, %v2833_v3  ;;  %2445 = vmatprep.mubr.msk.bf16.mxu1 %vm2834_vm0, %v2833_v3  ;;  %s190_s18 = scalar_lea.vmem %s3369_s0, %s2887_s15  ;;  %s196_s22 = scalar_lea.vmem %s3370_s1, %s2887_s15  ;;  %vm507_vm4 = vcmask 31744   ;;  %vm2135_vm5 = vcmask 130048   ;;  %vm2210_vm6 = vcmask 97280  }
   0xe   : > { %v222_v5 = vunpack.c.0.s8 %v221_v2  ;;  %v211_v7 = vld [vmem:[%s190_s18] sm:$0x3]  ;;  %v212_v8 = vld [vmem:[%s190_s18 + $0x2] sm:$0x3]  ;;  %v213_v9 = vld [vmem:[%s190_s18 + $0x4] sm:$0x3]  ;;  %s208_s16 = scalar_lea.vmem %s3372_s3, %s2887_s15  ;;  %s202_s20 = scalar_lea.vmem %s3371_s2, %s2887_s15 }
   0xf   : > { %v214_v12 = vld [vmem:[%s190_s18 + $0x6] sm:$0x3]  ;;  %v2929_v23 = vld [vmem:[%s196_s22] sm:$0x3]  ;;  %v2932_v26 = vld [vmem:[%s196_s22 + $0x2] sm:$0x3] }
  0x10   : > { %v225_v6 = vsub.s32 %v222_v5, %v224_v4  ;;  %v448_v24 = vunpack.c.l.bf16 %v2929_v23  ;;  %v449_v30 = vunpack.c.l.bf16 %v2932_v26  ;;  %v2939_v33 = vld [vmem:[%s196_s22 + $0x4] sm:$0x3]  ;;  %v2948_v42 = vld [vmem:[%s196_s22 + $0x6] sm:$0x3]  ;;  %s2846_s6 = smov 116   ;;  %s2847_s7 = smov 40  }
  0x11   : > { %v450_v39 = vunpack.c.l.bf16 %v2939_v33  ;;  %v451_v48 = vunpack.c.l.bf16 %v2948_v42  ;;  %s2848_s8 = smov 4   ;;  %s2849_s9 = smov 8   ;;  %vm2219_vm7 = vcmask 123904   ;;  %vm2140_vm8 = vcmask 195584  }
  0x12   : > { %v2893_v10 = vrot.slane %v211_v7, %v225_v6  ;;  %v2895_v11 = vrot.slane %v213_v9, %v225_v6  ;;  %v2898_v13 = vrot.slane %v212_v8, %v225_v6  ;;  %v2901_v14 = vrot.slane %v214_v12, %v225_v6  ;;  %s2850_s10 = smov 16   ;;  %s2851_s11 = smov 12  }
  0x13   : > { %s2852_s17 = smov 24   ;;  %vm2149_vm9 = vcmask 254976  }
  0x14   : > { %227 = vrot.lane.b32.xlu0 %v2893_v10, %s2835_s19  ;;  %340 = vrot.lane.b32.xlu1 %v2895_v11, %s2835_s19 }
  0x18   : > { %284 = vrot.lane.b32.xlu0 %v2898_v13, %s2835_s19  ;;  %396 = vrot.lane.b32.xlu1 %v2901_v14, %s2835_s19 }
  0x86   : > { %v228_v15 = vpop.permute.xlu0 %227  ;;  %v341_v17 = vpop.permute.xlu1 %340 }
  0x87   : > { %v234_v16 = vsel %vm229_vm1, %v228_v15, 0  ;;  %v346_v20 = vsel %vm229_vm1, %v341_v17, 0 }
  0x88   : > { %2438 = vmatpush3.bf16.xpose.msra.mxu0 %v234_v16 }
  0x89   : > { %2449 = vmatprep.subr.bf16.mxu0 %v2833_v3 }
  0x8a   : > { %v285_v18 = vpop.permute.xlu0 %284  ;;  %v397_v21 = vpop.permute.xlu1 %396 }
  0x8b   : > { %v290_v19 = vsel %vm229_vm1, %v285_v18, 0  ;;  %v402_v22 = vsel %vm229_vm1, %v397_v21, 0 }
  0x8c   : > { %2444 = vmatpush3.bf16.xpose.msra.mxu1 %v290_v19 }
  0x8d   : > { %2455 = vmatprep.subr.bf16.mxu1 %v2833_v3 }
  0x8f   : > { %2440 = vmatmul.mubr.msk.bf16.vlgmr.msra.gmra.mxu0 %vm229_vm1, %v211_v7 }
  0x90   : > { %2450 = vmatpush3.bf16.xpose.msra.mxu0 %v346_v20  ;;  %2451 = vmatprep.mubr.msk.bf16.mxu0 %vm2834_vm0, %v2833_v3 }
  0x91   : > { %2461 = vmatprep.subr.bf16.mxu0 %v2833_v3 }
  0x93   : > { %2446 = vmatmul.mubr.msk.bf16.vlgmr.msra.gmra.mxu1 %vm229_vm1, %v212_v8 }
  0x94   : > { %2456 = vmatpush3.bf16.xpose.msra.mxu1 %v402_v22  ;;  %2457 = vmatprep.mubr.msk.bf16.mxu1 %vm2834_vm0, %v2833_v3  ;;  %v2993_v22 = vpack.i.bf16 %v449_v30, %v448_v24 }
  0x95   : > { %2467 = vmatprep.subr.bf16.mxu1 %v2833_v3 }
  0x97   : > { %2452 = vmatmul.mubr.msk.bf16.vlgmr.msra.gmra.mxu0 %vm229_vm1, %v213_v9 }
  0x98   : > { %2463 = vmatprep.mubr.msk.bf16.mxu0 %vm2834_vm0, %v2833_v3 }
  0x9b   : > { %2458 = vmatmul.mubr.msk.bf16.vlgmr.msra.gmra.mxu1 %vm229_vm1, %v214_v12 }
  0x9c   : > { %2469 = vmatprep.mubr.msk.bf16.mxu1 %vm2834_vm0, %v2833_v3 }
 0x14f   : > { %v270_v25 = vpop.f32.mrf.mxu0 }
 0x150   : > { %v444_v27 = vmul.f32 0.35355338, %v270_v25  ;;  %v2997_v25 = vpack.i.bf16 %v451_v48, %v450_v39 }
 0x151   : > { %v2441_v28 = vpop.f32.mrf.mxu0 }
 0x152   : > { %v2936_v29 = vadd.f32 %v448_v24, %v444_v27 }
 0x153   : > { %v273_v31 = vpop.f32.mrf.mxu0  ;;  %v326_v32 = vpop.f32.mrf.mxu1 }
 0x154   : > { %v445_v34 = vmul.f32 0.35355338, %v326_v32  ;;  %v457_v35 = vsel %vm456_vm2, %v2936_v29, -inf }
 0x155   : > { %458 = vmax.xlane.f32.xlu0 %v457_v35  ;;  %v2442_v36 = vpop.f32.mrf.mxu0  ;;  %v2447_v37 = vpop.f32.mrf.mxu1 }
 0x156   : > { %v2945_v38 = vadd.f32 %v449_v30, %v445_v34 }
 0x157   : > { %v329_v40 = vpop.f32.mrf.mxu1  ;;  %v382_v41 = vpop.f32.mrf.mxu0 }
 0x158   : > { %v446_v43 = vmul.f32 0.35355338, %v382_v41  ;;  %v460_v44 = vsel %vm456_vm2, %v2945_v38, -inf }
 0x159   : > { %461 = vmax.xlane.f32.xlu1 %v460_v44  ;;  %v2448_v45 = vpop.f32.mrf.mxu1  ;;  %v2453_v46 = vpop.f32.mrf.mxu0 }
 0x15a   : > { %v2954_v47 = vadd.f32 %v450_v39, %v446_v43 }
 0x15b   : > { %v438_v49 = vpop.f32.mrf.mxu1  ;;  %v385_v50 = vpop.f32.mrf.mxu0 }
 0x15c   : > { %v447_v51 = vmul.f32 0.35355338, %v438_v49  ;;  %v463_v52 = vsel %vm456_vm2, %v2954_v47, -inf }
 0x15d   : > { %464 = vmax.xlane.f32.xlu0 %v463_v52  ;;  %v2454_v53 = vpop.f32.mrf.mxu0  ;;  %v2459_v54 = vpop.f32.mrf.mxu1 }
 0x15e   : > { %v2959_v55 = vadd.f32 %v451_v48, %v447_v51 }
 0x15f   : > { %v441_v56 = vpop.f32.mrf.mxu1 }
 0x160   : > { %v466_v57 = vsel %vm456_vm2, %v2959_v55, -inf }
 0x161   : > { %467 = vmax.xlane.f32.xlu0 %v466_v57  ;;  %v2460_v58 = vpop.f32.mrf.mxu1 }
 0x16a   : > { %505 = vrot.lane.b32.xlu1 %v2893_v10, %s2836_s23 }
 0x1de   : > { %v459_v59 = vpop.xlane.xlu0 %458 }
 0x1df   : > { %v469_v60 = vsub.f32 %v2936_v29, %v459_v59 }
 0x1e1   : > { %v473_v61 = vmul.f32 1.442695, %v469_v60 }
 0x1e2   : > { %v462_v62 = vpop.xlane.xlu1 %461 }
 0x1e3   : > { %2748 = vpow2.f32 %v473_v61  ;;  %v470_v63 = vsub.f32 %v2945_v38, %v462_v62 }
 0x1e5   : > { %v475_v0 = vmul.f32 1.442695, %v470_v63 }
 0x1e6   : > { %v506_v1 = vpop.permute.xlu1 %505  ;;  %v465_v8 = vpop.xlane.xlu0 %464 }
 0x1e7   : > { %2750 = vpow2.f32 %v475_v0  ;;  %v513_v2 = vsel %vm511_vm3, %v506_v1, 0  ;;  %v471_v12 = vsub.f32 %v2954_v47, %v465_v8 }
 0x1e8   : > { %2462 = vmatpush3.bf16.msra.mxu0 %v513_v2 }
 0x1e9   : > { %2473 = vmatprep.subr.bf16.mxu0 %v2833_v3  ;;  %v477_v16 = vmul.f32 1.442695, %v471_v12 }
 0x1ea   : > { %v468_v9 = vpop.xlane.xlu0 %467 }
 0x1eb   : > { %v472_v15 = vsub.f32 %v2959_v55, %v468_v9  ;;  %2752 = vpow2.f32 %v477_v16 }
 0x1ed   : > { %v479_v17 = vmul.f32 1.442695, %v472_v15 }
 0x1ef   : > { %2754 = vpow2.f32 %v479_v17 }
 0x1f0   : > { %v2749_v4 = vpop.eup %2748 }
 0x1f1   : > { %v481_v5 = vsel %vm456_vm2, %v2749_v4, 0.0 }
 0x1f2   : > { %482 = vadd.xlane.f32.xlu1 %v481_v5 }
 0x1f4   : > { %v2751_v6 = vpop.eup %2750 }
 0x1f5   : > { %v484_v7 = vsel %vm456_vm2, %v2751_v6, 0.0 }
 0x1f6   : > { %485 = vadd.xlane.f32.xlu0 %v484_v7 }
 0x1f8   : > { %v2753_v18 = vpop.eup %2752 }
 0x1f9   : > { %v487_v20 = vsel %vm456_vm2, %v2753_v18, 0.0 }
 0x1fc   : > { %v2755_v19 = vpop.eup %2754 }
 0x1fd   : > { %v490_v21 = vsel %vm456_vm2, %v2755_v19, 0.0 }
 0x203   : > { %603 = vrot.lane.b32.xlu1 %v2895_v11, %s2836_s23 }
 0x207   : > { %651 = vrot.lane.b32.xlu1 %v2901_v14, %s2836_s23 }
 0x20c   : > { %555 = vrot.lane.b32.xlu0 %v2898_v13, %s2836_s23 }
 0x22b   : > { %488 = vadd.xlane.f32.xlu1 %v487_v20  ;;  %491 = vadd.xlane.f32.xlu0 %v490_v21 }
 0x23c   : > { %751 = vrot.lane.b32.xlu1 %v2898_v13, %s2837_s24 }
 0x240   : > { %801 = vrot.lane.b32.xlu1 %v2895_v11, %s2837_s24 }
 0x241   : > { %701 = vrot.lane.b32.xlu0 %v2893_v10, %s2837_s24 }
 0x244   : > { %851 = vrot.lane.b32.xlu1 %v2901_v14, %s2837_s24 }
 0x245   : > { %699 = vrot.lane.b32.xlu0 %v2893_v10, %s2838_s25 }
 0x248   : > { %849 = vrot.lane.b32.xlu1 %v2901_v14, %s2838_s25 }
 0x249   : > { %749 = vrot.lane.b32.xlu0 %v2898_v13, %s2838_s25 }
 0x24c   : > { %2664 = vrot.lane.b32.xlu1 %v2997_v25, %s2839_s26 }
 0x24d   : > { %799 = vrot.lane.b32.xlu0 %v2895_v11, %s2838_s25 }
 0x251   : > { %2659 = vrot.lane.b32.xlu0 %v2993_v22, %s2839_s26 }
 0x27b   : > { %v483_v27 = vpop.xlane.xlu1 %482 }
 0x27c   : > { %2756 = vrcp.f32 %v483_v27 }
 0x27f   : > { %v486_v28 = vpop.xlane.xlu0 %485  ;;  %v604_v26 = vpop.permute.xlu1 %603 }
 0x280   : > { %2758 = vrcp.f32 %v486_v28  ;;  %v609_v34 = vsel %vm511_vm3, %v604_v26, 0 }
 0x283   : > { %v556_v31 = vpop.permute.xlu0 %555  ;;  %v652_v36 = vpop.permute.xlu1 %651 }
 0x284   : > { %v561_v23 = vsel %vm511_vm3, %v556_v31, 0  ;;  %v657_v39 = vsel %vm511_vm3, %v652_v36, 0 }
 0x285   : > { %2468 = vmatpush3.bf16.msra.mxu1 %v561_v23 }
 0x286   : > { %2479 = vmatprep.subr.bf16.mxu1 %v2833_v3 }
 0x289   : > { %v2757_v24 = vpop.eup %2756 }
 0x28a   : > { %v497_v30 = vmul.f32 %v2757_v24, %v2749_v4 }
 0x28c   : > { %v501_v32 = vpack.c.bf16 %v497_v30, %v497_v30 }
 0x28d   : > { %v2759_v33 = vpop.eup %2758 }
 0x28e   : > { %2464 = vmatmul.mubr.msk.bf16.vlgmr.msra.gmra.mxu0 %vm507_vm4, %v501_v32  ;;  %v498_v35 = vmul.f32 %v2759_v33, %v2751_v6 }
 0x28f   : > { %2474 = vmatpush3.bf16.msra.mxu0 %v609_v34  ;;  %2475 = vmatprep.mubr.msk.bf16.mxu0 %vm2834_vm0, %v2833_v3 }
 0x290   : > { %v502_v37 = vpack.c.bf16 %v498_v35, %v498_v35  ;;  %2485 = vmatprep.subr.bf16.mxu0 %v2833_v3 }
 0x292   : > { %2470 = vmatmul.mubr.msk.bf16.vlgmr.msra.gmra.mxu1 %vm507_vm4, %v502_v37 }
 0x293   : > { %2480 = vmatpush3.bf16.msra.mxu1 %v657_v39  ;;  %2481 = vmatprep.mubr.msk.bf16.mxu1 %vm2834_vm0, %v2833_v3 }
 0x294   : > { %2491 = vmatprep.subr.bf16.mxu1 %v2833_v3 }
 0x2b4   : > { %v489_v40 = vpop.xlane.xlu1 %488  ;;  %v492_v41 = vpop.xlane.xlu0 %491 }
 0x2b5   : > { %2760 = vrcp.f32 %v489_v40 }
 0x2b6   : > { %2762 = vrcp.f32 %v492_v41 }
 0x2b8   : > { %v752_v42 = vpop.permute.xlu1 %751  ;;  %v702_v43 = vpop.permute.xlu0 %701 }
 0x2b9   : > { %v707_v49 = vsel %vm229_vm1, %v702_v43, 0  ;;  %v757_v52 = vsel %vm229_vm1, %v752_v42, 0 }
 0x2bc   : > { %v802_v51 = vpop.permute.xlu1 %801  ;;  %v700_v54 = vpop.permute.xlu0 %699 }
 0x2bd   : > { %v807_v57 = vsel %vm229_vm1, %v802_v51, 0 }
 0x2c0   : > { %v852_v56 = vpop.permute.xlu1 %851  ;;  %v750_v58 = vpop.permute.xlu0 %749 }
 0x2c1   : > { %v857_v59 = vsel %vm229_vm1, %v852_v56, 0 }
 0x2c2   : > { %v2761_v44 = vpop.eup %2760 }
 0x2c3   : > { %v2763_v45 = vpop.eup %2762  ;;  %v499_v46 = vmul.f32 %v2761_v44, %v2753_v18 }
 0x2c4   : > { %v500_v48 = vmul.f32 %v2763_v45, %v2755_v19  ;;  %v800_v60 = vpop.permute.xlu0 %799  ;;  %v850_v61 = vpop.permute.xlu1 %849 }
 0x2c5   : > { %v503_v50 = vpack.c.bf16 %v499_v46, %v499_v46 }
 0x2c6   : > { %v504_v53 = vpack.c.bf16 %v500_v48, %v500_v48 }
 0x2c7   : > { %2476 = vmatmul.mubr.msk.bf16.vlgmr.msra.gmra.mxu0 %vm507_vm4, %v503_v50 }
 0x2c8   : > { %2482 = vmatmul.mubr.msk.bf16.vlgmr.msra.gmra.mxu1 %vm507_vm4, %v504_v53  ;;  %2486 = vmatpush3.bf16.xpose.msra.mxu0 %v707_v49  ;;  %v2660_v16 = vpop.permute.xlu0 %2659  ;;  %v2665_v32 = vpop.permute.xlu1 %2664 }
 0x2c9   : > { %2492 = vmatpush3.bf16.xpose.msra.mxu1 %v757_v52  ;;  %2487 = vmatprep.mubr.msk.bf16.mxu0 %vm2834_vm0, %v2833_v3 }
 0x2ca   : > { %2493 = vmatprep.mubr.msk.bf16.mxu1 %vm2834_vm0, %v2833_v3  ;;  %2497 = vmatprep.subr.bf16.mxu0 %v2833_v3 }
 0x2cb   : > { %2503 = vmatprep.subr.bf16.mxu1 %v2833_v3 }
 0x2cf   : > { %2488 = vmatmul.mubr.msk.bf16.vlgmr.msra.gmra.mxu0 %vm229_vm1, %v700_v54 }
 0x2d0   : > { %2494 = vmatmul.mubr.msk.bf16.vlgmr.msra.gmra.mxu1 %vm229_vm1, %v750_v58  ;;  %2498 = vmatpush3.bf16.xpose.msra.mxu0 %v807_v57 }
 0x2d1   : > { %2504 = vmatpush3.bf16.xpose.msra.mxu1 %v857_v59  ;;  %2499 = vmatprep.mubr.msk.bf16.mxu0 %vm2834_vm0, %v2833_v3 }
 0x2d2   : > { %2505 = vmatprep.mubr.msk.bf16.mxu1 %vm2834_vm0, %v2833_v3  ;;  %2509 = vmatprep.subr.bf16.mxu0 %v2833_v3 }
 0x2d3   : > { %2515 = vmatprep.subr.bf16.mxu1 %v2833_v3 }
 0x2d7   : > { %2500 = vmatmul.mubr.msk.bf16.vlgmr.msra.gmra.mxu0 %vm229_vm1, %v800_v60 }
 0x2d8   : > { %2506 = vmatmul.mubr.msk.bf16.vlgmr.msra.gmra.mxu1 %vm229_vm1, %v850_v61  ;;  %2511 = vmatprep.mubr.msk.bf16.mxu0 %vm2834_vm0, %v2833_v3 }
 0x2d9   : > { %2517 = vmatprep.mubr.msk.bf16.mxu1 %vm2834_vm0, %v2833_v3 }
 0x34e   : > { %v3039_v62 = vpop.f32.mrf.mxu0 }
 0x350   : > { %v2465_v63 = vpop.f32.mrf.mxu0 }
 0x352   : > { %v552_v0 = vpop.f32.mrf.mxu0  ;;  %v3041_v1 = vpop.f32.mrf.mxu1 }
 0x354   : > { %v2466_v2 = vpop.f32.mrf.mxu0  ;;  %v2471_v4 = vpop.f32.mrf.mxu1 }
 0x356   : > { %v600_v5 = vpop.f32.mrf.mxu1 }
 0x358   : > { %v2472_v6 = vpop.f32.mrf.mxu1 }
 0x387   : > { %v3043_v7 = vpop.f32.mrf.mxu0 }
 0x388   : > { %v3045_v8 = vpop.f32.mrf.mxu1 }
 0x389   : > { %v2477_v9 = vpop.f32.mrf.mxu0 }
 0x38a   : > { %v2483_v12 = vpop.f32.mrf.mxu1 }
 0x38b   : > { %v648_v15 = vpop.f32.mrf.mxu0 }
 0x38c   : > { %v696_v17 = vpop.f32.mrf.mxu1 }
 0x38d   : > { %v2478_v18 = vpop.f32.mrf.mxu0 }
 0x38e   : > { %v2484_v19 = vpop.f32.mrf.mxu1 }
 0x38f   : > { %v743_v20 = vpop.f32.mrf.mxu0 }
 0x390   : > { %v899_v21 = vmul.f32 0.35355338, %v743_v20  ;;  %v793_v27 = vpop.f32.mrf.mxu1 }
 0x391   : > { %v900_v28 = vmul.f32 0.35355338, %v793_v27  ;;  %v2489_v31 = vpop.f32.mrf.mxu0 }
 0x392   : > { %v3047_v23 = vadd.low.f32.bf16 %v899_v21, %v2660_v16  ;;  %v2495_v24 = vpop.f32.mrf.mxu1 }
 0x393   : > { %v3049_v26 = vadd.high.f32.bf16 %v900_v28, %v2660_v16  ;;  %v746_v30 = vpop.f32.mrf.mxu0 }
 0x394   : > { %v923_v33 = vsel %vm456_vm2, %v3047_v23, -inf  ;;  %v796_v34 = vpop.f32.mrf.mxu1 }
 0x395   : > { %v2490_v35 = vpop.f32.mrf.mxu0  ;;  %v926_v36 = vsel %vm456_vm2, %v3049_v26, -inf  ;;  %924 = vmax.xlane.f32.xlu0 %v923_v33 }
 0x396   : > { %927 = vmax.xlane.f32.xlu1 %v926_v36  ;;  %v2496_v37 = vpop.f32.mrf.mxu1 }
 0x397   : > { %v843_v39 = vpop.f32.mrf.mxu0 }
 0x398   : > { %v901_v40 = vmul.f32 0.35355338, %v843_v39  ;;  %v893_v41 = vpop.f32.mrf.mxu1 }
 0x399   : > { %v902_v42 = vmul.f32 0.35355338, %v893_v41  ;;  %v2501_v43 = vpop.f32.mrf.mxu0 }
 0x39a   : > { %v3055_v44 = vadd.low.f32.bf16 %v901_v40, %v2665_v32  ;;  %v2507_v45 = vpop.f32.mrf.mxu1 }
 0x39b   : > { %v3057_v46 = vadd.high.f32.bf16 %v902_v42, %v2665_v32  ;;  %v846_v48 = vpop.f32.mrf.mxu0 }
 0x39c   : > { %v929_v49 = vsel %vm456_vm2, %v3055_v44, -inf  ;;  %v896_v50 = vpop.f32.mrf.mxu1 }
 0x39d   : > { %930 = vmax.xlane.f32.xlu0 %v929_v49  ;;  %v2502_v51 = vpop.f32.mrf.mxu0  ;;  %v932_v52 = vsel %vm456_vm2, %v3057_v46, -inf }
 0x39e   : > { %v2508_v53 = vpop.f32.mrf.mxu1 }
 0x3a1   : > { %933 = vmax.xlane.f32.xlu0 %v932_v52 }
 0x3a7   : > { %971 = vrot.lane.b32.xlu1 %v2893_v10, %s2840_s27 }
 0x41e   : > { %v925_v54 = vpop.xlane.xlu0 %924 }
 0x41f   : > { %v928_v56 = vpop.xlane.xlu1 %927  ;;  %v935_v57 = vsub.f32 %v3047_v23, %v925_v54 }
 0x420   : > { %v936_v58 = vsub.f32 %v3049_v26, %v928_v56 }
 0x421   : > { %v939_v59 = vmul.f32 1.442695, %v935_v57 }
 0x422   : > { %v941_v60 = vmul.f32 1.442695, %v936_v58 }
 0x423   : > { %2764 = vpow2.f32 %v939_v59  ;;  %v972_v61 = vpop.permute.xlu1 %971 }
 0x424   : > { %2766 = vpow2.f32 %v941_v60  ;;  %v977_v63 = vsel %vm511_vm3, %v972_v61, 0 }
 0x425   : > { %2510 = vmatpush3.bf16.msra.mxu0 %v977_v63 }
 0x426   : > { %2521 = vmatprep.subr.bf16.mxu0 %v2833_v3  ;;  %v931_v6 = vpop.xlane.xlu0 %930 }
 0x427   : > { %v937_v15 = vsub.f32 %v3055_v44, %v931_v6 }
 0x429   : > { %v943_v17 = vmul.f32 1.442695, %v937_v15 }
 0x42a   : > { %v934_v9 = vpop.xlane.xlu0 %933 }
 0x42b   : > { %v938_v12 = vsub.f32 %v3057_v46, %v934_v9 }
 0x42d   : > { %v945_v16 = vmul.f32 1.442695, %v938_v12 }
 0x42f   : > { %2768 = vpow2.f32 %v945_v16 }
 0x430   : > { %v2765_v0 = vpop.eup %2764  ;;  %2770 = vpow2.f32 %v943_v17 }
 0x431   : > { %v2767_v2 = vpop.eup %2766  ;;  %v947_v4 = vsel %vm456_vm2, %v2765_v0, 0.0 }
 0x432   : > { %v950_v5 = vsel %vm456_vm2, %v2767_v2, 0.0  ;;  %948 = vadd.xlane.f32.xlu1 %v947_v4 }
 0x433   : > { %951 = vadd.xlane.f32.xlu0 %v950_v5 }
 0x43c   : > { %v2769_v18 = vpop.eup %2768 }
 0x43d   : > { %v2771_v19 = vpop.eup %2770  ;;  %v956_v20 = vsel %vm456_vm2, %v2769_v18, 0.0 }
 0x43e   : > { %v953_v21 = vsel %vm456_vm2, %v2771_v19, 0.0 }
 0x443   : > { %1067 = vrot.lane.b32.xlu1 %v2895_v11, %s2840_s27 }
 0x447   : > { %1115 = vrot.lane.b32.xlu1 %v2901_v14, %s2840_s27 }
 0x449   : > { %1019 = vrot.lane.b32.xlu0 %v2898_v13, %s2840_s27 }
 0x468   : > { %957 = vadd.xlane.f32.xlu0 %v956_v20 }
 0x46b   : > { %954 = vadd.xlane.f32.xlu1 %v953_v21 }
 0x47c   : > { %1215 = vrot.lane.b32.xlu1 %v2898_v13, %s2841_s28 }
 0x47e   : > { %1165 = vrot.lane.b32.xlu0 %v2893_v10, %s2841_s28 }
 0x480   : > { %1265 = vrot.lane.b32.xlu1 %v2895_v11, %s2841_s28 }
 0x482   : > { %1163 = vrot.lane.b32.xlu0 %v2893_v10, %s2842_s29 }
 0x484   : > { %1315 = vrot.lane.b32.xlu1 %v2901_v14, %s2841_s28 }
 0x486   : > { %1213 = vrot.lane.b32.xlu0 %v2898_v13, %s2842_s29 }
 0x488   : > { %1313 = vrot.lane.b32.xlu1 %v2901_v14, %s2842_s29 }
 0x48a   : > { %1263 = vrot.lane.b32.xlu0 %v2895_v11, %s2842_s29 }
 0x48c   : > { %2674 = vrot.lane.b32.xlu1 %v2997_v25, %s2838_s25 }
 0x48e   : > { %2669 = vrot.lane.b32.xlu0 %v2993_v22, %s2838_s25 }
 0x4bb   : > { %v949_v27 = vpop.xlane.xlu1 %948 }
 0x4bc   : > { %2772 = vrcp.f32 %v949_v27  ;;  %v952_v28 = vpop.xlane.xlu0 %951 }
 0x4bd   : > { %2774 = vrcp.f32 %v952_v28 }
 0x4bf   : > { %v1068_v30 = vpop.permute.xlu1 %1067 }
 0x4c0   : > { %v1020_v31 = vpop.permute.xlu0 %1019  ;;  %v1073_v40 = vsel %vm511_vm3, %v1068_v30, 0 }
 0x4c1   : > { %v1025_v24 = vsel %vm511_vm3, %v1020_v31, 0 }
 0x4c2   : > { %2516 = vmatpush3.bf16.msra.mxu1 %v1025_v24 }
 0x4c3   : > { %2527 = vmatprep.subr.bf16.mxu1 %v2833_v3  ;;  %v1116_v36 = vpop.permute.xlu1 %1115 }
 0x4c4   : > { %v1121_v41 = vsel %vm511_vm3, %v1116_v36, 0 }
 0x4c9   : > { %v2773_v32 = vpop.eup %2772 }
 0x4ca   : > { %v2775_v33 = vpop.eup %2774  ;;  %v963_v34 = vmul.f32 %v2773_v32, %v2765_v0 }
 0x4cb   : > { %v964_v35 = vmul.f32 %v2775_v33, %v2767_v2 }
 0x4cc   : > { %v967_v37 = vpack.c.bf16 %v963_v34, %v963_v34 }
 0x4cd   : > { %v968_v39 = vpack.c.bf16 %v964_v35, %v964_v35 }
 0x4ce   : > { %2512 = vmatmul.mubr.msk.bf16.vlgmr.msra.gmra.mxu0 %vm507_vm4, %v967_v37 }
 0x4cf   : > { %2518 = vmatmul.mubr.msk.bf16.vlgmr.msra.gmra.mxu1 %vm507_vm4, %v968_v39  ;;  %2522 = vmatpush3.bf16.msra.mxu0 %v1073_v40 }
 0x4d0   : > { %2528 = vmatpush3.bf16.msra.mxu1 %v1121_v41  ;;  %2529 = vmatprep.mubr.msk.bf16.mxu1 %vm2834_vm0, %v2833_v3 }
 0x4d1   : > { %2539 = vmatprep.subr.bf16.mxu1 %v2833_v3  ;;  %2523 = vmatprep.mubr.msk.bf16.mxu0 %vm2834_vm0, %v2833_v3 }
 0x4d2   : > { %2533 = vmatprep.subr.bf16.mxu0 %v2833_v3 }
 0x4f1   : > { %v958_v42 = vpop.xlane.xlu0 %957 }
 0x4f2   : > { %2776 = vrcp.f32 %v958_v42 }
 0x4f4   : > { %v955_v43 = vpop.xlane.xlu1 %954 }
 0x4f5   : > { %2778 = vrcp.f32 %v955_v43  ;;  %v1166_v48 = vpop.permute.xlu0 %1165 }
 0x4f6   : > { %v1171_v58 = vsel %vm229_vm1, %v1166_v48, 0 }
 0x4f8   : > { %v1216_v45 = vpop.permute.xlu1 %1215 }
 0x4f9   : > { %v1221_v53 = vsel %vm229_vm1, %v1216_v45, 0  ;;  %v1164_v56 = vpop.permute.xlu0 %1163 }
 0x4fc   : > { %v1266_v51 = vpop.permute.xlu1 %1265 }
 0x4fd   : > { %v1214_v61 = vpop.permute.xlu0 %1213  ;;  %v1271_v0 = vsel %vm229_vm1, %v1266_v51, 0 }
 0x4ff   : > { %v2777_v49 = vpop.eup %2776 }
 0x500   : > { %v966_v50 = vmul.f32 %v2777_v49, %v2769_v18  ;;  %v1316_v60 = vpop.permute.xlu1 %1315 }
 0x501   : > { %v1321_v63 = vsel %vm229_vm1, %v1316_v60, 0  ;;  %v1264_v4 = vpop.permute.xlu0 %1263 }
 0x502   : > { %v2779_v52 = vpop.eup %2778  ;;  %v970_v54 = vpack.c.bf16 %v966_v50, %v966_v50 }
 0x503   : > { %v965_v57 = vmul.f32 %v2779_v52, %v2771_v19 }
 0x504   : > { %2530 = vmatmul.mubr.msk.bf16.vlgmr.msra.gmra.mxu1 %vm507_vm4, %v970_v54  ;;  %v1314_v2 = vpop.permute.xlu1 %1313 }
 0x505   : > { %2540 = vmatpush3.bf16.xpose.msra.mxu1 %v1221_v53  ;;  %v969_v59 = vpack.c.bf16 %v965_v57, %v965_v57  ;;  %2541 = vmatprep.mubr.msk.bf16.mxu1 %vm2834_vm0, %v2833_v3  ;;  %v2670_v31 = vpop.permute.xlu0 %2669 }
 0x506   : > { %2551 = vmatprep.subr.bf16.mxu1 %v2833_v3 }
 0x507   : > { %2524 = vmatmul.mubr.msk.bf16.vlgmr.msra.gmra.mxu0 %vm507_vm4, %v969_v59 }
 0x508   : > { %2534 = vmatpush3.bf16.xpose.msra.mxu0 %v1171_v58  ;;  %2535 = vmatprep.mubr.msk.bf16.mxu0 %vm2834_vm0, %v2833_v3  ;;  %v2675_v50 = vpop.permute.xlu1 %2674 }
 0x509   : > { %2545 = vmatprep.subr.bf16.mxu0 %v2833_v3 }
 0x50c   : > { %2542 = vmatmul.mubr.msk.bf16.vlgmr.msra.gmra.mxu1 %vm229_vm1, %v1214_v61 }
 0x50d   : > { %2552 = vmatpush3.bf16.xpose.msra.mxu1 %v1321_v63  ;;  %2553 = vmatprep.mubr.msk.bf16.mxu1 %vm2834_vm0, %v2833_v3 }
 0x50e   : > { %2563 = vmatprep.subr.bf16.mxu1 %v2833_v3 }
 0x50f   : > { %2536 = vmatmul.mubr.msk.bf16.vlgmr.msra.gmra.mxu0 %vm229_vm1, %v1164_v56 }
 0x510   : > { %2546 = vmatpush3.bf16.xpose.msra.mxu0 %v1271_v0  ;;  %2547 = vmatprep.mubr.msk.bf16.mxu0 %vm2834_vm0, %v2833_v3 }
 0x511   : > { %2557 = vmatprep.subr.bf16.mxu0 %v2833_v3 }
 0x514   : > { %2554 = vmatmul.mubr.msk.bf16.vlgmr.msra.gmra.mxu1 %vm229_vm1, %v1314_v2 }
 0x515   : > { %2565 = vmatprep.mubr.msk.bf16.mxu1 %vm2834_vm0, %v2833_v3 }
 0x517   : > { %2548 = vmatmul.mubr.msk.bf16.vlgmr.msra.gmra.mxu0 %vm229_vm1, %v1264_v4 }
 0x518   : > { %2559 = vmatprep.mubr.msk.bf16.mxu0 %vm2834_vm0, %v2833_v3 }
 0x58e   : > { %v3127_v5 = vpop.f32.mrf.mxu0 }
 0x58f   : > { %v3129_v6 = vpop.f32.mrf.mxu1 }
 0x590   : > { %v2688_v9 = vpack.i.bf16 %v3129_v6, %v3127_v5  ;;  %v2513_v12 = vpop.f32.mrf.mxu0 }
 0x591   : > { %v2519_v15 = vpop.f32.mrf.mxu1 }
 0x592   : > { %v1016_v16 = vpop.f32.mrf.mxu0 }
 0x593   : > { %v1064_v17 = vpop.f32.mrf.mxu1 }
 0x594   : > { %v2514_v18 = vpop.f32.mrf.mxu0 }
 0x595   : > { %v2520_v19 = vpop.f32.mrf.mxu1 }
 0x5c4   : > { %v3133_v20 = vpop.f32.mrf.mxu1 }
 0x5c6   : > { %v2531_v21 = vpop.f32.mrf.mxu1 }
 0x5c7   : > { %v3135_v27 = vpop.f32.mrf.mxu0 }
 0x5c8   : > { %v1160_v28 = vpop.f32.mrf.mxu1 }
 0x5c9   : > { %v2525_v24 = vpop.f32.mrf.mxu0 }
 0x5ca   : > { %v2532_v30 = vpop.f32.mrf.mxu1 }
 0x5cb   : > { %v1112_v32 = vpop.f32.mrf.mxu0 }
 0x5cc   : > { %v1257_v33 = vpop.f32.mrf.mxu1 }
 0x5cd   : > { %v1364_v34 = vmul.f32 0.35355338, %v1257_v33  ;;  %v2526_v35 = vpop.f32.mrf.mxu0 }
 0x5ce   : > { %v2543_v36 = vpop.f32.mrf.mxu1 }
 0x5cf   : > { %v3137_v37 = vadd.high.f32.bf16 %v1364_v34, %v2670_v31  ;;  %v1207_v39 = vpop.f32.mrf.mxu0 }
 0x5d0   : > { %v1363_v40 = vmul.f32 0.35355338, %v1207_v39  ;;  %v1260_v41 = vpop.f32.mrf.mxu1 }
 0x5d1   : > { %v2537_v42 = vpop.f32.mrf.mxu0  ;;  %v1386_v43 = vsel %vm456_vm2, %v3137_v37, -inf }
 0x5d2   : > { %v3141_v45 = vadd.low.f32.bf16 %v1363_v40, %v2670_v31  ;;  %1387 = vmax.xlane.f32.xlu1 %v1386_v43  ;;  %v2544_v48 = vpop.f32.mrf.mxu1 }
 0x5d3   : > { %v1210_v49 = vpop.f32.mrf.mxu0 }
 0x5d4   : > { %v1383_v51 = vsel %vm456_vm2, %v3141_v45, -inf  ;;  %v1357_v52 = vpop.f32.mrf.mxu1 }
 0x5d5   : > { %v2538_v53 = vpop.f32.mrf.mxu0  ;;  %1384 = vmax.xlane.f32.xlu0 %v1383_v51  ;;  %v1366_v54 = vmul.f32 0.35355338, %v1357_v52 }
 0x5d6   : > { %v2555_v56 = vpop.f32.mrf.mxu1 }
 0x5d7   : > { %v1307_v57 = vpop.f32.mrf.mxu0  ;;  %v3147_v63 = vadd.high.f32.bf16 %v1366_v54, %v2675_v50 }
 0x5d8   : > { %v1365_v58 = vmul.f32 0.35355338, %v1307_v57  ;;  %v1360_v59 = vpop.f32.mrf.mxu1 }
 0x5d9   : > { %v2549_v60 = vpop.f32.mrf.mxu0  ;;  %v1392_v15 = vsel %vm456_vm2, %v3147_v63, -inf }
 0x5da   : > { %v3145_v61 = vadd.low.f32.bf16 %v1365_v58, %v2675_v50  ;;  %v2556_v0 = vpop.f32.mrf.mxu1 }
 0x5db   : > { %v1310_v2 = vpop.f32.mrf.mxu0 }
 0x5dc   : > { %v1389_v4 = vsel %vm456_vm2, %v3145_v61, -inf }
 0x5dd   : > { %1390 = vmax.xlane.f32.xlu0 %v1389_v4  ;;  %v2550_v12 = vpop.f32.mrf.mxu0 }
 0x5e1   : > { %1393 = vmax.xlane.f32.xlu0 %v1392_v15 }
 0x5e3   : > { %1431 = vrot.lane.b32.xlu1 %v2893_v10, %s2843_s30 }
 0x65b   : > { %v1388_v16 = vpop.xlane.xlu1 %1387 }
 0x65c   : > { %v1396_v17 = vsub.f32 %v3137_v37, %v1388_v16 }
 0x65e   : > { %v1401_v18 = vmul.f32 1.442695, %v1396_v17  ;;  %v1385_v19 = vpop.xlane.xlu0 %1384 }
 0x65f   : > { %v1395_v21 = vsub.f32 %v3141_v45, %v1385_v19  ;;  %v1432_v28 = vpop.permute.xlu1 %1431 }
 0x660   : > { %2780 = vpow2.f32 %v1401_v18  ;;  %v1437_v31 = vsel %vm511_vm3, %v1432_v28, 0 }
 0x661   : > { %v1399_v24 = vmul.f32 1.442695, %v1395_v21  ;;  %2558 = vmatpush3.bf16.msra.mxu0 %v1437_v31 }
 0x662   : > { %2569 = vmatprep.subr.bf16.mxu0 %v2833_v3 }
 0x663   : > { %2782 = vpow2.f32 %v1399_v24 }
 0x666   : > { %v1391_v35 = vpop.xlane.xlu0 %1390 }
 0x667   : > { %v1397_v41 = vsub.f32 %v3145_v61, %v1391_v35 }
 0x669   : > { %v1403_v42 = vmul.f32 1.442695, %v1397_v41 }
 0x66a   : > { %v1394_v36 = vpop.xlane.xlu0 %1393 }
 0x66b   : > { %v1398_v39 = vsub.f32 %v3147_v63, %v1394_v36 }
 0x66d   : > { %v2781_v30 = vpop.eup %2780  ;;  %v1405_v40 = vmul.f32 1.442695, %v1398_v39 }
 0x66e   : > { %v1410_v32 = vsel %vm456_vm2, %v2781_v30, 0.0 }
 0x66f   : > { %1411 = vadd.xlane.f32.xlu0 %v1410_v32  ;;  %2784 = vpow2.f32 %v1405_v40 }
 0x670   : > { %v2783_v33 = vpop.eup %2782  ;;  %2786 = vpow2.f32 %v1403_v42 }
 0x671   : > { %v1407_v34 = vsel %vm456_vm2, %v2783_v33, 0.0 }
 0x672   : > { %1408 = vadd.xlane.f32.xlu1 %v1407_v34 }
 0x67c   : > { %v2785_v43 = vpop.eup %2784 }
 0x67d   : > { %v1416_v48 = vsel %vm456_vm2, %v2785_v43, 0.0  ;;  %v2787_v49 = vpop.eup %2786 }
 0x67e   : > { %v1413_v50 = vsel %vm456_vm2, %v2787_v49, 0.0 }
 0x683   : > { %1527 = vrot.lane.b32.xlu1 %v2895_v11, %s2843_s30 }
 0x685   : > { %1479 = vrot.lane.b32.xlu0 %v2898_v13, %s2843_s30 }
 0x687   : > { %1575 = vrot.lane.b32.xlu1 %v2901_v14, %s2843_s30 }
 0x6a4   : > { %1417 = vadd.xlane.f32.xlu0 %v1416_v48 }
 0x6ab   : > { %1414 = vadd.xlane.f32.xlu1 %v1413_v50 }
 0x6ba   : > { %1625 = vrot.lane.b32.xlu0 %v2893_v10, %s2844_s4 }
 0x6bc   : > { %1675 = vrot.lane.b32.xlu1 %v2898_v13, %s2844_s4 }
 0x6be   : > { %1623 = vrot.lane.b32.xlu0 %v2893_v10, %s2845_s5 }
 0x6c0   : > { %1725 = vrot.lane.b32.xlu1 %v2895_v11, %s2844_s4 }
 0x6c2   : > { %1673 = vrot.lane.b32.xlu0 %v2898_v13, %s2845_s5 }
 0x6c4   : > { %1775 = vrot.lane.b32.xlu1 %v2901_v14, %s2844_s4 }
 0x6c6   : > { %1723 = vrot.lane.b32.xlu0 %v2895_v11, %s2845_s5 }
 0x6c8   : > { %1773 = vrot.lane.b32.xlu1 %v2901_v14, %s2845_s5 }
 0x6ca   : > { %2679 = vrot.lane.b32.xlu0 %v2993_v22, %s2846_s6 }
 0x6cc   : > { %2684 = vrot.lane.b32.xlu1 %v2997_v25, %s2846_s6 }
 0x6f8   : > { %v1412_v51 = vpop.xlane.xlu0 %1411 }
 0x6f9   : > { %2788 = vrcp.f32 %v1412_v51 }
 0x6fb   : > { %v1409_v52 = vpop.xlane.xlu1 %1408 }
 0x6fc   : > { %2790 = vrcp.f32 %v1409_v52  ;;  %v1480_v53 = vpop.permute.xlu0 %1479 }
 0x6fd   : > { %v1485_v54 = vsel %vm511_vm3, %v1480_v53, 0 }
 0x6fe   : > { %2564 = vmatpush3.bf16.msra.mxu1 %v1485_v54 }
 0x6ff   : > { %2575 = vmatprep.subr.bf16.mxu1 %v2833_v3  ;;  %v1528_v56 = vpop.permute.xlu1 %1527 }
 0x700   : > { %v1533_v4 = vsel %vm511_vm3, %v1528_v56, 0 }
 0x703   : > { %v1576_v59 = vpop.permute.xlu1 %1575 }
 0x704   : > { %v1581_v22 = vsel %vm511_vm3, %v1576_v59, 0 }
 0x706   : > { %v2789_v57 = vpop.eup %2788 }
 0x707   : > { %v1424_v58 = vmul.f32 %v2789_v57, %v2781_v30 }
 0x709   : > { %v2791_v60 = vpop.eup %2790  ;;  %v1428_v0 = vpack.c.bf16 %v1424_v58, %v1424_v58 }
 0x70a   : > { %v1423_v2 = vmul.f32 %v2791_v60, %v2783_v33 }
 0x70b   : > { %2566 = vmatmul.mubr.msk.bf16.vlgmr.msra.gmra.mxu1 %vm507_vm4, %v1428_v0 }
 0x70c   : > { %2576 = vmatpush3.bf16.msra.mxu1 %v1581_v22  ;;  %v1427_v25 = vpack.c.bf16 %v1423_v2, %v1423_v2  ;;  %2577 = vmatprep.mubr.msk.bf16.mxu1 %vm2834_vm0, %v2833_v3 }
 0x70d   : > { %2587 = vmatprep.subr.bf16.mxu1 %v2833_v3 }
 0x70e   : > { %2560 = vmatmul.mubr.msk.bf16.vlgmr.msra.gmra.mxu0 %vm507_vm4, %v1427_v25 }
 0x70f   : > { %2570 = vmatpush3.bf16.msra.mxu0 %v1533_v4  ;;  %2571 = vmatprep.mubr.msk.bf16.mxu0 %vm2834_vm0, %v2833_v3 }
 0x710   : > { %2581 = vmatprep.subr.bf16.mxu0 %v2833_v3 }
 0x72d   : > { %v1418_v12 = vpop.xlane.xlu0 %1417 }
 0x72e   : > { %2792 = vrcp.f32 %v1418_v12 }
 0x731   : > { %v1626_v17 = vpop.permute.xlu0 %1625 }
 0x732   : > { %v1631_v34 = vsel %vm229_vm1, %v1626_v17, 0 }
 0x734   : > { %v1415_v15 = vpop.xlane.xlu1 %1414 }
 0x735   : > { %2794 = vrcp.f32 %v1415_v15  ;;  %v1624_v24 = vpop.permute.xlu0 %1623 }
 0x738   : > { %v1676_v16 = vpop.permute.xlu1 %1675 }
 0x739   : > { %v1681_v28 = vsel %vm229_vm1, %v1676_v16, 0  ;;  %v1674_v35 = vpop.permute.xlu0 %1673 }
 0x73b   : > { %v2793_v18 = vpop.eup %2792 }
 0x73c   : > { %v1426_v19 = vmul.f32 %v2793_v18, %v2785_v43  ;;  %v1726_v21 = vpop.permute.xlu1 %1725 }
 0x73d   : > { %v1731_v40 = vsel %vm229_vm1, %v1726_v21, 0  ;;  %v1724_v42 = vpop.permute.xlu0 %1723 }
 0x73e   : > { %v1430_v31 = vpack.c.bf16 %v1426_v19, %v1426_v19 }
 0x740   : > { %2578 = vmatmul.mubr.msk.bf16.vlgmr.msra.gmra.mxu1 %vm507_vm4, %v1430_v31  ;;  %v1776_v33 = vpop.permute.xlu1 %1775 }
 0x741   : > { %2588 = vmatpush3.bf16.xpose.msra.mxu1 %v1681_v28  ;;  %2589 = vmatprep.mubr.msk.bf16.mxu1 %vm2834_vm0, %v2833_v3  ;;  %v1781_v39 = vsel %vm229_vm1, %v1776_v33, 0  ;;  %v2680_v60 = vpop.permute.xlu0 %2679 }
 0x742   : > { %v2795_v30 = vpop.eup %2794  ;;  %2599 = vmatprep.subr.bf16.mxu1 %v2833_v3 }
 0x743   : > { %v1425_v32 = vmul.f32 %v2795_v30, %v2787_v49 }
 0x744   : > { %v1774_v41 = vpop.permute.xlu1 %1773 }
 0x745   : > { %v1429_v36 = vpack.c.bf16 %v1425_v32, %v1425_v32 }
 0x747   : > { %2572 = vmatmul.mubr.msk.bf16.vlgmr.msra.gmra.mxu0 %vm507_vm4, %v1429_v36 }
 0x748   : > { %2590 = vmatmul.mubr.msk.bf16.vlgmr.msra.gmra.mxu1 %vm229_vm1, %v1674_v35  ;;  %2582 = vmatpush3.bf16.xpose.msra.mxu0 %v1631_v34  ;;  %v2685_v36 = vpop.permute.xlu1 %2684 }
 0x749   : > { %2583 = vmatprep.mubr.msk.bf16.mxu0 %vm2834_vm0, %v2833_v3  ;;  %2600 = vmatpush3.bf16.xpose.msra.mxu1 %v1781_v39 }
 0x74a   : > { %2593 = vmatprep.subr.bf16.mxu0 %v2833_v3  ;;  %2601 = vmatprep.mubr.msk.bf16.mxu1 %vm2834_vm0, %v2833_v3 }
 0x74b   : > { %2611 = vmatprep.subr.bf16.mxu1 %v2833_v3 }
 0x74f   : > { %2584 = vmatmul.mubr.msk.bf16.vlgmr.msra.gmra.mxu0 %vm229_vm1, %v1624_v24 }
 0x750   : > { %2594 = vmatpush3.bf16.xpose.msra.mxu0 %v1731_v40  ;;  %2602 = vmatmul.mubr.msk.bf16.vlgmr.msra.gmra.mxu1 %vm229_vm1, %v1774_v41 }
 0x751   : > { %2595 = vmatprep.mubr.msk.bf16.mxu0 %vm2834_vm0, %v2833_v3  ;;  %2605 = vmatprep.subr.bf16.mxu0 %v2833_v3 }
 0x752   : > { %2613 = vmatprep.mubr.msk.bf16.mxu1 %vm2834_vm0, %v2833_v3 }
 0x757   : > { %2596 = vmatmul.mubr.msk.bf16.vlgmr.msra.gmra.mxu0 %vm229_vm1, %v1724_v42 }
 0x758   : > { %2607 = vmatprep.mubr.msk.bf16.mxu0 %vm2834_vm0, %v2833_v3 }
 0x7cb   : > { %v3215_v43 = vpop.f32.mrf.mxu1 }
 0x7cd   : > { %v2567_v48 = vpop.f32.mrf.mxu1 }
 0x7ce   : > { %v3217_v49 = vpop.f32.mrf.mxu0 }
 0x7cf   : > { %v2698_v50 = vpack.i.bf16 %v3215_v43, %v3217_v49  ;;  %v1524_v51 = vpop.f32.mrf.mxu1 }
 0x7d0   : > { %v2561_v52 = vpop.f32.mrf.mxu0 }
 0x7d1   : > { %v2568_v53 = vpop.f32.mrf.mxu1 }
 0x7d2   : > { %v1476_v54 = vpop.f32.mrf.mxu0 }
 0x7d4   : > { %v2562_v56 = vpop.f32.mrf.mxu0 }
 0x800   : > { %v3221_v57 = vpop.f32.mrf.mxu1 }
 0x802   : > { %v2579_v58 = vpop.f32.mrf.mxu1 }
 0x804   : > { %v1620_v59 = vpop.f32.mrf.mxu1 }
 0x806   : > { %v2580_v0 = vpop.f32.mrf.mxu1 }
 0x807   : > { %v3223_v2 = vpop.f32.mrf.mxu0 }
 0x808   : > { %v2723_v22 = vpack.i.bf16 %v3221_v57, %v3223_v2  ;;  %v1717_v25 = vpop.f32.mrf.mxu1 }
 0x809   : > { %v1824_v4 = vmul.f32 0.35355338, %v1717_v25  ;;  %v2573_v12 = vpop.f32.mrf.mxu0 }
 0x80a   : > { %v2591_v15 = vpop.f32.mrf.mxu1 }
 0x80b   : > { %v3227_v16 = vadd.high.f32.bf16 %v1824_v4, %v2680_v60  ;;  %v1572_v17 = vpop.f32.mrf.mxu0 }
 0x80c   : > { %v1720_v18 = vpop.f32.mrf.mxu1 }
 0x80d   : > { %v2574_v19 = vpop.f32.mrf.mxu0  ;;  %v1846_v21 = vsel %vm456_vm2, %v3227_v16, -inf }
 0x80e   : > { %1847 = vmax.xlane.f32.xlu1 %v1846_v21  ;;  %v2592_v28 = vpop.f32.mrf.mxu1 }
 0x80f   : > { %v1667_v31 = vpop.f32.mrf.mxu0 }
 0x810   : > { %v1823_v24 = vmul.f32 0.35355338, %v1667_v31  ;;  %v1817_v30 = vpop.f32.mrf.mxu1 }
 0x811   : > { %v2585_v32 = vpop.f32.mrf.mxu0  ;;  %v1826_v51 = vmul.f32 0.35355338, %v1817_v30 }
 0x812   : > { %v3231_v33 = vadd.low.f32.bf16 %v1823_v24, %v2680_v60  ;;  %v2603_v34 = vpop.f32.mrf.mxu1 }
 0x813   : > { %v1670_v35 = vpop.f32.mrf.mxu0  ;;  %v3237_v58 = vadd.high.f32.bf16 %v1826_v51, %v2685_v36  ;;  %v2693_v51 = vpack.i.bf16 %v3049_v26, %v3047_v23  ;;  %v2728_v23 = vpack.i.bf16 %v3147_v63, %v3145_v61 }
 0x814   : > { %v1843_v39 = vsel %vm456_vm2, %v3231_v33, -inf  ;;  %v1820_v40 = vpop.f32.mrf.mxu1 }
 0x815   : > { %v2586_v41 = vpop.f32.mrf.mxu0  ;;  %1844 = vmax.xlane.f32.xlu0 %v1843_v39  ;;  %v1852_v0 = vsel %vm456_vm2, %v3237_v58, -inf }
 0x816   : > { %v2604_v42 = vpop.f32.mrf.mxu1 }
 0x817   : > { %v1767_v48 = vpop.f32.mrf.mxu0 }
 0x818   : > { %v1825_v52 = vmul.f32 0.35355338, %v1767_v48 }
 0x819   : > { %v2597_v53 = vpop.f32.mrf.mxu0 }
 0x81a   : > { %v3235_v54 = vadd.low.f32.bf16 %v1825_v52, %v2685_v36  ;;  %v2703_v52 = vpack.i.bf16 %v3135_v27, %v3141_v45 }
 0x81b   : > { %v1770_v56 = vpop.f32.mrf.mxu0 }
 0x81c   : > { %v1849_v59 = vsel %vm456_vm2, %v3235_v54, -inf  ;;  %v2743_v26 = vpack.i.bf16 %v3237_v58, %v3235_v54 }
 0x81d   : > { %v2598_v60 = vpop.f32.mrf.mxu0  ;;  %1850 = vmax.xlane.f32.xlu0 %v1849_v59 }
 0x81f   : > { %1891 = vrot.lane.b32.xlu1 %v2893_v10, %s2847_s7 }
 0x821   : > { %1853 = vmax.xlane.f32.xlu0 %v1852_v0 }
 0x897   : > { %v1848_v25 = vpop.xlane.xlu1 %1847 }
 0x898   : > { %v1856_v4 = vsub.f32 %v3227_v16, %v1848_v25 }
 0x89a   : > { %v1861_v12 = vmul.f32 1.442695, %v1856_v4 }
 0x89b   : > { %v1892_v15 = vpop.permute.xlu1 %1891 }
 0x89c   : > { %2796 = vpow2.f32 %v1861_v12  ;;  %v1897_v17 = vsel %vm511_vm3, %v1892_v15, 0 }
 0x89d   : > { %2606 = vmatpush3.bf16.msra.mxu0 %v1897_v17 }
 0x89e   : > { %v1845_v18 = vpop.xlane.xlu0 %1844  ;;  %2617 = vmatprep.subr.bf16.mxu0 %v2833_v3 }
 0x89f   : > { %v1855_v19 = vsub.f32 %v3231_v33, %v1845_v18 }
 0x8a1   : > { %v1859_v21 = vmul.f32 1.442695, %v1855_v19 }
 0x8a3   : > { %2798 = vpow2.f32 %v1859_v21 }
 0x8a6   : > { %v1851_v10 = vpop.xlane.xlu0 %1850 }
 0x8a7   : > { %v1857_v28 = vsub.f32 %v3235_v54, %v1851_v10 }
 0x8a9   : > { %v2797_v31 = vpop.eup %2796  ;;  %v1863_v24 = vmul.f32 1.442695, %v1857_v28 }
 0x8aa   : > { %v1870_v30 = vsel %vm456_vm2, %v2797_v31, 0.0  ;;  %v1854_v32 = vpop.xlane.xlu0 %1853 }
 0x8ab   : > { %2800 = vpow2.f32 %v1863_v24  ;;  %1871 = vadd.xlane.f32.xlu0 %v1870_v30  ;;  %v1858_v34 = vsub.f32 %v3237_v58, %v1854_v32 }
 0x8ad   : > { %v1865_v35 = vmul.f32 1.442695, %v1858_v34 }
 0x8af   : > { %2802 = vpow2.f32 %v1865_v35 }
 0x8b0   : > { %v2799_v36 = vpop.eup %2798 }
 0x8b1   : > { %v1867_v39 = vsel %vm456_vm2, %v2799_v36, 0.0 }
 0x8b2   : > { %1868 = vadd.xlane.f32.xlu1 %v1867_v39 }
 0x8b8   : > { %v3253_v40 = vpop.eup %2800 }
 0x8b9   : > { %v1873_v41 = vsel %vm456_vm2, %v3253_v40, 0.0 }
 0x8ba   : > { %1874 = vadd.xlane.f32.xlu1 %v1873_v41 }
 0x8bc   : > { %v3257_v42 = vpop.eup %2802 }
 0x8bd   : > { %v1876_v48 = vsel %vm456_vm2, %v3257_v42, 0.0 }
 0x8be   : > { %1877 = vadd.xlane.f32.xlu0 %v1876_v48 }
 0x8cb   : > { %1987 = vrot.lane.b32.xlu1 %v2895_v11, %s2847_s7  ;;  %v2708_v11 = vpack.i.bf16 %v3057_v46, %v3055_v44 }
 0x8cf   : > { %2035 = vrot.lane.b32.xlu1 %v2901_v14, %s2847_s7  ;;  %v2713_v14 = vpack.i.bf16 %v3133_v20, %v3137_v37 }
 0x8d3   : > { %2694 = vrot.lane.b32.xlu1 %v2693_v51, %s2848_s8 }
 0x8d4   : > { %1939 = vrot.lane.b32.xlu0 %v2898_v13, %s2847_s7  ;;  %v2718_v13 = vpack.i.bf16 %v3227_v16, %v3231_v33 }
 0x8d7   : > { %2704 = vrot.lane.b32.xlu1 %v2703_v52, %s2849_s9 }
 0x8d8   : > { %2689 = vrot.lane.b32.xlu0 %v2688_v9, %s2849_s9 }
 0x8db   : > { %2709 = vrot.lane.b32.xlu1 %v2708_v11, %s2848_s8 }
 0x8dc   : > { %2699 = vrot.lane.b32.xlu0 %v2698_v50, %s2850_s10 }
 0x8df   : > { %2719 = vrot.lane.b32.xlu1 %v2718_v13, %s2851_s11 }
 0x8e0   : > { %2714 = vrot.lane.b32.xlu0 %v2713_v14, %s2849_s9 }
 0x8e3   : > { %2729 = vrot.lane.b32.xlu1 %v2728_v23, %s2849_s9 }
 0x8e4   : > { %2724 = vrot.lane.b32.xlu0 %v2723_v22, %s2850_s10 }
 0x8e7   : > { %2744 = vrot.lane.b32.xlu1 %v2743_v26, %s2851_s11 }
 0x934   : > { %v1872_v44 = vpop.xlane.xlu0 %1871 }
 0x935   : > { %2804 = vrcp.f32 %v1872_v44 }
 0x93b   : > { %v1869_v46 = vpop.xlane.xlu1 %1868 }
 0x93c   : > { %2806 = vrcp.f32 %v1869_v46 }
 0x942   : > { %v2805_v6 = vpop.eup %2804 }
 0x943   : > { %v1875_v5 = vpop.xlane.xlu1 %1874  ;;  %v1884_v45 = vmul.f32 %v2805_v6, %v2797_v31 }
 0x944   : > { %2808 = vrcp.f32 %v1875_v5 }
 0x945   : > { %v1888_v2 = vpack.c.bf16 %v1884_v45, %v1884_v45 }
 0x947   : > { %v1988_v9 = vpop.permute.xlu1 %1987  ;;  %v1878_v20 = vpop.xlane.xlu0 %1877 }
 0x948   : > { %2810 = vrcp.f32 %v1878_v20  ;;  %v1993_v43 = vsel %vm511_vm3, %v1988_v9, 0 }
 0x949   : > { %v2807_v27 = vpop.eup %2806 }
 0x94a   : > { %v1883_v37 = vmul.f32 %v2807_v27, %v2799_v36 }
 0x94b   : > { %v2036_v61 = vpop.permute.xlu1 %2035  ;;  %v1940_v63 = vpop.permute.xlu0 %1939 }
 0x94c   : > { %v1945_v49 = vsel %vm511_vm3, %v1940_v63, 0  ;;  %v1887_v50 = vpack.c.bf16 %v1883_v37, %v1883_v37  ;;  %v2041_v57 = vsel %vm511_vm3, %v2036_v61, 0 }
 0x94d   : > { %2612 = vmatpush3.bf16.msra.mxu1 %v1945_v49 }
 0x94e   : > { %2608 = vmatmul.mubr.msk.bf16.vlgmr.msra.gmra.mxu0 %vm507_vm4, %v1887_v50  ;;  %2623 = vmatprep.subr.bf16.mxu1 %v2833_v3 }
 0x94f   : > { %v2695_v22 = vpop.permute.xlu1 %2694  ;;  %v2690_v16 = vpop.permute.xlu0 %2689  ;;  %2618 = vmatpush3.bf16.msra.mxu0 %v1993_v43  ;;  %2619 = vmatprep.mubr.msk.bf16.mxu0 %vm2834_vm0, %v2833_v3 }
 0x950   : > { %2614 = vmatmul.mubr.msk.bf16.vlgmr.msra.gmra.mxu1 %vm507_vm4, %v1888_v2  ;;  %v2692_v53 = vunpack.i.h.bf16 %v2690_v16  ;;  %v2691_v54 = vunpack.i.l.bf16 %v2690_v16  ;;  %v2697_v10 = vunpack.i.h.bf16 %v2695_v22 }
 0x951   : > { %v2809_v33 = vpop.eup %2808  ;;  %2624 = vmatpush3.bf16.msra.mxu1 %v2041_v57  ;;  %2625 = vmatprep.mubr.msk.bf16.mxu1 %vm2834_vm0, %v2833_v3 }
 0x952   : > { %v1885_v59 = vmul.f32 %v2809_v33, %v3253_v40  ;;  %v2132_v4 = vsel %vm229_vm1, %v3041_v1, %v2692_v53  ;;  %v2131_v12 = vsel %vm229_vm1, %v3039_v62, %v2691_v54  ;;  %v2696_v1 = vunpack.i.l.bf16 %v2695_v22 }
 0x953   : > { %v3300_v56 = vpop.permute.xlu1 %2704  ;;  %v2700_v58 = vpop.permute.xlu0 %2699  ;;  %v2203_v30 = vsel %vm507_vm4, %v2945_v38, %v2697_v10 }
 0x954   : > { %v2702_v60 = vunpack.i.h.bf16 %v2700_v58  ;;  %v2701_v0 = vunpack.i.l.bf16 %v2700_v58  ;;  %v1889_v15 = vpack.c.bf16 %v1885_v59, %v1885_v59  ;;  %v2706_v28 = vunpack.i.l.bf16 %v3300_v56 }
 0x955   : > { %v2811_v25 = vpop.eup %2810  ;;  %v2202_v32 = vsel %vm507_vm4, %v2936_v29, %v2696_v1  ;;  %v2707_v10 = vunpack.i.h.bf16 %v3300_v56 }
 0x956   : > { %v3308_v17 = vsel %vm2135_vm5, %v2131_v12, %v2701_v0  ;;  %v3311_v3 = vsel %vm2135_vm5, %v2132_v4, %v2702_v60  ;;  %2620 = vmatmul.mubr.msk.bf16.vlgmr.msra.gmra.mxu0 %vm507_vm4, %v1889_v15  ;;  %v1886_v21 = vmul.f32 %v2811_v25, %v3257_v42  ;;  %v2206_v36 = vsel %vm229_vm1, %v2202_v32, %v2706_v28 }
 0x957   : > { %v2710_v18 = vpop.permute.xlu1 %2709  ;;  %v3314_v19 = vpop.permute.xlu0 %2714 }
 0x958   : > { %v2716_v62 = vunpack.i.l.bf16 %v3314_v19  ;;  %v1890_v31 = vpack.c.bf16 %v1886_v21, %v1886_v21  ;;  %v2712_v51 = vunpack.i.h.bf16 %v2710_v18  ;;  %v2711_v29 = vunpack.i.l.bf16 %v2710_v18 }
 0x959   : > { %v2717_v1 = vunpack.i.h.bf16 %v3314_v19 }
 0x95a   : > { %2626 = vmatmul.mubr.msk.bf16.vlgmr.msra.gmra.mxu1 %vm507_vm4, %v1890_v31  ;;  %v2207_v39 = vsel %vm229_vm1, %v2203_v30, %v2716_v62  ;;  %v2205_v14 = vsel %vm507_vm4, %v2959_v55, %v2712_v51  ;;  %v2204_v23 = vsel %vm507_vm4, %v2954_v47, %v2711_v29 }
 0x95b   : > { %v2720_v24 = vpop.permute.xlu1 %2719  ;;  %v2725_v60 = vpop.permute.xlu0 %2724 }
 0x95c   : > { %v2722_v34 = vunpack.i.h.bf16 %v2720_v24  ;;  %v2721_v35 = vunpack.i.l.bf16 %v2720_v24  ;;  %v2727_v28 = vunpack.i.h.bf16 %v2725_v60  ;;  %v2726_v62 = vunpack.i.l.bf16 %v2725_v60 }
 0x95d   : > { %v2133_v24 = vsel %vm229_vm1, %v3043_v7, %v2707_v10 }
 0x95e   : > { %v2211_v40 = vsel %vm2210_vm6, %v2206_v36, %v2721_v35  ;;  %v2212_v41 = vsel %vm2210_vm6, %v2207_v39, %v2722_v34  ;;  %v2138_v32 = vsel %vm2135_vm5, %v2133_v24, %v2726_v62 }
 0x95f   : > { %v2215_v42 = vpack.c.bf16 %v2211_v40, %v2211_v40  ;;  %v2216_v38 = vpack.c.bf16 %v2212_v41, %v2212_v41  ;;  %v2730_v48 = vpop.permute.xlu1 %2729 }
 0x960   : > { %v2732_v52 = vunpack.i.h.bf16 %v2730_v48  ;;  %v2731_v11 = vunpack.i.l.bf16 %v2730_v48 }
 0x961   : > { %2220 = vst.msk [vmem:[%s208_s16] sm:$0x3] %vm2219_vm7, %v2215_v42  ;;  %2221 = vst.msk [vmem:[%s208_s16 + $0x2] sm:$0x3] %vm2219_vm7, %v2216_v38 }
 0x962   : > { %v2208_v46 = vsel %vm229_vm1, %v2204_v23, %v2731_v11  ;;  %v2209_v5 = vsel %vm229_vm1, %v2205_v14, %v2732_v52 }
 0x963   : > { %v2745_v13 = vpop.permute.xlu1 %2744 }
 0x964   : > { %v2747_v26 = vunpack.i.h.bf16 %v2745_v13  ;;  %v2746_v44 = vunpack.i.l.bf16 %v2745_v13 }
 0x966   : > { %v2213_v6 = vsel %vm2210_vm6, %v2208_v46, %v2746_v44  ;;  %v2214_v9 = vsel %vm2210_vm6, %v2209_v5, %v2747_v26 }
 0x967   : > { %v2217_v20 = vpack.c.bf16 %v2213_v6, %v2213_v6  ;;  %v2218_v27 = vpack.c.bf16 %v2214_v9, %v2214_v9 }
 0x969   : > { %2222 = vst.msk [vmem:[%s208_s16 + $0x4] sm:$0x3] %vm2219_vm7, %v2217_v20  ;;  %2223 = vst.msk [vmem:[%s208_s16 + $0x6] sm:$0x3] %vm2219_vm7, %v2218_v27 }
 0xa0e   : > { %v1933_v55 = vpop.f32.mrf.mxu0 }
 0xa10   : > { %v2609_v37 = vpop.f32.mrf.mxu0  ;;  %v1981_v45 = vpop.f32.mrf.mxu1 }
 0xa11   : > { %v2733_v47 = vpack.i.bf16 %v1981_v45, %v1933_v55 }
 0xa12   : > { %v1936_v61 = vpop.f32.mrf.mxu0  ;;  %v2615_v63 = vpop.f32.mrf.mxu1 }
 0xa13   : > { %2734 = vrot.lane.b32.xlu0 %v2733_v47, %s2852_s17 }
 0xa14   : > { %v2610_v43 = vpop.f32.mrf.mxu0  ;;  %v1984_v49 = vpop.f32.mrf.mxu1 }
 0xa16   : > { %v2616_v50 = vpop.f32.mrf.mxu1  ;;  %v2029_v57 = vpop.f32.mrf.mxu0 }
 0xa18   : > { %v2621_v2 = vpop.f32.mrf.mxu0 }
 0xa1a   : > { %v2032_v22 = vpop.f32.mrf.mxu0  ;;  %v2077_v16 = vpop.f32.mrf.mxu1 }
 0xa1b   : > { %v2738_v33 = vpack.i.bf16 %v2077_v16, %v2029_v57 }
 0xa1c   : > { %v2622_v53 = vpop.f32.mrf.mxu0  ;;  %v2627_v54 = vpop.f32.mrf.mxu1 }
 0xa1d   : > { %2739 = vrot.lane.b32.xlu0 %v2738_v33, %s2852_s17 }
 0xa1e   : > { %v2080_v58 = vpop.f32.mrf.mxu1 }
 0xa20   : > { %v2628_v59 = vpop.f32.mrf.mxu1 }
 0xa85   : > { %v2735_v0 = vpop.permute.xlu0 %2734 }
 0xa86   : > { %v2737_v25 = vunpack.i.h.bf16 %v2735_v0  ;;  %v2736_v4 = vunpack.i.l.bf16 %v2735_v0 }
 0xa88   : > { %v2141_v12 = vsel %vm2140_vm8, %v3308_v17, %v2736_v4  ;;  %v2142_v15 = vsel %vm2140_vm8, %v3311_v3, %v2737_v25  ;;  %v2134_v17 = vsel %vm229_vm1, %v3045_v8, %v2717_v1 }
 0xa89   : > { %v2145_v18 = vpack.c.bf16 %v2141_v12, %v2141_v12  ;;  %v2146_v21 = vpack.c.bf16 %v2142_v15, %v2142_v15  ;;  %v2139_v34 = vsel %vm2135_vm5, %v2134_v17, %v2727_v28 }
 0xa8b   : > { %2150 = vst.msk [vmem:[%s202_s20] sm:$0x3] %vm2149_vm9, %v2145_v18  ;;  %2151 = vst.msk [vmem:[%s202_s20 + $0x2] sm:$0x3] %vm2149_vm9, %v2146_v21 }
 0xa8f   : > { %v2740_v31 = vpop.permute.xlu0 %2739 }
 0xa90   : > { %v2742_v3 = vunpack.i.h.bf16 %v2740_v31  ;;  %v2741_v30 = vunpack.i.l.bf16 %v2740_v31 }
 0xa92   : > { %v2143_v35 = vsel %vm2140_vm8, %v2138_v32, %v2741_v30  ;;  %v2144_v56 = vsel %vm2140_vm8, %v2139_v34, %v2742_v3 }
 0xa93   : > { %v2147_v19 = vpack.c.bf16 %v2143_v35, %v2143_v35  ;;  %v2148_v36 = vpack.c.bf16 %v2144_v56, %v2144_v56 }
 0xa95   : > { %2152 = vst.msk [vmem:[%s202_s20 + $0x4] sm:$0x3] %vm2149_vm9, %v2147_v19  ;;  %2153 = vst.msk [vmem:[%s202_s20 + $0x6] sm:$0x3] %vm2149_vm9, %v2148_v36 }
 0xa96 PF: > { %s14_s12 = sadd.s32 1, %s2830_s12  }
 0xa97   : > { %p11_p4 = scmp.ge.s32.totalorder %s14_s12, 4  }
 0xa99   :  { %13 = sbr.rel (!%p11_p4) target bundleno = 1 (0x1), region = 73 }

</bundles_post_ra>
